<compile_context>
chip_gen: v6e
topology: v6e:2x2x1
jax: 0.10.0
libtpu: 0.0.40
codegen_flags: <defaults>
</compile_context>

<pallas_src>
import math

import jax
import jax.numpy as jnp
from jax import lax
from jax.experimental import pallas as pl
from jax.experimental.pallas import tpu as pltpu


def _round_up(x: int, m: int) -> int:
    return (x + m - 1) // m * m


def _make_kernel(inv_tau, n_real, tm, tn, nc, pad_corr):
    # Unit-norm rows => logits <= ~1/tau => exp(logits - shift) <= ~1 (safe).
    shift = inv_tau
    needs_mask = pad_corr != 0.0

    def kernel(h1_ref, h2_ref, row_out_ref, col_out_ref, row_s, diag_s):
        i = pl.program_id(0)      # row-tile index   ('parallel')
        j = pl.program_id(1)      # col-tile index   (reduction, innermost)

        @pl.when(j == 0)
        def _():
            row_s[...] = jnp.zeros_like(row_s)
            diag_s[...] = jnp.zeros_like(diag_s)

        # sim tile on the MXU: bf16 unit-norm operands, f32 accumulation.
        sim = lax.dot_general(h1_ref[...], h2_ref[...],
                              (((1,), (1,)), ((), ())),
                              preferred_element_type=jnp.float32)   # (tm, tn)
        logits = sim * inv_tau
        p = jnp.exp(logits - shift)                                  # <= ~1

        row_s[...] = row_s[...] + jnp.sum(p, axis=1, keepdims=True)

        # Per-tile column exp-sums -> lane-dense partial output (summed over
        # row tiles in the wrapper).
        col_part = jnp.sum(p, axis=0, keepdims=True)                 # (1, tn)
        col_out_ref[...] = jnp.broadcast_to(col_part.reshape(1, 1, tn),
                                            (1, 8, tn))

        # Diagonal of sim: only the column tile(s) that intersect the
        # diagonal band of this row tile do any work.
        @pl.when(jnp.logical_and(j * tn < (i + 1) * tm,
                                 i * tm < (j + 1) * tn))
        def _():
            rows = lax.broadcasted_iota(jnp.int32, (tm, tn), 0) + i * tm
            cols = lax.broadcasted_iota(jnp.int32, (tm, tn), 1) + j * tn
            diag_s[...] = diag_s[...] + jnp.sum(
                jnp.where(rows == cols, logits, 0.0), axis=1, keepdims=True)

        # Finalize this row tile: partial of sum_r (0.5*row_lse_r - diag_r).
        @pl.when(j == nc - 1)
        def _():
            rs = row_s[...]
            if needs_mask:
                rs = rs - pad_corr          # padded cols contribute exp(-1/tau)
            row_lse = shift + jnp.log(rs)
            contrib = 0.5 * row_lse - diag_s[...]
            if needs_mask:
                rid = lax.broadcasted_iota(jnp.int32, (tm, 1), 0) + i * tm
                contrib = jnp.where(rid < n_real, contrib, 0.0)
            row_out_ref[...] = jnp.broadcast_to(jnp.sum(contrib), (1, 8, 128))

    return kernel


def dual_branch_contrast(h1, h2, tau: float = 0.2):
    """L2L DualBranchContrast forward (default masks): scalar contrastive loss."""
    assert h1.shape == h2.shape and h1.ndim == 2
    n, d = h1.shape
    inv_tau = 1.0 / float(tau)
    shift = inv_tau

    # ---- L2-normalize once in f32 (eps-clamped like F.normalize) ----------
    def _normalize(x):
        x = x.astype(jnp.float32)
        return x * lax.rsqrt(
            jnp.maximum(jnp.sum(x * x, axis=-1, keepdims=True), 1e-24))

    # ---- lane-dense padded sizes and tile selection ------------------------
    dp = _round_up(d, 128)
    n128 = _round_up(n, 128)
    tn = 512 if n128 >= 512 else n128
    npad = _round_up(n, tn)

    # Hardware-derived VMEM budget (v7x has only 64 MiB per TensorCore).
    try:
        cap = int(pltpu.get_tpu_info().vmem_capacity_bytes)
    except Exception:
        cap = 64 * 1024 * 1024
    budget = max(min(cap - (12 << 20), 100 << 20), 24 << 20)

    def _vmem_est(tm_, tn_):
        inputs = 2 * 2 * (tm_ + tn_) * dp        # double-buffered bf16 blocks
        tiles = 3 * 4 * tm_ * tn_                # sim / exp / temporaries (f32)
        scratch = 2 * 4 * tm_ * 128              # row_s + diag_s (lane-padded)
        outs = 2 * 4 * 8 * (tn_ + 128)           # double-buffered output blocks
        return inputs + tiles + scratch + outs

    # Grow the row tile while it divides npad and fits the budget: HBM traffic
    # is (npad/tm) full passes over h2, so bigger tm => fewer re-reads.
    tm = tn
    while (tm * 2 <= min(npad, 2048) and npad % (tm * 2) == 0
           and _vmem_est(tm * 2, tn) <= budget):
        tm *= 2

    nr, nc = npad // tm, npad // tn
    pad = npad - n
    pad_corr = float(pad) * math.exp(-shift)

    # ---- normalize, pad, cast to bf16 (halves DMA bytes & input VMEM) ------
    h1n = _normalize(h1)
    h2n = _normalize(h2)
    if (npad, dp) != (n, d):
        h1n = jnp.pad(h1n, ((0, npad - n), (0, dp - d)))
        h2n = jnp.pad(h2n, ((0, npad - n), (0, dp - d)))
    h1n = h1n.astype(jnp.bfloat16)
    h2n = h2n.astype(jnp.bfloat16)

    kernel = _make_kernel(inv_tau, n, tm, tn, nc, pad_corr)

    est = _vmem_est(tm, tn)
    vmem_limit = None
    if est > 14 * 1024 * 1024:
        vmem_limit = int(min(max(est + (4 << 20), 32 << 20), budget))

    cost = pl.CostEstimate(
        flops=2 * npad * npad * dp + 8 * npad * npad,
        transcendentals=npad * npad + 4 * npad,
        bytes_accessed=2 * npad * dp * (nr + 1) + 4 * nr * 8 * (npad + 128),
    )

    row_out, col_out = pl.pallas_call(
        kernel,
        out_shape=(
            jax.ShapeDtypeStruct((nr, 8, 128), jnp.float32),   # row-loss partials
            jax.ShapeDtypeStruct((nr, 8, npad), jnp.float32),  # column exp-sums
        ),
        grid=(nr, nc),
        in_specs=[
            pl.BlockSpec((tm, dp), lambda i, j: (i, 0)),   # h1 row block (resident over j)
            pl.BlockSpec((tn, dp), lambda i, j: (j, 0)),   # h2 column block
        ],
        out_specs=(
            pl.BlockSpec((1, 8, 128), lambda i, j: (i, 0, 0)),
            pl.BlockSpec((1, 8, tn), lambda i, j: (i, 0, j)),
        ),
        scratch_shapes=[
            pltpu.VMEM((tm, 1), jnp.float32),   # running row exp-sums
            pltpu.VMEM((tm, 1), jnp.float32),   # diagonal logits
        ],
        compiler_params=pltpu.CompilerParams(
            dimension_semantics=("parallel", "arbitrary"),
            vmem_limit_bytes=vmem_limit,
        ),
        cost_estimate=cost,
    )(h1n, h2n)

    # ---- tiny combine in plain JAX (keeps the kernel's row axis 'parallel') -
    row_total = jnp.sum(row_out[:, 0, 0])
    col_sum = jnp.sum(col_out[:, 0, :], axis=0)[:n]
    if pad > 0:
        col_sum = col_sum - pad_corr       # padded rows contribute exp(-1/tau)
    col_lse = shift + jnp.log(col_sum)
    return (row_total + 0.5 * jnp.sum(col_lse)) / n


def _reference(h1, h2, tau):
    n1 = h1 / jnp.maximum(jnp.linalg.norm(h1, axis=-1, keepdims=True), 1e-12)
    n2 = h2 / jnp.maximum(jnp.linalg.norm(h2, axis=-1, keepdims=True), 1e-12)
    sim = (n1 @ n2.T) / tau
    diag = jnp.diag(sim)
    l1 = -jnp.mean(diag - jax.scipy.special.logsumexp(sim, axis=1))
    l2 = -jnp.mean(diag - jax.scipy.special.logsumexp(sim, axis=0))
    return 0.5 * (l1 + l2)


if __name__ == "__main__":
    key = jax.random.PRNGKey(0)
    k1, k2 = jax.random.split(key)
    N, D = 300, 32   # nodes x hidden (exercises padding + the correction path)
    h1 = jax.random.normal(k1, (N, D), dtype=jnp.float32)
    h2 = jax.random.normal(k2, (N, D), dtype=jnp.float32)

    loss = dual_branch_contrast(h1, h2, tau=0.2)
    jax.block_until_ready(loss)

    ref = _reference(h1, h2, 0.2)
    assert bool(jnp.isfinite(loss)), "kernel produced non-finite loss"
    assert abs(float(loss) - float(ref)) < 5e-2, (float(loss), float(ref))
    print("KERNEL_OK")
</pallas_src>

<mosaic_0001>
module attributes {stable_mosaic.version = 11 : i64} {
  func.func @kernel(%arg0: i32, %arg1: i32, %arg2: memref<384x128xbf16, #tpu.memory_space<vmem>>, %arg3: memref<384x128xbf16, #tpu.memory_space<vmem>>, %arg4: memref<1x8x128xf32, #tpu.memory_space<vmem>>, %arg5: memref<1x8x384xf32, #tpu.memory_space<vmem>>, %arg6: memref<384x1xf32, #tpu.memory_space<vmem>>, %arg7: memref<384x1xf32, #tpu.memory_space<vmem>>) attributes {dimension_semantics = [#tpu.dimension_semantics<parallel>, #tpu.dimension_semantics<arbitrary>], iteration_bounds = array<i64: 1, 1>, scalar_prefetch = 0 : i64, scratch_operands = 2 : i64, tpu.core_type = #tpu.core_type<tc>, window_params = [{transform_indices = @transform_0, window_bounds = array<i64: 384, 128>}, {transform_indices = @transform_1, window_bounds = array<i64: 384, 128>}, {transform_indices = @transform_2, window_bounds = array<i64: 1, 8, 128>}, {transform_indices = @transform_3, window_bounds = array<i64: 1, 8, 384>}]} {
    %c0_i32 = arith.constant 0 : i32
    %0 = arith.cmpi eq, %arg1, %c0_i32 : i32
    %1 = arith.extui %0 : i1 to i32
    %c0_i32_0 = arith.constant 0 : i32
    %2 = arith.cmpi ne, %1, %c0_i32_0 : i32
    scf.if %2 {
      %cst_22 = arith.constant 0.000000e+00 : f32
      %36 = vector.broadcast %cst_22 : f32 to vector<384x1xf32>
      %c0_23 = arith.constant 0 : index
      %c0_24 = arith.constant 0 : index
      %37 = vector.load %arg6[%c0_23, %c0_24] : memref<384x1xf32, #tpu.memory_space<vmem>>, vector<384x1xf32>
      tpu.vector_store %arg6[%c0_23, %c0_24], %36 {strides = array<i32>} : memref<384x1xf32, #tpu.memory_space<vmem>>, vector<384x1xf32>,
      %cst_25 = arith.constant 0.000000e+00 : f32
      %38 = vector.broadcast %cst_25 : f32 to vector<384x1xf32>
      %c0_26 = arith.constant 0 : index
      %c0_27 = arith.constant 0 : index
      %39 = vector.load %arg7[%c0_26, %c0_27] : memref<384x1xf32, #tpu.memory_space<vmem>>, vector<384x1xf32>
      tpu.vector_store %arg7[%c0_26, %c0_27], %38 {strides = array<i32>} : memref<384x1xf32, #tpu.memory_space<vmem>>, vector<384x1xf32>,
    } else {
    }
    %c0 = arith.constant 0 : index
    %c0_1 = arith.constant 0 : index
    %3 = vector.load %arg2[%c0, %c0_1] : memref<384x128xbf16, #tpu.memory_space<vmem>>, vector<384x128xbf16>
    %c0_2 = arith.constant 0 : index
    %c0_3 = arith.constant 0 : index
    %4 = vector.load %arg3[%c0_2, %c0_3] : memref<384x128xbf16, #tpu.memory_space<vmem>>, vector<384x128xbf16>
    %cst = arith.constant dense<0.000000e+00> : vector<384x384xf32>
    %5 = tpu.matmul %3, %4, %cst {dimension_numbers = #tpu.dot_dimension_numbers<[1], [1], [0], [0], [0, 0, 1, 0], [], []>} : vector<384x128xbf16>, vector<384x128xbf16>, vector<384x384xf32> -> vector<384x384xf32>
    %cst_4 = arith.constant 5.000000e+00 : f32
    %6 = vector.broadcast %cst_4 : f32 to vector<384x384xf32>
    %7 = arith.mulf %5, %6 : vector<384x384xf32>
    %cst_5 = arith.constant 5.000000e+00 : f32
    %8 = vector.broadcast %cst_5 : f32 to vector<384x384xf32>
    %9 = arith.subf %7, %8 : vector<384x384xf32>
    %10 = math.exp %9 : vector<384x384xf32>
    %c0_6 = arith.constant 0 : index
    %c0_7 = arith.constant 0 : index
    %11 = vector.load %arg6[%c0_6, %c0_7] : memref<384x1xf32, #tpu.memory_space<vmem>>, vector<384x1xf32>
    %cst_8 = arith.constant dense<0.000000e+00> : vector<384xf32>
    %12 = vector.multi_reduction <add>, %10, %cst_8 [1] : vector<384x384xf32> to vector<384xf32>
    %13 = vector.shape_cast %12 : vector<384xf32> to vector<384x1xf32>
    %14 = arith.addf %11, %13 : vector<384x1xf32>
    %c0_9 = arith.constant 0 : index
    %c0_10 = arith.constant 0 : index
    %15 = vector.load %arg6[%c0_9, %c0_10] : memref<384x1xf32, #tpu.memory_space<vmem>>, vector<384x1xf32>
    tpu.vector_store %arg6[%c0_9, %c0_10], %14 {strides = array<i32>} : memref<384x1xf32, #tpu.memory_space<vmem>>, vector<384x1xf32>,
    %cst_11 = arith.constant dense<0.000000e+00> : vector<384xf32>
    %16 = vector.multi_reduction <add>, %10, %cst_11 [0] : vector<384x384xf32> to vector<384xf32>
    %17 = vector.shape_cast %16 : vector<384xf32> to vector<1x384xf32>
    %18 = vector.shape_cast %17 : vector<1x384xf32> to vector<1x1x384xf32>
    %19 = vector.shape_cast %18 : vector<1x1x384xf32> to vector<1x1x384xf32>
    %20 = vector.broadcast %19 : vector<1x1x384xf32> to vector<1x8x384xf32>
    %c0_12 = arith.constant 0 : index
    %c0_13 = arith.constant 0 : index
    %c0_14 = arith.constant 0 : index
    %21 = vector.load %arg5[%c0_12, %c0_13, %c0_14] : memref<1x8x384xf32, #tpu.memory_space<vmem>>, vector<1x8x384xf32>
    tpu.vector_store %arg5[%c0_12, %c0_13, %c0_14], %20 {strides = array<i32>} : memref<1x8x384xf32, #tpu.memory_space<vmem>>, vector<1x8x384xf32>,
    %c384_i32 = arith.constant 384 : i32
    %22 = arith.muli %arg1, %c384_i32 : i32
    %c1_i32 = arith.constant 1 : i32
    %23 = arith.addi %arg0, %c1_i32 : i32
    %c384_i32_15 = arith.constant 384 : i32
    %24 = arith.muli %23, %c384_i32_15 : i32
    %25 = arith.cmpi slt, %22, %24 : i32
    %c384_i32_16 = arith.constant 384 : i32
    %26 = arith.muli %arg0, %c384_i32_16 : i32
    %c1_i32_17 = arith.constant 1 : i32
    %27 = arith.addi %arg1, %c1_i32_17 : i32
    %c384_i32_18 = arith.constant 384 : i32
    %28 = arith.muli %27, %c384_i32_18 : i32
    %29 = arith.cmpi slt, %26, %28 : i32
    %30 = arith.andi %25, %29 : i1
    %31 = arith.extui %30 : i1 to i32
    %c0_i32_19 = arith.constant 0 : i32
    %32 = arith.cmpi ne, %31, %c0_i32_19 : i32
    scf.if %32 {
      %36 = tpu.iota {dimensions = array<i32: 0>} : vector<384x384xi32>
      %c384_i32_22 = arith.constant 384 : i32
      %37 = arith.muli %arg0, %c384_i32_22 : i32
      %38 = vector.broadcast %37 : i32 to vector<384x384xi32>
      %39 = arith.addi %36, %38 : vector<384x384xi32>
      %40 = tpu.iota {dimensions = array<i32: 1>} : vector<384x384xi32>
      %c384_i32_23 = arith.constant 384 : i32
      %41 = arith.muli %arg1, %c384_i32_23 : i32
      %42 = vector.broadcast %41 : i32 to vector<384x384xi32>
      %43 = arith.addi %40, %42 : vector<384x384xi32>
      %c0_24 = arith.constant 0 : index
      %c0_25 = arith.constant 0 : index
      %44 = vector.load %arg7[%c0_24, %c0_25] : memref<384x1xf32, #tpu.memory_space<vmem>>, vector<384x1xf32>
      %45 = arith.cmpi eq, %39, %43 : vector<384x384xi32>
      %cst_26 = arith.constant 0.000000e+00 : f32
      %46 = vector.broadcast %cst_26 : f32 to vector<384x384xf32>
      %47 = arith.select %45, %7, %46 : vector<384x384xi1>, vector<384x384xf32>
      %cst_27 = arith.constant dense<0.000000e+00> : vector<384xf32>
      %48 = vector.multi_reduction <add>, %47, %cst_27 [1] : vector<384x384xf32> to vector<384xf32>
      %49 = vector.shape_cast %48 : vector<384xf32> to vector<384x1xf32>
      %50 = arith.addf %44, %49 : vector<384x1xf32>
      %c0_28 = arith.constant 0 : index
      %c0_29 = arith.constant 0 : index
      %51 = vector.load %arg7[%c0_28, %c0_29] : memref<384x1xf32, #tpu.memory_space<vmem>>, vector<384x1xf32>
      tpu.vector_store %arg7[%c0_28, %c0_29], %50 {strides = array<i32>} : memref<384x1xf32, #tpu.memory_space<vmem>>, vector<384x1xf32>,
    } else {
    }
    %c0_i32_20 = arith.constant 0 : i32
    %33 = arith.cmpi eq, %arg1, %c0_i32_20 : i32
    %34 = arith.extui %33 : i1 to i32
    %c0_i32_21 = arith.constant 0 : i32
    %35 = arith.cmpi ne, %34, %c0_i32_21 : i32
    scf.if %35 {
      %c0_22 = arith.constant 0 : index
      %c0_23 = arith.constant 0 : index
      %36 = vector.load %arg6[%c0_22, %c0_23] : memref<384x1xf32, #tpu.memory_space<vmem>>, vector<384x1xf32>
      %cst_24 = arith.constant 0.565987527 : f32
      %37 = vector.broadcast %cst_24 : f32 to vector<384x1xf32>
      %38 = arith.subf %36, %37 : vector<384x1xf32>
      %39 = math.log %38 : vector<384x1xf32>
      %cst_25 = arith.constant 5.000000e+00 : f32
      %40 = vector.broadcast %cst_25 : f32 to vector<384x1xf32>
      %41 = arith.addf %40, %39 : vector<384x1xf32>
      %cst_26 = arith.constant 5.000000e-01 : f32
      %42 = vector.broadcast %cst_26 : f32 to vector<384x1xf32>
      %43 = arith.mulf %42, %41 : vector<384x1xf32>
      %c0_27 = arith.constant 0 : index
      %c0_28 = arith.constant 0 : index
      %44 = vector.load %arg7[%c0_27, %c0_28] : memref<384x1xf32, #tpu.memory_space<vmem>>, vector<384x1xf32>
      %45 = arith.subf %43, %44 : vector<384x1xf32>
      %46 = tpu.iota {dimensions = array<i32: 0>} : vector<384x1xi32>
      %c384_i32_29 = arith.constant 384 : i32
      %47 = arith.muli %arg0, %c384_i32_29 : i32
      %48 = vector.broadcast %47 : i32 to vector<384x1xi32>
      %49 = arith.addi %46, %48 : vector<384x1xi32>
      %c300_i32 = arith.constant 300 : i32
      %50 = vector.broadcast %c300_i32 : i32 to vector<384x1xi32>
      %51 = arith.cmpi slt, %49, %50 : vector<384x1xi32>
      %cst_30 = arith.constant 0.000000e+00 : f32
      %52 = vector.broadcast %cst_30 : f32 to vector<384x1xf32>
      %53 = arith.select %51, %45, %52 : vector<384x1xi1>, vector<384x1xf32>
      %54 = vector.shape_cast %53 : vector<384x1xf32> to vector<1x384x1xf32>
      %cst_31 = arith.constant dense<0.000000e+00> : vector<1xf32>
      %55 = vector.multi_reduction <add>, %54, %cst_31 [1, 2] : vector<1x384x1xf32> to vector<1xf32>
      %56 = vector.shape_cast %55 : vector<1xf32> to vector<1x1x1xf32>
      %57 = vector.extract %56[0, 0, 0] : f32 from vector<1x1x1xf32>
      %58 = vector.broadcast %57 : f32 to vector<1x8x128xf32>
      %c0_32 = arith.constant 0 : index
      %c0_33 = arith.constant 0 : index
      %c0_34 = arith.constant 0 : index
      %59 = vector.load %arg4[%c0_32, %c0_33, %c0_34] : memref<1x8x128xf32, #tpu.memory_space<vmem>>, vector<1x8x128xf32>
      tpu.vector_store %arg4[%c0_32, %c0_33, %c0_34], %58 {strides = array<i32>} : memref<1x8x128xf32, #tpu.memory_space<vmem>>, vector<1x8x128xf32>,
    } else {
    }
    return
  }
  func.func @transform_0(%arg0: i32, %arg1: i32) -> (i32, i32) {
    %c0_i32 = arith.constant 0 : i32
    %c0_i32_0 = arith.constant 0 : i32
    return %arg0, %c0_i32 : i32, i32
  }
  func.func @transform_1(%arg0: i32, %arg1: i32) -> (i32, i32) {
    %c0_i32 = arith.constant 0 : i32
    %c0_i32_0 = arith.constant 0 : i32
    return %arg1, %c0_i32 : i32, i32
  }
  func.func @transform_2(%arg0: i32, %arg1: i32) -> (i32, i32, i32) {
    %c0_i32 = arith.constant 0 : i32
    %c0_i32_0 = arith.constant 0 : i32
    %c0_i32_1 = arith.constant 0 : i32
    return %arg0, %c0_i32, %c0_i32_0 : i32, i32, i32
  }
  func.func @transform_3(%arg0: i32, %arg1: i32) -> (i32, i32, i32) {
    %c0_i32 = arith.constant 0 : i32
    %c0_i32_0 = arith.constant 0 : i32
    return %arg0, %c0_i32, %arg1 : i32, i32, i32
  }
}

</mosaic_0001>

<bundles_post_ra>
// kernel: tpu_custom_call.1
= control target key start
LH: loop header
LB: loop body
LE: loop exit
PB: predicated region body
PF: predicated region fallthrough
CT: control target
= control target key end

     0   :  { %9 = vsyncpa [#allocation5], 0  ;;  %s6079_s0 = inlined_call_operand.hbm [shape: bf16[384,128], index: 0, kind: input, shape index: {}]   ;;  %s6080_s1 = inlined_call_operand.hbm [shape: bf16[384,128], index: 1, kind: input, shape index: {}]   ;;  %s6081_s2 = inlined_call_operand.hbm [shape: f32[1,8,128], index: 2, kind: output, shape index: {0}]   ;;  %s6082_s3 = inlined_call_operand.hbm [shape: f32[1,8,384], index: 3, kind: output, shape index: {1}]  }
   0x1   :  { %10 = vsyncpa [#allocation8], 0 }
   0x2   :  { %11 = vsyncpa [#allocation6], 0 }
   0x3   :  { %12 = vsyncpa [#allocation11], 0  ;;  %s4470_s12 = smov [#allocation4]  }
   0x4   :  { %s18_s13 = sshll.u32 %s4470_s12, 4  ;;  %s19_s13 = int_to_ptr.vmem [resolvable:$true] %s18_s13 }
   0x5   :  { %s4390_s14 = scalar_lea.vmem %s19_s13, 3072  ;;  %p4395_p1 = scmp.lt.s32.totalorder %s19_s13, %s19_s13 }
   0x6   :  { %p4391_p0 = scmp.ne.s32.totalorder %s19_s13, %s4390_s14  ;;  %p4396_p2 = scmp.lt.s32.totalorder %s4390_s14, %s4390_s14 }
   0x8   :  { %p4397_p3 = por %p4396_p2, %p4395_p1 }
   0xa   :  { %p4398_p4 = pnand %p4397_p3, %p4391_p0 }
   0xc   :  { %4401 = shalt.err (!%p4398_p4)
}
   0xd   :  { %s4471_s15 = smov 64   ;;  %s4472_s16 = smov 4  }
   0xe   :  { %24 = dma.hbm_to_vmem [thread:$0]  %s6079_s0, 3072, %s19_s13, [#allocation5], %s4471_s15, %s4471_s15, %s4472_s16  }
   0xf   :  { %s4473_s19 = smov [#allocation7]  }
  0x10   :  { %s30_s20 = sshll.u32 %s4473_s19, 4  ;;  %s31_s20 = int_to_ptr.vmem [resolvable:$true] %s30_s20 }
  0x11   :  { %s4410_s21 = scalar_lea.vmem %s31_s20, 3072  ;;  %p4415_p6 = scmp.lt.s32.totalorder %s31_s20, %s31_s20 }
  0x12   :  { %p4411_p5 = scmp.ne.s32.totalorder %s31_s20, %s4410_s21  ;;  %p4416_p7 = scmp.lt.s32.totalorder %s4410_s21, %s4410_s21 }
  0x14   :  { %p4417_p8 = por %p4416_p7, %p4415_p6 }
  0x16   :  { %p4418_p9 = pnand %p4417_p8, %p4411_p5 }
  0x18   :  { %4421 = shalt.err (!%p4418_p9)
}
  0x19   :  { %36 = dma.hbm_to_vmem [thread:$0]  %s6080_s1, 3072, %s31_s20, [#allocation8], %s4471_s15, %s4471_s15, %s4472_s16  }
  0x1a   :  { %4462 = dma.done.wait [#allocation5], 3072  }
  0x1b   :  { %4463 = vsyncadd [#allocation5], 4294964224 }
  0x1c   :  { %4464 = dma.done.wait [#allocation8], 3072  }
  0x1d   :  { %4465 = vsyncadd [#allocation8], 4294964224  ;;  %v3970_v0 = vld [vmem:[#allocation7 + $0x78] sm:$0xff]   ;;  %v3973_v3 = vld [vmem:[#allocation7 + $0x70] sm:$0xff]   ;;  %v2114_v48 = vlaneseq  ;;  %s4475_s0 = smov [#allocation10]  }
  0x1e   :  { %v3971_v1 = vld [vmem:[#allocation7 + $0x38] sm:$0xff]   ;;  %3801 = vmatprep.subr.bf16.mxu0 %v3970_v0  ;;  %v3975_v4 = vld [vmem:[#allocation7 + $0xb0] sm:$0xff]   ;;  %v3976_v6 = vld [vmem:[#allocation7 + $0x68] sm:$0xff]   ;;  %s3547_s1 = sshll.u32 %s4475_s0, 4  ;;  %s3548_s1 = int_to_ptr.vmem [resolvable:$true] %s3547_s1 }
  0x1f   :  { %v3972_v2 = vld [vmem:[#allocation7 + $0xb8] sm:$0xff]   ;;  %3802 = vmatpush3.bf16.xpose.msra.mxu0 %v3971_v1  ;;  %v3974_v5 = vld [vmem:[#allocation7 + $0x30] sm:$0xff]   ;;  %v3978_v7 = vld [vmem:[#allocation7 + $0xa8] sm:$0xff]   ;;  %v4503_v49 = vshrl.u32 %v2114_v48, 7  ;;  %v4505_v50 = vand.u32 127, %v2114_v48  ;;  %s4422_s24 = scalar_lea.vmem %s3548_s1, 384  ;;  %p4427_p11 = scmp.lt.s32.totalorder %s3548_s1, %s3548_s1 }
  0x20   :  { %3897 = vmatprep.subr.bf16.mxu1 %v3972_v2  ;;  %3803 = vmatprep.subr.bf16.mxu0 %v3973_v3  ;;  %v3977_v8 = vld [vmem:[#allocation7 + $0x28] sm:$0xff]   ;;  %v3979_v9 = vld [vmem:[#allocation7 + $0x60] sm:$0xff]   ;;  %v3982_v12 = vld [vmem:[#allocation7 + $0x58] sm:$0xff]   ;;  %p4423_p10 = scmp.ne.s32.totalorder %s3548_s1, %s4422_s24  ;;  %p4428_p12 = scmp.lt.s32.totalorder %s4422_s24, %s4422_s24 }
  0x21   :  { %3898 = vmatpush3.bf16.xpose.msra.mxu1 %v3972_v2  ;;  %v3981_v10 = vld [vmem:[#allocation7 + $0xa0] sm:$0xff]   ;;  %v3984_v14 = vld [vmem:[#allocation7 + $0x98] sm:$0xff]   ;;  %v3985_v16 = vld [vmem:[#allocation7 + $0x50] sm:$0xff]   ;;  %6117 = vst [vmem:[#allocation16_spill] sm:$0xff] %v4505_v50  ;;  %v2116_v51 = vadd.s32 8, %v4503_v49  ;;  %vm2268_vm0 = vcmp.eq.s32.totalorder %v4503_v49, %v4505_v50  ;;  %v2117_v53 = vadd.s32 16, %v4503_v49 }
  0x22   :  { %3899 = vmatprep.subr.bf16.mxu1 %v3975_v4  ;;  %v3980_v11 = vld [vmem:[#allocation7 + $0x20] sm:$0xff]   ;;  %v3983_v15 = vld [vmem:[#allocation7 + $0x18] sm:$0xff]   ;;  %v3987_v17 = vld [vmem:[#allocation7 + $0x90] sm:$0xff]   ;;  %v4512_v55 = vadd.s32 24, %v4503_v49  ;;  %v4517_v0 = vadd.s32 32, %v4503_v49  ;;  %v4520_v1 = vadd.s32 40, %v4503_v49  ;;  %p4429_p13 = por %p4428_p12, %p4427_p11 }
  0x23   :  { %v3994_v13 = vld [vmem:[#allocation4] sm:$0xff]   ;;  %v3986_v18 = vld [vmem:[#allocation7 + $0x10] sm:$0xff]   ;;  %v3988_v19 = vld [vmem:[#allocation7 + $0x48] sm:$0xff]   ;;  %vm2271_vm1 = vcmp.eq.s32.totalorder %v2116_v51, %v4505_v50  ;;  %vm2274_vm2 = vcmp.eq.s32.totalorder %v2117_v53, %v4505_v50  ;;  %v4523_v2 = vadd.s32 48, %v4503_v49 }
  0x24   :  { %3817 = vmatprep.mubr.bf16.mxu0 %v3994_v13  ;;  %3913 = vmatprep.mubr.bf16.mxu1 %v3994_v13  ;;  %v3990_v20 = vld [vmem:[#allocation7 + $0x88] sm:$0xff]   ;;  %v3991_v22 = vld [vmem:[#allocation7 + $0x40] sm:$0xff]   ;;  %v3996_v26 = vld [vmem:[#allocation4 + $0x10] sm:$0xff]   ;;  %vm2277_vm3 = vcmp.eq.s32.totalorder %v4512_v55, %v4505_v50  ;;  %vm2280_vm4 = vcmp.eq.s32.totalorder %v4517_v0, %v4505_v50  ;;  %vm2283_vm5 = vcmp.eq.s32.totalorder %v4520_v1, %v4505_v50  ;;  %p4430_p0 = pnand %p4429_p13, %p4423_p10 }
  0x25   :  { %v3989_v21 = vld [vmem:[#allocation7 + $0x8] sm:$0xff]   ;;  %v3993_v23 = vld [vmem:[#allocation7 + $0x80] sm:$0xff]   ;;  %v3997_v27 = vld [vmem:[#allocation4 + $0x18] sm:$0xff]   ;;  %vm2286_vm6 = vcmp.eq.s32.totalorder %v4523_v2, %v4505_v50 }
  0x26   :  { %v3992_v24 = vld [vmem:[#allocation7] sm:$0xff]   ;;  %v3995_v25 = vld [vmem:[#allocation4 + $0x8] sm:$0xff]   ;;  %v4000_v30 = vld [vmem:[#allocation4 + $0x30] sm:$0xff]  }
  0x27   :  { %3804 = vmatpush3.bf16.xpose.msra.mxu0 %v3974_v5  ;;  %v3998_v28 = vld [vmem:[#allocation4 + $0x20] sm:$0xff]   ;;  %v3999_v29 = vld [vmem:[#allocation4 + $0x28] sm:$0xff]   ;;  %v4001_v31 = vld [vmem:[#allocation4 + $0x38] sm:$0xff]  }
  0x28   :  { %3805 = vmatprep.subr.bf16.mxu0 %v3976_v6  ;;  %v4002_v32 = vld [vmem:[#allocation4 + $0x40] sm:$0xff]   ;;  %v4003_v33 = vld [vmem:[#allocation4 + $0x48] sm:$0xff]   ;;  %v4004_v34 = vld [vmem:[#allocation4 + $0x50] sm:$0xff]  }
  0x29   :  { %3900 = vmatpush3.bf16.xpose.msra.mxu1 %v3975_v4  ;;  %v4005_v35 = vld [vmem:[#allocation4 + $0x58] sm:$0xff]   ;;  %v4006_v36 = vld [vmem:[#allocation4 + $0x60] sm:$0xff]   ;;  %v4007_v37 = vld [vmem:[#allocation4 + $0x68] sm:$0xff]  }
  0x2a   :  { %3901 = vmatprep.subr.bf16.mxu1 %v3978_v7  ;;  %v4008_v38 = vld [vmem:[#allocation4 + $0x70] sm:$0xff]   ;;  %v4009_v39 = vld [vmem:[#allocation4 + $0x78] sm:$0xff]   ;;  %v4010_v40 = vld [vmem:[#allocation4 + $0x80] sm:$0xff]  }
  0x2b   :  { %v4011_v41 = vld [vmem:[#allocation4 + $0x88] sm:$0xff]   ;;  %v4012_v42 = vld [vmem:[#allocation4 + $0x90] sm:$0xff]   ;;  %v4013_v43 = vld [vmem:[#allocation4 + $0x98] sm:$0xff]  }
  0x2c   :  { %v4014_v44 = vld [vmem:[#allocation4 + $0xa0] sm:$0xff]   ;;  %v4015_v45 = vld [vmem:[#allocation4 + $0xa8] sm:$0xff]   ;;  %v4016_v46 = vld [vmem:[#allocation4 + $0xb0] sm:$0xff]  }
  0x2d   :  { %v4017_v47 = vld [vmem:[#allocation4 + $0xb8] sm:$0xff]  }
  0x2f   :  { %3806 = vmatpush3.bf16.xpose.msra.mxu0 %v3977_v8 }
  0x30   :  { %3807 = vmatprep.subr.bf16.mxu0 %v3979_v9 }
  0x31   :  { %3902 = vmatpush3.bf16.xpose.msra.mxu1 %v3978_v7 }
  0x32   :  { %3903 = vmatprep.subr.bf16.mxu1 %v3981_v10 }
  0x37   :  { %3808 = vmatpush3.bf16.xpose.msra.mxu0 %v3980_v11  ;;  %v4531_v11 = vadd.s32 64, %v4503_v49 }
  0x38   :  { %3809 = vmatprep.subr.bf16.mxu0 %v3982_v12  ;;  %v4534_v12 = vadd.s32 72, %v4503_v49 }
  0x39   :  { %3904 = vmatpush3.bf16.xpose.msra.mxu1 %v3981_v10  ;;  %v4528_v10 = vadd.s32 56, %v4503_v49  ;;  %vm2292_vm8 = vcmp.eq.s32.totalorder %v4531_v11, %v4505_v50 }
  0x3a   :  { %3905 = vmatprep.subr.bf16.mxu1 %v3984_v14  ;;  %vm2295_vm9 = vcmp.eq.s32.totalorder %v4534_v12, %v4505_v50 }
  0x3b   :  { %vm2289_vm7 = vcmp.eq.s32.totalorder %v4528_v10, %v4505_v50 }
  0x3f   :  { %3810 = vmatpush3.bf16.xpose.msra.mxu0 %v3983_v15 }
  0x40   :  { %3811 = vmatprep.subr.bf16.mxu0 %v3985_v16 }
  0x41   :  { %3906 = vmatpush3.bf16.xpose.msra.mxu1 %v3984_v14 }
  0x42   :  { %3907 = vmatprep.subr.bf16.mxu1 %v3987_v17 }
  0x47   :  { %3812 = vmatpush3.bf16.xpose.msra.mxu0 %v3986_v18 }
  0x48   :  { %3813 = vmatprep.subr.bf16.mxu0 %v3988_v19 }
  0x49   :  { %3908 = vmatpush3.bf16.xpose.msra.mxu1 %v3987_v17 }
  0x4a   :  { %3909 = vmatprep.subr.bf16.mxu1 %v3990_v20 }
  0x4f   :  { %3814 = vmatpush3.bf16.xpose.msra.mxu0 %v3989_v21 }
  0x50   :  { %3815 = vmatprep.subr.bf16.mxu0 %v3991_v22 }
  0x51   :  { %3910 = vmatpush3.bf16.xpose.msra.mxu1 %v3990_v20 }
  0x52   :  { %3911 = vmatprep.subr.bf16.mxu1 %v3993_v23 }
  0x57   :  { %3816 = vmatpush3.bf16.xpose.msra.mxu0 %v3992_v24 }
  0x59   :  { %3912 = vmatpush3.bf16.xpose.msra.mxu1 %v3993_v23 }
  0x5e   :  { %3818 = vmatmul.mubr.bf16.vlgmr.msra.gmra.mxu0 %v3994_v13 }
  0x5f   :  { %3819 = vmatprep.mubr.bf16.mxu0 %v3995_v25 }
  0x60   :  { %3914 = vmatmul.mubr.bf16.vlgmr.msra.gmra.mxu1 %v3995_v25 }
  0x61   :  { %3917 = vmatprep.mubr.bf16.mxu1 %v3996_v26 }
  0x66   :  { %3820 = vmatmul.mubr.bf16.gmra.mxu0 %v3995_v25 }
  0x67   :  { %3821 = vmatprep.mubr.bf16.mxu0 %v3996_v26 }
  0x68   :  { %3918 = vmatmul.mubr.bf16.gmra.mxu1 %v3997_v27 }
  0x69   :  { %3921 = vmatprep.mubr.bf16.mxu1 %v3998_v28 }
  0x6e   :  { %3822 = vmatmul.mubr.bf16.gmra.mxu0 %v3996_v26 }
  0x6f   :  { %3823 = vmatprep.mubr.bf16.mxu0 %v3997_v27 }
  0x70   :  { %3922 = vmatmul.mubr.bf16.gmra.mxu1 %v3999_v29 }
  0x71   :  { %3925 = vmatprep.mubr.bf16.mxu1 %v4000_v30 }
  0x76   :  { %3824 = vmatmul.mubr.bf16.gmra.mxu0 %v3997_v27 }
  0x77   :  { %3825 = vmatprep.mubr.bf16.mxu0 %v3998_v28 }
  0x78   :  { %3926 = vmatmul.mubr.bf16.gmra.mxu1 %v4001_v31 }
  0x79   :  { %3929 = vmatprep.mubr.bf16.mxu1 %v4002_v32 }
  0x7e   :  { %3826 = vmatmul.mubr.bf16.gmra.mxu0 %v3998_v28 }
  0x7f   :  { %3827 = vmatprep.mubr.bf16.mxu0 %v3999_v29 }
  0x80   :  { %3930 = vmatmul.mubr.bf16.gmra.mxu1 %v4003_v33 }
  0x81   :  { %3933 = vmatprep.mubr.bf16.mxu1 %v4004_v34 }
  0x86   :  { %3828 = vmatmul.mubr.bf16.gmra.mxu0 %v3999_v29 }
  0x87   :  { %3829 = vmatprep.mubr.bf16.mxu0 %v4000_v30 }
  0x88   :  { %3934 = vmatmul.mubr.bf16.gmra.mxu1 %v4005_v35 }
  0x89   :  { %3937 = vmatprep.mubr.bf16.mxu1 %v4006_v36 }
  0x8e   :  { %3830 = vmatmul.mubr.bf16.gmra.mxu0 %v4000_v30 }
  0x8f   :  { %3831 = vmatprep.mubr.bf16.mxu0 %v4001_v31 }
  0x90   :  { %3938 = vmatmul.mubr.bf16.gmra.mxu1 %v4007_v37 }
  0x91   :  { %3941 = vmatprep.mubr.bf16.mxu1 %v4008_v38 }
  0x96   :  { %3832 = vmatmul.mubr.bf16.gmra.mxu0 %v4001_v31 }
  0x97   :  { %3833 = vmatprep.mubr.bf16.mxu0 %v4002_v32 }
  0x98   :  { %3942 = vmatmul.mubr.bf16.gmra.mxu1 %v4009_v39 }
  0x99   :  { %3945 = vmatprep.mubr.bf16.mxu1 %v4010_v40 }
  0x9e   :  { %3834 = vmatmul.mubr.bf16.gmra.mxu0 %v4002_v32 }
  0x9f   :  { %3835 = vmatprep.mubr.bf16.mxu0 %v4003_v33 }
  0xa0   :  { %3946 = vmatmul.mubr.bf16.gmra.mxu1 %v4011_v41 }
  0xa1   :  { %3949 = vmatprep.mubr.bf16.mxu1 %v4012_v42 }
  0xa6   :  { %3836 = vmatmul.mubr.bf16.gmra.mxu0 %v4003_v33 }
  0xa7   :  { %3837 = vmatprep.mubr.bf16.mxu0 %v4004_v34 }
  0xa8   :  { %3950 = vmatmul.mubr.bf16.gmra.mxu1 %v4013_v43 }
  0xa9   :  { %3953 = vmatprep.mubr.bf16.mxu1 %v4014_v44 }
  0xae   :  { %3838 = vmatmul.mubr.bf16.gmra.mxu0 %v4004_v34 }
  0xaf   :  { %3839 = vmatprep.mubr.bf16.mxu0 %v4005_v35 }
  0xb0   :  { %3954 = vmatmul.mubr.bf16.gmra.mxu1 %v4015_v45 }
  0xb1   :  { %3957 = vmatprep.mubr.bf16.mxu1 %v4016_v46 }
  0xb6   :  { %3840 = vmatmul.mubr.bf16.gmra.mxu0 %v4005_v35 }
  0xb7   :  { %3841 = vmatprep.mubr.bf16.mxu0 %v4006_v36 }
  0xb8   :  { %3958 = vmatmul.mubr.bf16.gmra.mxu1 %v4017_v47 }
  0xbe   :  { %3842 = vmatmul.mubr.bf16.gmra.mxu0 %v4006_v36 }
  0xbf   :  { %3843 = vmatprep.mubr.bf16.mxu0 %v4007_v37 }
  0xc6   :  { %3844 = vmatmul.mubr.bf16.gmra.mxu0 %v4007_v37 }
  0xc7   :  { %3845 = vmatprep.mubr.bf16.mxu0 %v4008_v38 }
  0xce   :  { %3846 = vmatmul.mubr.bf16.gmra.mxu0 %v4008_v38 }
  0xcf   :  { %3847 = vmatprep.mubr.bf16.mxu0 %v4009_v39 }
  0xd6   :  { %3848 = vmatmul.mubr.bf16.gmra.mxu0 %v4009_v39 }
  0xd7   :  { %3849 = vmatprep.mubr.bf16.mxu0 %v4010_v40 }
  0xde   :  { %3850 = vmatmul.mubr.bf16.gmra.mxu0 %v4010_v40 }
  0xdf   :  { %3851 = vmatprep.mubr.bf16.mxu0 %v4011_v41 }
  0xe6   :  { %3852 = vmatmul.mubr.bf16.gmra.mxu0 %v4011_v41 }
  0xe7   :  { %3853 = vmatprep.mubr.bf16.mxu0 %v4012_v42 }
  0xee   :  { %3854 = vmatmul.mubr.bf16.gmra.mxu0 %v4012_v42 }
  0xef   :  { %3855 = vmatprep.mubr.bf16.mxu0 %v4013_v43 }
  0xf6   :  { %3856 = vmatmul.mubr.bf16.gmra.mxu0 %v4013_v43 }
  0xf7   :  { %3857 = vmatprep.mubr.bf16.mxu0 %v4014_v44 }
  0xfe   :  { %3858 = vmatmul.mubr.bf16.gmra.mxu0 %v4014_v44 }
  0xff   :  { %3859 = vmatprep.mubr.bf16.mxu0 %v4015_v45 }
 0x106   :  { %3860 = vmatmul.mubr.bf16.gmra.mxu0 %v4015_v45 }
 0x107   :  { %3861 = vmatprep.mubr.bf16.mxu0 %v4016_v46 }
 0x10e   :  { %3862 = vmatmul.mubr.bf16.gmra.mxu0 %v4016_v46  ;;  %v4545_v46 = vadd.s32 80, %v4503_v49 }
 0x10f   :  { %3863 = vmatprep.mubr.bf16.mxu0 %v4017_v47 }
 0x110   :  { %vm2298_vm10 = vcmp.eq.s32.totalorder %v4545_v46, %v4505_v50 }
 0x116   :  { %3864 = vmatmul.mubr.bf16.gmra.mxu0 %v4017_v47 }
 0x11e   :  { %v563_v52 = vpop.f32.mrf.mxu0 }
 0x11f   :  { %v1027_v54 = vmul.f32 5.0, %v563_v52 }
 0x120   :  { %v565_v56 = vpop.f32.mrf.mxu0  ;;  %v3915_v57 = vpop.f32.mrf.mxu1 }
 0x121   :  { %v3609_v58 = vadd.f32 -5.0, %v1027_v54  ;;  %v1028_v59 = vmul.f32 5.0, %v565_v56  ;;  %v1035_v60 = vmul.f32 5.0, %v3915_v57  ;;  %v2412_v61 = vsel %vm2268_vm0, %v1027_v54, 0.0 }
 0x122   :  { %v836_v62 = vpop.f32.mrf.mxu1  ;;  %2558 = vadd.xlane.f32.xlu1 %v2412_v61  ;;  %v567_v63 = vpop.f32.mrf.mxu0 }
 0x123   :  { %v1315_v3 = vmul.f32 1.442695, %v3609_v58  ;;  %v3610_v4 = vadd.f32 -5.0, %v1028_v59  ;;  %v3617_v5 = vadd.f32 -5.0, %v1035_v60  ;;  %v1029_v6 = vmul.f32 5.0, %v836_v62 }
 0x124   :  { %v1030_v7 = vmul.f32 5.0, %v567_v63  ;;  %v569_v8 = vpop.f32.mrf.mxu0  ;;  %v3916_v9 = vpop.f32.mrf.mxu1 }
 0x125   :  { %4018 = vpow2.f32 %v1315_v3  ;;  %v1317_v13 = vmul.f32 1.442695, %v3610_v4  ;;  %v1331_v14 = vmul.f32 1.442695, %v3617_v5  ;;  %v3611_v15 = vadd.f32 -5.0, %v1029_v6 }
 0x126   :  { %v3612_v16 = vadd.f32 -5.0, %v1030_v7  ;;  %v1031_v17 = vmul.f32 5.0, %v569_v8  ;;  %v1038_v18 = vmul.f32 5.0, %v3916_v9  ;;  %v839_v19 = vpop.f32.mrf.mxu1  ;;  %v2415_v20 = vsel %vm2271_vm1, %v1030_v7, 0.0  ;;  %v573_v21 = vpop.f32.mrf.mxu0 }
 0x127   :  { %4020 = vpow2.f32 %v1317_v13  ;;  %v1319_v22 = vmul.f32 1.442695, %v3611_v15  ;;  %v1032_v23 = vmul.f32 5.0, %v839_v19  ;;  %2562 = vadd.xlane.f32.xlu0 %v2415_v20  ;;  %v1033_v24 = vmul.f32 5.0, %v573_v21 }
 0x128   :  { %4022 = vpow2.f32 %v1331_v14  ;;  %v1321_v25 = vmul.f32 1.442695, %v3612_v16  ;;  %v3613_v26 = vadd.f32 -5.0, %v1031_v17  ;;  %v3620_v27 = vadd.f32 -5.0, %v1038_v18  ;;  %v575_v28 = vpop.f32.mrf.mxu0  ;;  %v3919_v29 = vpop.f32.mrf.mxu1 }
 0x129   :  { %4024 = vpow2.f32 %v1319_v22  ;;  %v3614_v30 = vadd.f32 -5.0, %v1032_v23  ;;  %v3615_v31 = vadd.f32 -5.0, %v1033_v24  ;;  %v1034_v32 = vmul.f32 5.0, %v575_v28 }
 0x12a   :  { %4026 = vpow2.f32 %v1321_v25  ;;  %v1323_v33 = vmul.f32 1.442695, %v3613_v26  ;;  %v1337_v34 = vmul.f32 1.442695, %v3620_v27  ;;  %v2418_v35 = vsel %vm2274_vm2, %v1033_v24, 0.0  ;;  %v577_v36 = vpop.f32.mrf.mxu0  ;;  %v852_v37 = vpop.f32.mrf.mxu1 }
 0x12b   :  { %v1325_v38 = vmul.f32 1.442695, %v3614_v30  ;;  %v1327_v39 = vmul.f32 1.442695, %v3615_v31  ;;  %v3616_v40 = vadd.f32 -5.0, %v1034_v32  ;;  %2566 = vadd.xlane.f32.xlu0 %v2418_v35  ;;  %v1036_v41 = vmul.f32 5.0, %v577_v36 }
 0x12c   :  { %4028 = vpow2.f32 %v1323_v33  ;;  %v579_v42 = vpop.f32.mrf.mxu0  ;;  %v1047_v43 = vmul.f32 5.0, %v3919_v29  ;;  %v1041_v44 = vmul.f32 5.0, %v852_v37  ;;  %v3920_v45 = vpop.f32.mrf.mxu1 }
 0x12d   :  { %4030 = vpow2.f32 %v1337_v34  ;;  %v1329_v47 = vmul.f32 1.442695, %v3616_v40  ;;  %v3618_v48 = vadd.f32 -5.0, %v1036_v41  ;;  %v1037_v51 = vmul.f32 5.0, %v579_v42 }
 0x12e   :  { %4032 = vpow2.f32 %v1325_v38  ;;  %v2421_v52 = vsel %vm2277_vm3, %v1036_v41, 0.0  ;;  %v583_v53 = vpop.f32.mrf.mxu0  ;;  %v3629_v54 = vadd.f32 -5.0, %v1047_v43  ;;  %v3623_v56 = vadd.f32 -5.0, %v1041_v44  ;;  %v855_v57 = vpop.f32.mrf.mxu1 }
 0x12f   :  { %4034 = vpow2.f32 %v1327_v39  ;;  %v1333_v58 = vmul.f32 1.442695, %v3618_v48  ;;  %v3619_v59 = vadd.f32 -5.0, %v1037_v51  ;;  %2570 = vadd.xlane.f32.xlu0 %v2421_v52  ;;  %v1039_v60 = vmul.f32 5.0, %v583_v53 }
 0x130   :  { %4036 = vpow2.f32 %v1329_v47  ;;  %v585_v61 = vpop.f32.mrf.mxu0  ;;  %v1355_v62 = vmul.f32 1.442695, %v3629_v54  ;;  %v1343_v63 = vmul.f32 1.442695, %v3623_v56  ;;  %v1050_v3 = vmul.f32 5.0, %v3920_v45  ;;  %v3923_v4 = vpop.f32.mrf.mxu1 }
 0x131   :  { %4038 = vpow2.f32 %v1333_v58  ;;  %v1335_v5 = vmul.f32 1.442695, %v3619_v59  ;;  %v3621_v6 = vadd.f32 -5.0, %v1039_v60  ;;  %v1040_v55 = vmul.f32 5.0, %v585_v61 }
 0x132   :  { %v4019_v7 = vpop.eup %4018  ;;  %4040 = vpow2.f32 %v1355_v62  ;;  %v2424_v8 = vsel %vm2280_vm4, %v1039_v60, 0.0  ;;  %v587_v9 = vpop.f32.mrf.mxu0  ;;  %v3632_v13 = vadd.f32 -5.0, %v1050_v3  ;;  %v1044_v14 = vmul.f32 5.0, %v855_v57 }
 0x133   :  { %v868_v15 = vpop.f32.mrf.mxu1  ;;  %4042 = vpow2.f32 %v1335_v5  ;;  %v1339_v16 = vmul.f32 1.442695, %v3621_v6  ;;  %v3622_v17 = vadd.f32 -5.0, %v1040_v55  ;;  %2574 = vadd.xlane.f32.xlu0 %v2424_v8  ;;  %v1042_v18 = vmul.f32 5.0, %v587_v9 }
 0x134   :  { %v4021_v19 = vpop.eup %4020  ;;  %4044 = vpow2.f32 %v1343_v63  ;;  %v589_v20 = vpop.f32.mrf.mxu0  ;;  %v1361_v21 = vmul.f32 1.442695, %v3632_v13  ;;  %v3626_v22 = vadd.f32 -5.0, %v1044_v14  ;;  %v1059_v23 = vmul.f32 5.0, %v3923_v4 }
 0x135   :  { %v3924_v24 = vpop.f32.mrf.mxu1  ;;  %v4553_v25 = vpop.eup %4022  ;;  %4046 = vpow2.f32 %v1339_v16  ;;  %v1341_v0 = vmul.f32 1.442695, %v3622_v17  ;;  %v3624_v26 = vadd.f32 -5.0, %v1042_v18  ;;  %v1043_v27 = vmul.f32 5.0, %v589_v20 }
 0x136   :  { %v4025_v28 = vpop.eup %4024  ;;  %4048 = vpow2.f32 %v1361_v21  ;;  %v1349_v29 = vmul.f32 1.442695, %v3626_v22  ;;  %v2427_v30 = vsel %vm2283_vm5, %v1042_v18, 0.0  ;;  %v593_v31 = vpop.f32.mrf.mxu0  ;;  %v3641_v32 = vadd.f32 -5.0, %v1059_v23 }
 0x137   :  { %v871_v33 = vpop.f32.mrf.mxu1  ;;  %v4560_v34 = vpop.eup %4026  ;;  %4050 = vpow2.f32 %v1341_v0  ;;  %v1345_v35 = vmul.f32 1.442695, %v3624_v26  ;;  %v3625_v36 = vadd.f32 -5.0, %v1043_v27  ;;  %2578 = vadd.xlane.f32.xlu0 %v2427_v30  ;;  %v1045_v37 = vmul.f32 5.0, %v593_v31 }
 0x138   :  { %v1940_v38 = vadd.f32 %v4560_v34, %v4019_v7  ;;  %4052 = vpow2.f32 %v1349_v29  ;;  %v595_v39 = vpop.f32.mrf.mxu0  ;;  %v1379_v40 = vmul.f32 1.442695, %v3641_v32  ;;  %v1053_v41 = vmul.f32 5.0, %v868_v15 }
 0x139   :  { %v4563_v42 = vpop.f32.mrf.mxu1  ;;  %v4565_v1 = vpop.eup %4028  ;;  %4054 = vpow2.f32 %v1345_v35  ;;  %v1347_v43 = vmul.f32 1.442695, %v3625_v36  ;;  %v3627_v44 = vadd.f32 -5.0, %v1045_v37  ;;  %v1046_v45 = vmul.f32 5.0, %v595_v39 }
 0x13a   :  { %v4567_v47 = vpop.eup %4030  ;;  %v1993_v48 = vadd.f32 %v4565_v1, %v4021_v19  ;;  %4056 = vpow2.f32 %v1379_v40  ;;  %v3635_v51 = vadd.f32 -5.0, %v1053_v41  ;;  %v1651_v52 = vadd.f32 %v4021_v19, %v4019_v7  ;;  %v597_v53 = vpop.f32.mrf.mxu0 }
 0x13b   :  { %v4570_v54 = vpop.f32.mrf.mxu1  ;;  %v4572_v56 = vpop.eup %4032  ;;  %4058 = vpow2.f32 %v1347_v43  ;;  %v1351_v57 = vmul.f32 1.442695, %v3627_v44  ;;  %v3628_v58 = vadd.f32 -5.0, %v1046_v45  ;;  %v4574_v59 = vmul.f32 5.0, %v597_v53 }
 0x13c   :  { %v4035_v60 = vpop.eup %4034  ;;  %v2046_v61 = vadd.f32 %v4572_v56, %v4025_v28  ;;  %v1367_v62 = vmul.f32 1.442695, %v3635_v51  ;;  %v1652_v63 = vadd.f32 %v4025_v28, %v1651_v52  ;;  %v599_v3 = vpop.f32.mrf.mxu0  ;;  %v1062_v4 = vmul.f32 5.0, %v3924_v24 }
 0x13d   :  { %v4577_v5 = vpop.f32.mrf.mxu1  ;;  %v4037_v6 = vpop.eup %4036  ;;  %v1941_v55 = vadd.f32 %v4035_v60, %v1940_v38  ;;  %4060 = vpow2.f32 %v1351_v57  ;;  %v1353_v7 = vmul.f32 1.442695, %v3628_v58  ;;  %v3630_v8 = vadd.f32 -5.0, %v4574_v59 }
 0x13e   :  { %v4580_v9 = vpop.eup %4038  ;;  %v2047_v13 = vadd.f32 %v4553_v25, %v2046_v61  ;;  %v1994_v14 = vadd.f32 %v4037_v6, %v1993_v48  ;;  %4062 = vpow2.f32 %v1367_v62  ;;  %1653 = vadd.xlane.f32.xlu0 %v1652_v63  ;;  %v1049_v15 = vmul.f32 5.0, %v599_v3  ;;  %v603_v16 = vpop.f32.mrf.mxu0 }
 0x13f   :  { %v4583_v17 = vpop.f32.mrf.mxu1  ;;  %v4585_v18 = vpop.eup %4040  ;;  %v1942_v19 = vadd.f32 %v4580_v9, %v1941_v55  ;;  %4064 = vpow2.f32 %v1353_v7  ;;  %v1357_v20 = vmul.f32 1.442695, %v3630_v8  ;;  %v3644_v21 = vadd.f32 -5.0, %v1062_v4 }
 0x140   :  { %v4588_v22 = vpop.eup %4042  ;;  %v2048_v23 = vadd.f32 %v4567_v47, %v2047_v13  ;;  %v3631_v24 = vadd.f32 -5.0, %v1049_v15  ;;  %v1056_v0 = vmul.f32 5.0, %v871_v33  ;;  %v2430_v26 = vsel %vm2286_vm6, %v1045_v37, 0.0  ;;  %v605_v27 = vpop.f32.mrf.mxu0 }
 0x141   :  { %v4594_v28 = vpop.f32.mrf.mxu1  ;;  %v4596_v29 = vpop.eup %4044  ;;  %v1995_v30 = vadd.f32 %v4588_v22, %v1994_v14  ;;  %4066 = vpow2.f32 %v1357_v20  ;;  %v1385_v31 = vmul.f32 1.442695, %v3644_v21  ;;  %v4599_v32 = vmul.f32 5.0, %v603_v16 }
 0x142   :  { %v4601_v35 = vpop.eup %4046  ;;  %v2049_v36 = vadd.f32 %v4596_v29, %v2048_v23  ;;  %v1359_v33 = vmul.f32 1.442695, %v3631_v24  ;;  %v3638_v38 = vadd.f32 -5.0, %v1056_v0  ;;  %2582 = vadd.xlane.f32.xlu0 %v2430_v26  ;;  %v1052_v2 = vmul.f32 5.0, %v605_v27  ;;  %v607_v37 = vpop.f32.mrf.mxu0 }
 0x143   :  { %v4606_v39 = vpop.f32.mrf.mxu1  ;;  %v4608_v40 = vpop.eup %4048  ;;  %v1943_v41 = vadd.f32 %v4601_v35, %v1942_v19  ;;  %4068 = vpow2.f32 %v1385_v31  ;;  %v3633_v43 = vadd.f32 -5.0, %v4599_v32  ;;  %v1071_v44 = vmul.f32 5.0, %v4563_v42 }
 0x144   :  { %v4613_v45 = vpop.eup %4050  ;;  %4070 = vpow2.f32 %v1359_v33  ;;  %v1373_v48 = vmul.f32 1.442695, %v3638_v38  ;;  %v3634_v51 = vadd.f32 -5.0, %v1052_v2  ;;  %v1659_v52 = vadd.f32 %v4037_v6, %v4035_v60  ;;  %v609_v53 = vpop.f32.mrf.mxu0 }
 0x145   :  { %v4615_v57 = vpop.f32.mrf.mxu1  ;;  %v4617_v58 = vpop.eup %4052  ;;  %v1996_v61 = vadd.f32 %v4613_v45, %v1995_v30  ;;  %v1363_v62 = vmul.f32 1.442695, %v3633_v43  ;;  %v3653_v63 = vadd.f32 -5.0, %v1071_v44  ;;  %v1065_v3 = vmul.f32 5.0, %v4570_v54 }
 0x146   :  { %v4621_v4 = vpop.eup %4054  ;;  %v2050_v42 = vadd.f32 %v4617_v58, %v2049_v36  ;;  %4072 = vpow2.f32 %v1373_v48  ;;  %v1365_v55 = vmul.f32 1.442695, %v3634_v51  ;;  %v1660_v7 = vadd.f32 %v4553_v25, %v1659_v52  ;;  %v613_v60 = vpop.f32.mrf.mxu0 }
 0x147   :  { %v4625_v6 = vpop.f32.mrf.mxu1  ;;  %v4627_v8 = vpop.eup %4056  ;;  %v1944_v13 = vadd.f32 %v4621_v4, %v1943_v41  ;;  %4074 = vpow2.f32 %v1363_v62  ;;  %v3647_v14 = vadd.f32 -5.0, %v1065_v3  ;;  %v4631_v15 = vadd.s32 88, %v4503_v49 }
 0x148   :  { %v4633_v54 = vpop.eup %4058  ;;  %v2051_v16 = vadd.f32 %v4585_v18, %v2050_v42  ;;  %4076 = vpow2.f32 %v1365_v55  ;;  %1661 = vadd.xlane.f32.xlu1 %v1660_v7  ;;  %v1655_v25 = vadd.f32 %v4565_v1, %v4560_v34  ;;  %v4638_v19 = vmul.f32 5.0, %v607_v37  ;;  %v615_v20 = vpop.f32.mrf.mxu0 }
 0x149   :  { %v4642_v21 = vpop.f32.mrf.mxu1  ;;  %v1997_v23 = vadd.f32 %v4633_v54, %v1996_v61  ;;  %v1403_v24 = vmul.f32 1.442695, %v3653_v63  ;;  %v1391_v0 = vmul.f32 1.442695, %v3647_v14  ;;  %v1055_v26 = vmul.f32 5.0, %v609_v53 }
 0x14a   :  { %v4645_v27 = vpop.eup %4060  ;;  %v2052_v30 = vadd.f32 %v4608_v40, %v2051_v16  ;;  %v1656_v31 = vadd.f32 %v4572_v56, %v1655_v25  ;;  %v3636_v34 = vadd.f32 -5.0, %v4638_v19  ;;  %v1074_v1 = vmul.f32 5.0, %v4577_v5  ;;  %v617_v36 = vpop.f32.mrf.mxu0 }
 0x14b   :  { %v4651_v33 = vpop.f32.mrf.mxu1  ;;  %v4653_v38 = vpop.eup %4062  ;;  %v1945_v2 = vadd.f32 %v4645_v27, %v1944_v13  ;;  %4078 = vpow2.f32 %v1391_v0  ;;  %v3637_v37 = vadd.f32 -5.0, %v1055_v26  ;;  %v1663_v41 = vadd.f32 %v4588_v22, %v4580_v9 }
 0x14c   :  { %v4658_v43 = vpop.eup %4064  ;;  %v2053_v56 = vadd.f32 %v4653_v38, %v2052_v30  ;;  %1657 = vadd.xlane.f32.xlu0 %v1656_v31  ;;  %v1369_v44 = vmul.f32 1.442695, %v3636_v34  ;;  %v3656_v48 = vadd.f32 -5.0, %v1074_v1  ;;  %v1068_v5 = vmul.f32 5.0, %v4583_v17  ;;  %v619_v51 = vpop.f32.mrf.mxu0 }
 0x14d   :  { %v1998_v52 = vadd.f32 %v4658_v43, %v1997_v23  ;;  %v1371_v53 = vmul.f32 1.442695, %v3637_v37  ;;  %v1664_v61 = vadd.f32 %v4567_v47, %v1663_v41  ;;  %v2433_v9 = vsel %vm2289_vm7, %v4574_v59, 0.0  ;;  %v4670_v22 = vpop.f32.mrf.mxu1 }
 0x14e   :  { %v4672_v62 = vpop.eup %4066  ;;  %4080 = vpow2.f32 %v1369_v44  ;;  %v1409_v17 = vmul.f32 1.442695, %v3656_v48  ;;  %v3650_v63 = vadd.f32 -5.0, %v1068_v5  ;;  %v4674_v3 = vmul.f32 5.0, %v613_v60  ;;  %v623_v42 = vpop.f32.mrf.mxu0 }
 0x14f   :  { %v1946_v47 = vadd.f32 %v4672_v62, %v1945_v2  ;;  %4082 = vpow2.f32 %v1371_v53  ;;  %1665 = vadd.xlane.f32.xlu1 %v1664_v61  ;;  %v1058_v55 = vmul.f32 5.0, %v615_v20  ;;  %v1083_v10 = vmul.f32 5.0, %v4594_v28  ;;  %v4686_v20 = vpop.f32.mrf.mxu1 }
 0x150   :  { %v4678_v59 = vpop.eup %4068  ;;  %4084 = vpow2.f32 %v1403_v24  ;;  %v1397_v7 = vmul.f32 1.442695, %v3650_v63  ;;  %2586 = vadd.xlane.f32.xlu0 %v2433_v9  ;;  %v3639_v13 = vadd.f32 -5.0, %v4674_v3  ;;  %v1077_v14 = vmul.f32 5.0, %v4606_v39  ;;  %v625_v16 = vpop.f32.mrf.mxu0 }
 0x151   :  { %v4682_v60 = vpop.eup %4070  ;;  %4086 = vpow2.f32 %v1409_v17  ;;  %v3640_v25 = vadd.f32 -5.0, %v1058_v55  ;;  %v3665_v23 = vadd.f32 -5.0, %v1083_v10  ;;  %v4684_v0 = vmul.f32 5.0, %v617_v36  ;;  %v4703_v53 = vpop.f32.mrf.mxu1 }
 0x152   :  { %v1999_v28 = vadd.f32 %v4682_v60, %v1998_v52  ;;  %4088 = vpow2.f32 %v1397_v7  ;;  %v1375_v24 = vmul.f32 1.442695, %v3639_v13  ;;  %v3659_v26 = vadd.f32 -5.0, %v1077_v14  ;;  %v627_v30 = vpop.f32.mrf.mxu0 }
 0x153   :  { %v4689_v31 = vpop.eup %4072  ;;  %v1377_v34 = vmul.f32 1.442695, %v3640_v25  ;;  %v2436_v39 = vsel %vm2292_vm8, %v4599_v32, 0.0  ;;  %v3642_v1 = vadd.f32 -5.0, %v4684_v0  ;;  %v1061_v36 = vmul.f32 5.0, %v619_v51 }
 0x154   :  { %v4696_v2 = vpop.eup %4074  ;;  %v2054_v37 = vadd.f32 %v4689_v31, %v2053_v56  ;;  %4090 = vpow2.f32 %v1375_v24  ;;  %v1415_v41 = vmul.f32 1.442695, %v3659_v26  ;;  %2590 = vadd.xlane.f32.xlu0 %v2436_v39  ;;  %v1086_v44 = vmul.f32 5.0, %v4615_v57  ;;  %v629_v48 = vpop.f32.mrf.mxu0 }
 0x155   :  { %v4700_v5 = vpop.eup %4076  ;;  %v1947_v52 = vadd.f32 %v4696_v2, %v1946_v47  ;;  %4092 = vpow2.f32 %v1377_v34  ;;  %v1381_v11 = vmul.f32 1.442695, %v3642_v1  ;;  %v3643_v32 = vadd.f32 -5.0, %v1061_v36 }
 0x156   :  { %v2055_v51 = vadd.f32 %v4627_v8, %v2054_v37  ;;  %v2000_v61 = vadd.f32 %v4700_v5, %v1999_v28  ;;  %v1427_v56 = vmul.f32 1.442695, %v3665_v23  ;;  %v3668_v9 = vadd.f32 -5.0, %v1086_v44  ;;  %v4707_v17 = vpop.f32.mrf.mxu0 }
 0x157   :  { %4094 = vpow2.f32 %v1415_v41  ;;  %v1383_v57 = vmul.f32 1.442695, %v3643_v32  ;;  %v1671_v63 = vadd.f32 %v4633_v54, %v4621_v4  ;;  %v1080_v47 = vmul.f32 5.0, %v4625_v6  ;;  %v4726_v6 = vpop.f32.mrf.mxu1 }
 0x158   :  { %v4712_v55 = vpop.eup %4078  ;;  %v2056_v10 = vadd.f32 %v4678_v59, %v2055_v51  ;;  %4096 = vpow2.f32 %v1381_v11  ;;  %v1433_v7 = vmul.f32 1.442695, %v3668_v9  ;;  %v2439_v13 = vsel %vm2295_vm9, %v4638_v19, 0.0  ;;  %v4719_v14 = vpop.f32.mrf.mxu0 }
 0x159   :  { %4098 = vpow2.f32 %v1383_v57  ;;  %v1672_v25 = vadd.f32 %v4617_v58, %v1671_v63  ;;  %v3662_v23 = vadd.f32 -5.0, %v1080_v47  ;;  %2594 = vadd.xlane.f32.xlu0 %v2439_v13  ;;  %v4722_v4 = vmul.f32 5.0, %v623_v42  ;;  %v4748_v11 = vpop.f32.mrf.mxu1 }
 0x15a   :  { %v2057_v54 = vadd.f32 %v4712_v55, %v2056_v10  ;;  %4100 = vpow2.f32 %v1427_v56  ;;  %v1064_v28 = vmul.f32 5.0, %v625_v16  ;;  %v1095_v12 = vmul.f32 5.0, %v4642_v21  ;;  %v4730_v19 = vpop.f32.mrf.mxu0 }
 0x15b   :  { %v4732_v24 = vpop.eup %4080  ;;  %1673 = vadd.xlane.f32.xlu1 %v1672_v25  ;;  %v1421_v58 = vmul.f32 1.442695, %v3662_v23  ;;  %v3645_v42 = vadd.f32 -5.0, %v4722_v4  ;;  %v1089_v26 = vmul.f32 5.0, %v4651_v33  ;;  %v1667_v34 = vadd.f32 %v4613_v45, %v4601_v35 }
 0x15c   :  { %v4738_v39 = vpop.eup %4082  ;;  %v1948_v1 = vadd.f32 %v4732_v24, %v1947_v52  ;;  %4102 = vpow2.f32 %v1433_v7  ;;  %v3646_v16 = vadd.f32 -5.0, %v1064_v28  ;;  %v4741_v21 = vmul.f32 5.0, %v627_v30  ;;  %v4743_v36 = vpop.f32.mrf.mxu0 }
 0x15d   :  { %v4745_v37 = vpop.eup %4084  ;;  %v2001_v41 = vadd.f32 %v4738_v39, %v2000_v61  ;;  %4104 = vpow2.f32 %v1421_v58  ;;  %v1387_v44 = vmul.f32 1.442695, %v3645_v42  ;;  %v3671_v33 = vadd.f32 -5.0, %v1089_v26 }
 0x15e   :  { %v4750_v35 = vpop.eup %4086  ;;  %v1389_v45 = vmul.f32 1.442695, %v3646_v16  ;;  %v3677_v32 = vadd.f32 -5.0, %v1095_v12  ;;  %v1668_v52 = vadd.f32 %v4596_v29, %v1667_v34  ;;  %v3648_v30 = vadd.f32 -5.0, %v4741_v21  ;;  %v4754_v51 = vpop.f32.mrf.mxu0 }
 0x15f   :  { %v4756_v56 = vpop.eup %4088  ;;  %4106 = vpow2.f32 %v1387_v44  ;;  %v1439_v9 = vmul.f32 1.442695, %v3671_v33  ;;  %v1067_v61 = vmul.f32 5.0, %v629_v48  ;;  %v1098_v57 = vmul.f32 5.0, %v4670_v22  ;;  %v935_v22 = vpop.f32.mrf.mxu1 }
 0x160   :  { %v2058_v63 = vadd.f32 %v4756_v56, %v2057_v54  ;;  %4108 = vpow2.f32 %v1389_v45  ;;  %1669 = vadd.xlane.f32.xlu0 %v1668_v52  ;;  %v1393_v47 = vmul.f32 1.442695, %v3648_v30  ;;  %v1679_v10 = vadd.f32 %v4682_v60, %v4672_v62  ;;  %v4762_v29 = vpop.f32.mrf.mxu0 }
 0x161   :  { %v4764_v7 = vpop.eup %4090  ;;  %v3649_v13 = vadd.f32 -5.0, %v1067_v61  ;;  %v3680_v25 = vadd.f32 -5.0, %v1098_v57  ;;  %v1092_v23 = vmul.f32 5.0, %v4686_v20  ;;  %vm2301_vm11 = vcmp.eq.s32.totalorder %v4631_v15, %v4505_v50 }
 0x162   :  { %v4769_v48 = vpop.eup %4092  ;;  %v2059_v54 = vadd.f32 %v4745_v37, %v2058_v63  ;;  %v1949_v28 = vadd.f32 %v4764_v7, %v1948_v1  ;;  %4110 = vpow2.f32 %v1439_v9  ;;  %v1680_v62 = vadd.f32 %v4608_v40, %v1679_v10  ;;  %v4774_v60 = vpop.f32.mrf.mxu0 }
 0x163   :  { %v2002_v12 = vadd.f32 %v4769_v48, %v2001_v41  ;;  %v1451_v58 = vmul.f32 1.442695, %v3677_v32  ;;  %4112 = vpow2.f32 %v1393_v47  ;;  %v1395_v20 = vmul.f32 1.442695, %v3649_v13  ;;  %v4793_v32 = vpop.f32.mrf.mxu1 }
 0x164   :  { %v4777_v42 = vpop.eup %4094  ;;  %v2060_v26 = vadd.f32 %v4750_v35, %v2059_v54  ;;  %1681 = vadd.xlane.f32.xlu1 %v1680_v62  ;;  %v3674_v34 = vadd.f32 -5.0, %v1092_v23  ;;  %v2442_v1 = vsel %vm2298_vm10, %v4674_v3, 0.0  ;;  %v4785_v40 = vmul.f32 5.0, %v4707_v17  ;;  %v4787_v16 = vpop.f32.mrf.mxu0 }
 0x165   :  { %v4789_v41 = vpop.eup %4096  ;;  %4114 = vpow2.f32 %v1395_v20  ;;  %v1457_v44 = vmul.f32 1.442695, %v3680_v25  ;;  %2598 = vadd.xlane.f32.xlu0 %v2442_v1  ;;  %v1070_v33 = vmul.f32 5.0, %v4719_v14  ;;  %v1101_v45 = vmul.f32 5.0, %v4726_v6 }
 0x166   :  { %v4795_v52 = vpop.eup %4098  ;;  %v2061_v46 = vadd.f32 %v4777_v42, %v2060_v26  ;;  %v1950_v3 = vadd.f32 %v4789_v41, %v1949_v28  ;;  %v1445_v17 = vmul.f32 1.442695, %v3674_v34  ;;  %v1107_v30 = vmul.f32 5.0, %v4703_v53  ;;  %v4800_v9 = vpop.f32.mrf.mxu0 }
 0x167   :  { %v4802_v61 = vpop.eup %4100  ;;  %v2003_v57 = vadd.f32 %v4795_v52, %v2002_v12  ;;  %4116 = vpow2.f32 %v1451_v58  ;;  %v3651_v14 = vadd.f32 -5.0, %v4785_v40  ;;  %v3652_v6 = vadd.f32 -5.0, %v1070_v33  ;;  %v948_v28 = vpop.f32.mrf.mxu1 }
 0x168   :  { %4118 = vpow2.f32 %v1445_v17  ;;  %v3683_v63 = vadd.f32 -5.0, %v1101_v45  ;;  %v2445_v47 = vsel %vm2301_vm11, %v4684_v0, 0.0  ;;  %v4811_v10 = vmul.f32 5.0, %v4730_v19  ;;  %v4813_v53 = vpop.f32.mrf.mxu0 }
 0x169   :  { %v4815_v13 = vpop.eup %4102  ;;  %4120 = vpow2.f32 %v1457_v44  ;;  %v1399_v25 = vmul.f32 1.442695, %v3651_v14  ;;  %v1401_v23 = vmul.f32 1.442695, %v3652_v6  ;;  %2602 = vadd.xlane.f32.xlu0 %v2445_v47  ;;  %v1687_v54 = vadd.f32 %v4738_v39, %v4732_v24 }
 0x16a   :  { %v4819_v62 = vpop.eup %4104  ;;  %v3689_v12 = vadd.f32 -5.0, %v1107_v30  ;;  %v1463_v15 = vmul.f32 1.442695, %v3683_v63  ;;  %v3654_v0 = vadd.f32 -5.0, %v4811_v10  ;;  %v1073_v19 = vmul.f32 5.0, %v4743_v36  ;;  %v4823_v58 = vpop.f32.mrf.mxu0 }
 0x16b   :  { %v2062_v20 = vadd.f32 %v4819_v62, %v2061_v46  ;;  %4122 = vpow2.f32 %v1399_v25  ;;  %v1688_v26 = vadd.f32 %v4689_v31, %v1687_v54  ;;  %v1104_v34 = vmul.f32 5.0, %v935_v22  ;;  %v4837_v22 = vpop.f32.mrf.mxu1 }
 0x16c   :  { %v4827_v1 = vpop.eup %4106  ;;  %4124 = vpow2.f32 %v1401_v23  ;;  %v1405_v24 = vmul.f32 1.442695, %v3654_v0  ;;  %v3655_v39 = vadd.f32 -5.0, %v1073_v19  ;;  %v1110_v44 = vmul.f32 5.0, %v4748_v11  ;;  %v4830_v33 = vpop.f32.mrf.mxu0 }
 0x16d   :  { %v4832_v45 = vpop.eup %4108  ;;  %v2063_v36 = vadd.f32 %v4802_v61, %v2062_v20  ;;  %v1951_v17 = vadd.f32 %v4827_v1, %v1950_v3  ;;  %1689 = vadd.xlane.f32.xlu1 %v1688_v26  ;;  %v3686_v46 = vadd.f32 -5.0, %v1104_v34  ;;  %v2127_v31 = vadd.s32 96, %v4503_v49 }
 0x16e   :  { %v2004_v30 = vadd.f32 %v4832_v45, %v2003_v57  ;;  %v1475_v14 = vmul.f32 1.442695, %v3689_v12  ;;  %4126 = vpow2.f32 %v1463_v15  ;;  %v1407_v6 = vmul.f32 1.442695, %v3655_v39  ;;  %v4840_v11 = vpop.f32.mrf.mxu0 }
 0x16f   :  { %v4842_v63 = vpop.eup %4110  ;;  %v2064_v47 = vadd.f32 %v4815_v13, %v2063_v36  ;;  %4128 = vpow2.f32 %v1405_v24  ;;  %v1469_v25 = vmul.f32 1.442695, %v3686_v46  ;;  %v1675_v3 = vadd.f32 %v4658_v43, %v4645_v27  ;;  %v951_v27 = vpop.f32.mrf.mxu1 }
 0x170   :  { %v4847_v23 = vpop.eup %4112  ;;  %4130 = vpow2.f32 %v1407_v6  ;;  %v3692_v54 = vadd.f32 -5.0, %v1110_v44  ;;  %v1075_v57 = vmul.f32 5.0, %v4754_v51  ;;  %v4851_v12 = vmul.f32 5.0, %v4762_v29  ;;  %v4853_v15 = vpop.f32.mrf.mxu0 }
 0x171   :  { %v2065_v0 = vadd.f32 %v4842_v63, %v2064_v47  ;;  %v1952_v19 = vadd.f32 %v4847_v23, %v1951_v17  ;;  %v1676_v20 = vadd.f32 %v4585_v18, %v1675_v3  ;;  %vm2304_vm12 = vcmp.eq.s32.totalorder %v2127_v31, %v4505_v50 }
 0x172   :  { %v4859_v43 = vpop.eup %4114  ;;  %4132 = vpow2.f32 %v1475_v14  ;;  %v3657_v26 = vadd.f32 -5.0, %v1075_v57  ;;  %v3658_v51 = vadd.f32 -5.0, %v4851_v12  ;;  %v2128_v29 = vadd.s32 104, %v4503_v49  ;;  %v4863_v34 = vpop.f32.mrf.mxu0 }
 0x173   :  { %v2005_v24 = vadd.f32 %v4859_v43, %v2004_v30  ;;  %4134 = vpow2.f32 %v1469_v25  ;;  %1677 = vadd.xlane.f32.xlu0 %v1676_v20  ;;  %v1113_v39 = vmul.f32 5.0, %v948_v28  ;;  %v1078_v18 = vmul.f32 5.0, %v4774_v60  ;;  %v4881_v25 = vpop.f32.mrf.mxu1 }
 0x174   :  { %v4867_v44 = vpop.eup %4116  ;;  %v1481_v36 = vmul.f32 1.442695, %v3692_v54  ;;  %v1411_v17 = vmul.f32 1.442695, %v3657_v26  ;;  %v1413_v46 = vmul.f32 1.442695, %v3658_v51  ;;  %v1695_v14 = vadd.f32 %v4795_v52, %v4789_v41  ;;  %v4871_v6 = vpop.f32.mrf.mxu0 }
 0x175   :  { %6118 = vst [vmem:[#allocation17_spill] sm:$0xff] %v4867_v44  ;;  %v4873_v47 = vpop.eup %4118  ;;  %v3695_v3 = vadd.f32 -5.0, %v1113_v39  ;;  %v2448_v30 = vsel %vm2304_vm12, %v4722_v4, 0.0  ;;  %v3660_v28 = vadd.f32 -5.0, %v1078_v18  ;;  %v4879_v60 = vmul.f32 5.0, %v4787_v16 }
 0x176   :  { %6119 = vst [vmem:[#allocation18_spill] sm:$0xff] %v4873_v47  ;;  %v4883_v54 = vpop.eup %4120  ;;  %v2066_v57 = vadd.f32 %v4873_v47, %v2065_v0  ;;  %4136 = vpow2.f32 %v1411_v17  ;;  %v1696_v41 = vadd.f32 %v4678_v59, %v1695_v14  ;;  %v1116_v52 = vmul.f32 5.0, %v951_v27  ;;  %v4887_v20 = vpop.f32.mrf.mxu0 }
 0x177   :  { %6120 = vst [vmem:[#allocation19_spill] sm:$0xff] %v4883_v54  ;;  %4138 = vpow2.f32 %v1413_v46  ;;  %2606 = vadd.xlane.f32.xlu0 %v2448_v30  ;;  %v1417_v31 = vmul.f32 1.442695, %v3660_v28  ;;  %v3661_v4 = vadd.f32 -5.0, %v4879_v60  ;;  %vm2307_vm13 = vcmp.eq.s32.totalorder %v2128_v29, %v4505_v50  ;;  %v964_v46 = vpop.f32.mrf.mxu1 }
 0x178   :  { %v4891_v16 = vpop.eup %4122  ;;  %v2067_v26 = vadd.f32 %v4867_v44, %v2066_v57  ;;  %4140 = vpow2.f32 %v1481_v36  ;;  %v1119_v0 = vmul.f32 5.0, %v4793_v32  ;;  %1697 = vadd.xlane.f32.xlu1 %v1696_v41  ;;  %v4895_v51 = vpop.f32.mrf.mxu0  ;;  %v1487_v39 = vmul.f32 1.442695, %v3695_v3 }
 0x179   :  { %v4897_v59 = vpop.eup %4124  ;;  %v1953_v27 = vadd.f32 %v4891_v16, %v1952_v19  ;;  %v1419_v18 = vmul.f32 1.442695, %v3661_v4  ;;  %v3698_v17 = vadd.f32 -5.0, %v1116_v52  ;;  %4142 = vpow2.f32 %v1417_v31 }
 0x17a   :  { %v2006_v14 = vadd.f32 %v4897_v59, %v2005_v24  ;;  %v2068_v30 = vadd.f32 %v4883_v54, %v2067_v26  ;;  %v2451_v32 = vsel %vm2307_vm13, %v4741_v21, 0.0  ;;  %v4905_v36 = vpop.f32.mrf.mxu0  ;;  %v1081_v19 = vmul.f32 5.0, %v4800_v9  ;;  %v3948_v26 = vpop.f32.mrf.mxu1 }
 0x17b   :  { %v4907_v28 = vpop.eup %4126  ;;  %4144 = vpow2.f32 %v1419_v18  ;;  %2610 = vadd.xlane.f32.xlu0 %v2451_v32  ;;  %v4911_v3 = vmul.f32 5.0, %v4813_v53  ;;  %v3701_v24 = vadd.f32 -5.0, %v1119_v0  ;;  %v1122_v41 = vmul.f32 5.0, %v4837_v22 }
 0x17c   :  { %6121 = vst [vmem:[#allocation20_spill] sm:$0xff] %v4907_v28  ;;  %v4913_v57 = vpop.eup %4128  ;;  %v4916_v52 = vpop.f32.mrf.mxu0  ;;  %4146 = vpow2.f32 %v1487_v39  ;;  %v3663_v31 = vadd.f32 -5.0, %v1081_v19  ;;  %v2069_v9 = vadd.f32 %v4907_v28, %v2068_v30  ;;  %v1493_v18 = vmul.f32 1.442695, %v3698_v17 }
 0x17d   :  { %v4918_v29 = vpop.eup %4130  ;;  %v1954_v21 = vadd.f32 %v4913_v57, %v1953_v27  ;;  %v3664_v4 = vadd.f32 -5.0, %v4911_v3  ;;  %v1683_v0 = vadd.f32 %v4700_v5, %v4696_v2  ;;  %v1084_v27 = vmul.f32 5.0, %v4823_v58  ;;  %v967_v28 = vpop.f32.mrf.mxu1 }
 0x17e   :  { %v2007_v53 = vadd.f32 %v4918_v29, %v2006_v14  ;;  %v4926_v22 = vpop.f32.mrf.mxu0  ;;  %v1423_v54 = vmul.f32 1.442695, %v3663_v31  ;;  %v4932_v39 = vmul.f32 5.0, %v4830_v33  ;;  %v1499_v17 = vmul.f32 1.442695, %v3701_v24 }
 0x17f   :  { %v4928_v32 = vpop.eup %4132  ;;  %v1425_v44 = vmul.f32 1.442695, %v3664_v4  ;;  %v1684_v30 = vadd.f32 %v4653_v38, %v1683_v0  ;;  %v3666_v2 = vadd.f32 -5.0, %v1084_v27  ;;  %v3704_v47 = vadd.f32 -5.0, %v1122_v41 }
 0x180   :  { %6122 = vst [vmem:[#allocation21_spill] sm:$0xff] %v4928_v32  ;;  %v4934_v19 = vpop.eup %4134  ;;  %v4937_v14 = vpop.f32.mrf.mxu0  ;;  %4148 = vpow2.f32 %v1423_v54  ;;  %v3667_v5 = vadd.f32 -5.0, %v4932_v39  ;;  %v4940_v31 = vmul.f32 5.0, %v964_v46  ;;  %v1703_v58 = vadd.f32 %v4859_v43, %v4847_v23 }
 0x181   :  { %4150 = vpow2.f32 %v1425_v44  ;;  %1685 = vadd.xlane.f32.xlu0 %v1684_v30  ;;  %v2070_v38 = vadd.f32 %v4934_v19, %v2069_v9  ;;  %v1429_v54 = vmul.f32 1.442695, %v3666_v2  ;;  %v3951_v43 = vpop.f32.mrf.mxu1  ;;  %v4958_v9 = vmul.f32 5.0, %v967_v28 }
 0x182   :  { %6123 = vst [vmem:[#allocation22_spill] sm:$0xff] %v4940_v31  ;;  %v4944_v33 = vpop.f32.mrf.mxu0  ;;  %4152 = vpow2.f32 %v1493_v18  ;;  %v1431_v24 = vmul.f32 1.442695, %v3667_v5  ;;  %v1704_v44 = vadd.f32 %v4756_v56, %v1703_v58  ;;  %v1691_v18 = vadd.f32 %v4769_v48, %v4764_v7 }
 0x183   :  { %v4946_v4 = vpop.eup %4136  ;;  %4154 = vpow2.f32 %v1429_v54  ;;  %6125 = vst [vmem:[#allocation24_spill] sm:$0xff] %v4958_v9  ;;  %v2129_v30 = vadd.s32 112, %v4503_v49  ;;  %v2071_v2 = vadd.f32 %v4928_v32, %v2070_v38  ;;  %v1505_v5 = vmul.f32 1.442695, %v3704_v47 }
 0x184   :  { %v4949_v0 = vpop.eup %4138  ;;  %v1955_v41 = vadd.f32 %v4946_v4, %v1954_v21  ;;  %v4953_v46 = vpop.f32.mrf.mxu0  ;;  %4156 = vpow2.f32 %v1431_v24  ;;  %1705 = vadd.xlane.f32.xlu1 %v1704_v44  ;;  %v1692_v54 = vadd.f32 %v4627_v8, %v1691_v18  ;;  %v4977_v48 = vmul.f32 5.0, %v4881_v25 }
 0x185   :  { %v4955_v27 = vpop.eup %4140  ;;  %v2008_v23 = vadd.f32 %v4949_v0, %v2007_v53  ;;  %4158 = vpow2.f32 %v1499_v17  ;;  %v3707_v53 = vadd.f32 -5.0, %v4940_v31  ;;  %v4979_v44 = vmul.f32 5.0, %v3948_v26  ;;  %v980_v17 = vpop.f32.mrf.mxu1 }
 0x186   :  { %6124 = vst [vmem:[#allocation23_spill] sm:$0xff] %v4955_v27  ;;  %v4963_v21 = vpop.f32.mrf.mxu0  ;;  %v4965_v56 = vpop.eup %4142  ;;  %6126 = vst [vmem:[#allocation25_spill] sm:$0xff] %v4977_v48  ;;  %v1707_v47 = vadd.f32 %v4897_v59, %v4891_v16  ;;  %v3710_v31 = vadd.f32 -5.0, %v4958_v9  ;;  %1693 = vadd.xlane.f32.xlu0 %v1692_v54  ;;  %v1087_v8 = vmul.f32 5.0, %v4840_v11  ;;  %vm2310_vm14 = vcmp.eq.s32.totalorder %v2129_v30, %v4505_v50 }
 0x187   :  { %v1956_v28 = vadd.f32 %v4965_v56, %v1955_v41  ;;  %6127 = vst [vmem:[#allocation26_spill] sm:$0xff] %v4979_v44  ;;  %v1699_v41 = vadd.f32 %v4832_v45, %v4827_v1  ;;  %v2072_v26 = vadd.f32 %v4955_v27, %v2071_v2  ;;  %4160 = vpow2.f32 %v1505_v5 }
 0x188   :  { %v4969_v58 = vpop.eup %4144  ;;  %v4973_v24 = vpop.f32.mrf.mxu0  ;;  %v1708_v16 = vadd.f32 %v4745_v37, %v1707_v47  ;;  %v4995_v59 = vmul.f32 5.0, %v4853_v15  ;;  %v2130_v11 = vadd.s32 120, %v4503_v49  ;;  %v5000_v54 = vadd.s32 128, %v4503_v49 }
 0x189   :  { %v2009_v7 = vadd.f32 %v4969_v58, %v2008_v23  ;;  %v4983_v38 = vpop.eup %4146  ;;  %v1511_v23 = vmul.f32 1.442695, %v3707_v53  ;;  %v1700_v18 = vadd.f32 %v4712_v55, %v1699_v41  ;;  %v3713_v45 = vadd.f32 -5.0, %v4977_v48  ;;  %v3952_v37 = vpop.f32.mrf.mxu1 }
 0x18a   :  { %6128 = vst [vmem:[#allocation27_spill] sm:$0xff] %v4983_v38  ;;  %v4990_v25 = vpop.f32.mrf.mxu0  ;;  %v3716_v2 = vadd.f32 -5.0, %v4979_v44  ;;  %v5006_v5 = vmul.f32 5.0, %v3951_v43  ;;  %1709 = vadd.xlane.f32.xlu1 %v1708_v16  ;;  %v5009_v15 = vadd.s32 128, %v4505_v50  ;;  %v1517_v55 = vmul.f32 1.442695, %v3710_v31 }
 0x18b   :  { %v3669_v47 = vadd.f32 -5.0, %v1087_v8  ;;  %v5013_v41 = vmul.f32 5.0, %v980_v17  ;;  %1701 = vadd.xlane.f32.xlu0 %v1700_v18  ;;  %v1711_v9 = vadd.f32 %v4918_v29, %v4913_v57  ;;  %v2073_v43 = vadd.f32 %v4983_v38, %v2072_v26 }
 0x18c   :  { %v5002_v1 = vpop.f32.mrf.mxu0  ;;  %6129 = vst [vmem:[#allocation28_spill] sm:$0xff] %v5006_v5  ;;  %4162 = vpow2.f32 %v1511_v23  ;;  %v1090_v27 = vmul.f32 5.0, %v4863_v34  ;;  %v3670_v17 = vadd.f32 -5.0, %v4995_v59  ;;  %vm2313_vm15 = vcmp.eq.s32.totalorder %v2130_v11, %v4505_v50 }
 0x18d   :  { %v5011_v53 = vpop.eup %4148  ;;  %6130 = vst [vmem:[#allocation29_spill] sm:$0xff] %v5013_v41  ;;  %v1712_v8 = vadd.f32 %v4750_v35, %v1711_v9  ;;  %v1523_v29 = vmul.f32 1.442695, %v3713_v45  ;;  %v1529_v18 = vmul.f32 1.442695, %v3716_v2  ;;  %v3725_v26 = vadd.f32 -5.0, %v5006_v5 }
 0x18e   :  { %v5017_v48 = vpop.f32.mrf.mxu0  ;;  %v5019_v44 = vpop.eup %4150  ;;  %v1957_v16 = vadd.f32 %v5011_v53, %v1956_v28  ;;  %v2454_v34 = vsel %vm2310_vm14, %v4785_v40, 0.0  ;;  %4164 = vpow2.f32 %v1517_v55  ;;  %v3719_v38 = vadd.f32 -5.0, %v5013_v41 }
 0x18f   :  { %v5024_v32 = vpop.eup %4152  ;;  %v2010_v31 = vadd.f32 %v5019_v44, %v2009_v7  ;;  %v983_v28 = vpop.f32.mrf.mxu1  ;;  %v1435_v7 = vmul.f32 1.442695, %v3669_v47  ;;  %v5040_v35 = vmul.f32 5.0, %v4871_v6  ;;  %1713 = vadd.xlane.f32.xlu1 %v1712_v8  ;;  %2614 = vadd.xlane.f32.xlu0 %v2454_v34  ;;  %vm2317_vm0 = vcmp.eq.s32.totalorder %v5000_v54, %v5009_v15 }
 0x190   :  { %6131 = vst [vmem:[#allocation30_spill] sm:$0xff] %v5024_v32  ;;  %v5030_v57 = vpop.f32.mrf.mxu0  ;;  %v5036_v23 = vpop.eup %4154  ;;  %v2074_v40 = vadd.f32 %v5024_v32, %v2073_v43  ;;  %v3672_v2 = vadd.f32 -5.0, %v1090_v27  ;;  %v5053_v55 = vmul.f32 5.0, %v4895_v51  ;;  %v1437_v8 = vmul.f32 1.442695, %v3670_v17 }
 0x191   :  { %v5046_v45 = vpop.eup %4156  ;;  %v5050_v30 = vadd.f32 %v5036_v23, %v1957_v16  ;;  %v5060_v34 = vmul.f32 5.0, %v3952_v37  ;;  %v1715_v5 = vadd.f32 %v4949_v0, %v4946_v4  ;;  %4166 = vpow2.f32 %v1523_v29  ;;  %v3955_v16 = vpop.f32.mrf.mxu1 }
 0x192   :  { %v5044_v9 = vpop.f32.mrf.mxu0  ;;  %v5055_v6 = vpop.eup %4158  ;;  %v5058_v47 = vadd.f32 %v5046_v45, %v2010_v31  ;;  %v1547_v43 = vmul.f32 1.442695, %v3725_v26  ;;  %v1093_v27 = vmul.f32 5.0, %v4887_v20  ;;  %v2457_v51 = vsel %vm2313_vm15, %v4811_v10, 0.0 }
 0x193   :  { %6132 = vst [vmem:[#allocation31_spill] sm:$0xff] %v5060_v34  ;;  %4168 = vpow2.f32 %v1529_v18  ;;  %v1535_v31 = vmul.f32 1.442695, %v3719_v38  ;;  %v3673_v17 = vadd.f32 -5.0, %v5040_v35  ;;  %v1716_v37 = vadd.f32 %v4777_v42, %v1715_v5  ;;  %2618 = vadd.xlane.f32.xlu0 %v2457_v51  ;;  %v996_v18 = vpop.f32.mrf.mxu1 }
 0x194   :  { %v5064_v41 = vpop.f32.mrf.mxu0  ;;  %v2075_v4 = vadd.f32 %v5055_v6, %v2074_v40  ;;  %4170 = vpow2.f32 %v1435_v7  ;;  %v1441_v0 = vmul.f32 1.442695, %v3672_v2  ;;  %v3676_v20 = vadd.f32 -5.0, %v5053_v55  ;;  %v5076_v29 = vpop.eup %4160 }
 0x195   :  { %4172 = vpow2.f32 %v1437_v8  ;;  %v3728_v10 = vadd.f32 -5.0, %v5060_v34  ;;  %v5079_v11 = vmul.f32 5.0, %v983_v28  ;;  %v5081_v38 = vmul.f32 5.0, %v3955_v16  ;;  %1717 = vadd.xlane.f32.xlu1 %v1716_v37  ;;  %v3956_v50 = vpop.f32.mrf.mxu1 }
 0x196   :  { %v5072_v32 = vpop.f32.mrf.mxu0  ;;  %4174 = vpow2.f32 %v1547_v43  ;;  %v3675_v5 = vadd.f32 -5.0, %v1093_v27  ;;  %v5086_v26 = vmul.f32 5.0, %v4916_v52  ;;  %v1719_v7 = vadd.f32 %v4969_v58, %v4965_v56 }
 0x197   :  { %6133 = vst [vmem:[#allocation32_spill] sm:$0xff] %v5079_v11  ;;  %6134 = vst [vmem:[#allocation33_spill] sm:$0xff] %v5081_v38  ;;  %4176 = vpow2.f32 %v1535_v31  ;;  %v1443_v40 = vmul.f32 1.442695, %v3673_v17  ;;  %v2132_v2 = vadd.s32 136, %v4503_v49  ;;  %v5092_v28 = vadd.s32 144, %v4503_v49 }
 0x198   :  { %v5083_v42 = vpop.f32.mrf.mxu0  ;;  %v2076_v16 = vadd.f32 %v5076_v29, %v2075_v4  ;;  %4178 = vpow2.f32 %v1441_v0  ;;  %v1449_v43 = vmul.f32 1.442695, %v3676_v20  ;;  %v1096_v27 = vmul.f32 5.0, %v4905_v36 }
 0x199   :  { %v5098_v52 = vpop.eup %4162  ;;  %v1553_v51 = vmul.f32 1.442695, %v3728_v10  ;;  %v3722_v56 = vadd.f32 -5.0, %v5079_v11  ;;  %v3737_v58 = vadd.f32 -5.0, %v5081_v38  ;;  %v1720_v31 = vadd.f32 %v4819_v62, %v1719_v7 }
 0x19a   :  { %v5094_v8 = vpop.f32.mrf.mxu0  ;;  %v1447_v37 = vmul.f32 1.442695, %v3675_v5  ;;  %v3679_v34 = vadd.f32 -5.0, %v5086_v26  ;;  %v2461_v36 = vsel %vm2317_vm0, %v4851_v12, 0.0  ;;  %v5111_v4 = vmul.f32 5.0, %v4937_v14 }
 0x19b   :  { %4180 = vpow2.f32 %v1443_v40  ;;  %v5113_v0 = vmul.f32 5.0, %v996_v18  ;;  %1721 = vadd.xlane.f32.xlu1 %v1720_v31  ;;  %2622 = vadd.xlane.f32.xlu0 %v2461_v36  ;;  %vm2320_vm1 = vcmp.eq.s32.totalorder %v2132_v2, %v5009_v15  ;;  %vm2323_vm2 = vcmp.eq.s32.totalorder %v5092_v28, %v5009_v15  ;;  %v5120_v20 = vpop.eup %4164  ;;  %v999_v31 = vpop.f32.mrf.mxu1 }
 0x19c   :  { %v5103_v17 = vpop.f32.mrf.mxu0  ;;  %6136 = vst [vmem:[#allocation35_spill] sm:$0xff] %v5120_v20  ;;  %v2077_v54 = vadd.f32 %v5098_v52, %v2076_v16  ;;  %4182 = vpow2.f32 %v1449_v43  ;;  %v3678_v12 = vadd.f32 -5.0, %v1096_v27  ;;  %v1099_v14 = vmul.f32 5.0, %v4926_v22 }
 0x19d   :  { %6135 = vst [vmem:[#allocation34_spill] sm:$0xff] %v5113_v0  ;;  %4184 = vpow2.f32 %v1553_v51  ;;  %v1541_v10 = vmul.f32 1.442695, %v3722_v56  ;;  %v1571_v5 = vmul.f32 1.442695, %v3737_v58  ;;  %v1723_v18 = vadd.f32 %v5019_v44, %v5011_v53 }
 0x19e   :  { %v5118_v62 = vpop.f32.mrf.mxu0  ;;  %4186 = vpow2.f32 %v1447_v37  ;;  %v1455_v40 = vmul.f32 1.442695, %v3679_v34  ;;  %v3682_v36 = vadd.f32 -5.0, %v5111_v4  ;;  %v2464_v16 = vsel %vm2320_vm1, %v4879_v60, 0.0  ;;  %v5132_v43 = vpop.eup %4166 }
 0x19f   :  { %6137 = vst [vmem:[#allocation36_spill] sm:$0xff] %v5132_v43  ;;  %v3731_v22 = vadd.f32 -5.0, %v5113_v0  ;;  %v5135_v27 = vmul.f32 5.0, %v3956_v50  ;;  %v1724_v51 = vadd.f32 %v4802_v61, %v1723_v18  ;;  %2626 = vadd.xlane.f32.xlu0 %v2464_v16  ;;  %v1102_v44 = vmul.f32 5.0, %v4944_v33 }
 0x1a0   :  { %v5126_v7 = vpop.f32.mrf.mxu0  ;;  %v5141_v34 = vpop.eup %4168  ;;  %v2078_v56 = vadd.f32 %v5120_v20, %v2077_v54  ;;  %v1453_v58 = vmul.f32 1.442695, %v3678_v12  ;;  %v3681_v2 = vadd.f32 -5.0, %v1099_v14  ;;  %v5145_v60 = vmul.f32 5.0, %v4953_v46  ;;  %v6155_v20 = vld [vmem:[#allocation20_spill] sm:$0xff] }
 0x1a1   :  { %6138 = vst [vmem:[#allocation37_spill] sm:$0xff] %v5135_v27  ;;  %6139 = vst [vmem:[#allocation38_spill] sm:$0xff] %v5141_v34  ;;  %v4171_v37 = vpop.eup %4170  ;;  %4188 = vpow2.f32 %v1541_v10  ;;  %v5147_v50 = vmul.f32 5.0, %v999_v31  ;;  %1725 = vadd.xlane.f32.xlu1 %v1724_v51  ;;  %v3684_v61 = vadd.f32 -5.0, %v1102_v44  ;;  %v1727_v33 = vadd.f32 %v5046_v45, %v5036_v23 }
 0x1a2   :  { %v5139_v53 = vpop.f32.mrf.mxu0  ;;  %v4173_v16 = vpop.eup %4172  ;;  %4190 = vpow2.f32 %v1455_v40  ;;  %v1461_v38 = vmul.f32 1.442695, %v3682_v36  ;;  %v3685_v54 = vadd.f32 -5.0, %v5145_v60  ;;  %v2134_v12 = vadd.s32 152, %v4503_v49 }
 0x1a3   :  { %6140 = vst [vmem:[#allocation39_spill] sm:$0xff] %v5147_v50  ;;  %v5155_v46 = vpop.eup %4174  ;;  %4192 = vpow2.f32 %v1571_v5  ;;  %v1559_v14 = vmul.f32 1.442695, %v3731_v22  ;;  %v3740_v10 = vadd.f32 -5.0, %v5135_v27  ;;  %v1728_v31 = vadd.f32 %v4815_v13, %v1727_v33 }
 0x1a4   :  { %v5151_v18 = vpop.f32.mrf.mxu0  ;;  %v5161_v23 = vpop.eup %4176  ;;  %v2079_v45 = vadd.f32 %v5132_v43, %v2078_v56  ;;  %v5165_v40 = vadd.f32 %v4171_v37, %v5050_v30  ;;  %4194 = vpow2.f32 %v1453_v58  ;;  %v1459_v36 = vmul.f32 1.442695, %v3681_v2 }
 0x1a5   :  { %6141 = vst [vmem:[#allocation40_spill] sm:$0xff] %v5161_v23  ;;  %v5167_v44 = vpop.eup %4178  ;;  %v5170_v5 = vadd.f32 %v4173_v16, %v5058_v47  ;;  %v3734_v22 = vadd.f32 -5.0, %v5147_v50  ;;  %v1465_v27 = vmul.f32 1.442695, %v3684_v61  ;;  %1729 = vadd.xlane.f32.xlu1 %v1728_v31  ;;  %v2467_v13 = vsel %vm2323_vm2, %v4911_v3, 0.0  ;;  %v3959_v30 = vpop.f32.mrf.mxu1 }
 0x1a6   :  { %v5159_v51 = vpop.f32.mrf.mxu0  ;;  %4196 = vpow2.f32 %v1461_v38  ;;  %v1467_v58 = vmul.f32 1.442695, %v3685_v54  ;;  %2630 = vadd.xlane.f32.xlu0 %v2467_v13  ;;  %v1105_v2 = vmul.f32 5.0, %v4963_v21  ;;  %v5181_v47 = vmul.f32 5.0, %v4973_v24 }
 0x1a7   :  { %4198 = vpow2.f32 %v1559_v14  ;;  %v1577_v33 = vmul.f32 1.442695, %v3740_v10  ;;  %v5183_v61 = vmul.f32 5.0, %v3959_v30  ;;  %v1731_v31 = vadd.f32 %v4173_v16, %v4171_v37 }
 0x1a8   :  { %v5177_v56 = vpop.f32.mrf.mxu0  ;;  %v5187_v28 = vpop.eup %4180  ;;  %4200 = vpow2.f32 %v1459_v36  ;;  %v3687_v3 = vadd.f32 -5.0, %v1105_v2  ;;  %v3688_v38 = vadd.f32 -5.0, %v5181_v47  ;;  %vm2326_vm3 = vcmp.eq.s32.totalorder %v2134_v12, %v5009_v15 }
 0x1a9   :  { %6142 = vst [vmem:[#allocation41_spill] sm:$0xff] %v5183_v61  ;;  %v5191_v54 = vpop.eup %4182  ;;  %v1565_v21 = vmul.f32 1.442695, %v3734_v22  ;;  %4202 = vpow2.f32 %v1465_v27  ;;  %v1732_v24 = vadd.f32 %v4842_v63, %v1731_v31  ;;  %v2470_v14 = vsel %vm2326_vm3, %v4932_v39, 0.0 }
 0x1aa   :  { %v5185_v50 = vpop.f32.mrf.mxu0  ;;  %v5197_v37 = vpop.eup %4184  ;;  %4204 = vpow2.f32 %v1467_v58  ;;  %v1473_v16 = vmul.f32 1.442695, %v3688_v38  ;;  %2634 = vadd.xlane.f32.xlu0 %v2470_v14  ;;  %v1108_v36 = vmul.f32 5.0, %v4990_v25  ;;  %v5201_v13 = vmul.f32 5.0, %v5002_v1 }
 0x1ab   :  { %6143 = vst [vmem:[#allocation42_spill] sm:$0xff] %v5197_v37  ;;  %v5203_v12 = vpop.eup %4186  ;;  %1733 = vadd.xlane.f32.xlu1 %v1732_v24  ;;  %v1735_v63 = vadd.f32 %v5187_v28, %v5167_v44  ;;  %v2135_v39 = vadd.s32 160, %v4503_v49  ;;  %v1111_v27 = vmul.f32 5.0, %v5017_v48  ;;  %v5210_v22 = vmul.f32 5.0, %v5030_v57  ;;  %v1012_v58 = vpop.f32.mrf.mxu1  ;;  %v6145_v24 = vld [vmem:[#allocation18_spill] sm:$0xff] }
 0x1ac   :  { %v5195_v10 = vpop.f32.mrf.mxu0  ;;  %6144 = vst [vmem:[#allocation43_spill] sm:$0xff] %v5201_v13  ;;  %v1471_v25 = vmul.f32 1.442695, %v3687_v3  ;;  %v3690_v2 = vadd.f32 -5.0, %v1108_v36  ;;  %v3691_v1 = vadd.f32 -5.0, %v5201_v13  ;;  %v1739_v31 = vadd.f32 %v5203_v12, %v5191_v54 }
 0x1ad   :  { %v2080_v38 = vadd.f32 %v5141_v34, %v2079_v45  ;;  %4206 = vpow2.f32 %v1577_v33  ;;  %v1736_v14 = vadd.f32 %v6145_v24, %v1735_v63  ;;  %vm2329_vm4 = vcmp.eq.s32.totalorder %v2135_v39, %v5009_v15  ;;  %v5235_v34 = vpop.f32.mrf.mxu1 }
 0x1ae   :  { %v5212_v30 = vpop.f32.mrf.mxu0  ;;  %v5224_v0 = vpop.eup %4188  ;;  %v3749_v3 = vadd.f32 -5.0, %v5183_v61  ;;  %4208 = vpow2.f32 %v1473_v16  ;;  %v1479_v36 = vmul.f32 1.442695, %v3691_v1  ;;  %v2473_v11 = vsel %vm2329_vm4, %v4995_v59, 0.0  ;;  %v6147_v16 = vld [vmem:[#allocation17_spill] sm:$0xff] }
 0x1af   :  { %v5228_v13 = vpop.eup %4190  ;;  %4210 = vpow2.f32 %v1565_v21  ;;  %v1477_v45 = vmul.f32 1.442695, %v3690_v2  ;;  %1737 = vadd.xlane.f32.xlu1 %v1736_v14  ;;  %2638 = vadd.xlane.f32.xlu0 %v2473_v11  ;;  %v3693_v33 = vadd.f32 -5.0, %v1111_v27  ;;  %v3694_v63 = vadd.f32 -5.0, %v5210_v22 }
 0x1b0   :  { %v5220_v48 = vpop.xlane.xlu0 %2562  ;;  %v5222_v57 = vpop.f32.mrf.mxu0  ;;  %4212 = vpow2.f32 %v1471_v25  ;;  %v1740_v1 = vadd.f32 %v6147_v16, %v1739_v31  ;;  %v2136_v59 = vadd.s32 168, %v4503_v49  ;;  %v1114_v61 = vmul.f32 5.0, %v5044_v9 }
 0x1b1   :  { %v5233_v24 = vpop.eup %4192  ;;  %v5243_v11 = vadd.f32 %v5161_v23, %v2080_v38  ;;  %4214 = vpow2.f32 %v1479_v36  ;;  %v1483_v27 = vmul.f32 1.442695, %v3693_v33  ;;  %v1485_v2 = vmul.f32 1.442695, %v3694_v63  ;;  %v1015_v23 = vpop.f32.mrf.mxu1 }
 0x1b2   :  { %v5231_v39 = vpop.f32.mrf.mxu0  ;;  %6146 = vst [vmem:[#allocation18_spill] sm:$0xff] %v5233_v24  ;;  %v5240_v21 = vpop.eup %4194  ;;  %vm2332_vm5 = vcmp.eq.s32.totalorder %v2136_v59, %v5009_v15  ;;  %v3696_v25 = vadd.f32 -5.0, %v1114_v61  ;;  %v5251_v31 = vmul.f32 5.0, %v5064_v41  ;;  %v1960_v38 = vadd.f32 %v5167_v44, %v5165_v40 }
 0x1b3   :  { %v1743_v9 = vadd.f32 %v5240_v21, %v5228_v13  ;;  %v5255_v16 = vpop.eup %4196  ;;  %v5261_v36 = vadd.f32 %v5187_v28, %v5170_v5  ;;  %4216 = vpow2.f32 %v1477_v45  ;;  %1741 = vadd.xlane.f32.xlu1 %v1740_v1  ;;  %v2476_v33 = vsel %vm2332_vm5, %v5040_v35, 0.0  ;;  %v6152_v5 = vld [vmem:[#allocation19_spill] sm:$0xff] }
 0x1b4   :  { %v5245_v14 = vpop.xlane.xlu0 %2566  ;;  %v5247_v24 = vpop.f32.mrf.mxu0  ;;  %6148 = vst [vmem:[#allocation17_spill] sm:$0xff] %v5251_v31  ;;  %v5268_v63 = vmul.f32 1.442695, %v3749_v3  ;;  %v5270_v59 = vmul.f32 5.0, %v1012_v58  ;;  %4218 = vpow2.f32 %v1485_v2  ;;  %2642 = vadd.xlane.f32.xlu0 %v2476_v33  ;;  %v3697_v40 = vadd.f32 -5.0, %v5251_v31 }
 0x1b5   :  { %v5266_v41 = vpop.eup %4198  ;;  %v1744_v28 = vadd.f32 %v6152_v5, %v1743_v9  ;;  %v2137_v45 = vadd.s32 176, %v4503_v49  ;;  %v1117_v35 = vmul.f32 5.0, %v5072_v32  ;;  %v5279_v1 = vmul.f32 5.0, %v5083_v42 }
 0x1b6   :  { %v5264_v61 = vpop.f32.mrf.mxu0  ;;  %6149 = vst [vmem:[#allocation44_spill] sm:$0xff] %v5266_v41  ;;  %6150 = vst [vmem:[#allocation45_spill] sm:$0xff] %v5268_v63  ;;  %v5273_v44 = vpop.eup %4200  ;;  %4220 = vpow2.f32 %v1483_v27  ;;  %v1489_v2 = vmul.f32 1.442695, %v3696_v25  ;;  %v2138_v9 = vadd.s32 184, %v4503_v49  ;;  %v5297_v41 = vadd.f32 -5.0, %v5270_v59 }
 0x1b7   :  { %6151 = vst [vmem:[#allocation46_spill] sm:$0xff] %v5270_v59  ;;  %v5285_v63 = vpop.eup %4202  ;;  %v1747_v33 = vadd.f32 %v5273_v44, %v5255_v16  ;;  %v1491_v31 = vmul.f32 1.442695, %v3697_v40  ;;  %1745 = vadd.xlane.f32.xlu1 %v1744_v28  ;;  %vm2335_vm6 = vcmp.eq.s32.totalorder %v2137_v45, %v5009_v15  ;;  %v3699_v32 = vadd.f32 -5.0, %v1117_v35 }
 0x1b8   :  { %v5281_v3 = vpop.xlane.xlu0 %2570  ;;  %v5283_v58 = vpop.f32.mrf.mxu0  ;;  %v3700_v42 = vadd.f32 -5.0, %v5279_v1  ;;  %v5299_v27 = vmul.f32 5.0, %v1015_v23  ;;  %v2479_v25 = vsel %vm2335_vm6, %v5053_v55, 0.0  ;;  %vm2338_vm7 = vcmp.eq.s32.totalorder %v2138_v9, %v5009_v15 }
 0x1b9   :  { %6153 = vst [vmem:[#allocation19_spill] sm:$0xff] %v5283_v58  ;;  %v5290_v5 = vpop.eup %4204  ;;  %v1748_v37 = vadd.f32 %v6155_v20, %v1747_v33  ;;  %2646 = vadd.xlane.f32.xlu0 %v2479_v25  ;;  %v1495_v58 = vmul.f32 1.442695, %v3699_v32  ;;  %v1120_v28 = vmul.f32 5.0, %v5094_v8  ;;  %4222 = vpow2.f32 %v1489_v2 }
 0x1ba   :  { %v5294_v43 = vpop.f32.mrf.mxu0  ;;  %v1497_v40 = vmul.f32 1.442695, %v3700_v42  ;;  %v5307_v35 = vpop.eup %4206  ;;  %v5310_v59 = vmul.f32 5.0, %v5103_v17  ;;  %v1751_v55 = vadd.f32 %v5290_v5, %v5285_v63  ;;  %v2139_v20 = vadd.s32 192, %v4503_v49 }
 0x1bb   :  { %6154 = vst [vmem:[#allocation47_spill] sm:$0xff] %v5294_v43  ;;  %6157 = vst [vmem:[#allocation48_spill] sm:$0xff] %v5307_v35  ;;  %v5317_v33 = vpop.eup %4208  ;;  %v1961_v32 = vadd.f32 %v5203_v12, %v1960_v38  ;;  %4224 = vpow2.f32 %v1491_v31  ;;  %1749 = vadd.xlane.f32.xlu1 %v1748_v37  ;;  %v3702_v8 = vadd.f32 -5.0, %v1120_v28  ;;  %v1123_v42 = vmul.f32 5.0, %v5118_v62 }
 0x1bc   :  { %v5305_v45 = vpop.f32.mrf.mxu0  ;;  %6158 = vst [vmem:[#allocation49_spill] sm:$0xff] %v5310_v59  ;;  %v5315_v23 = vpop.xlane.xlu0 %2574  ;;  %4226 = vpow2.f32 %v1497_v40  ;;  %v2482_v25 = vsel %vm2338_vm7, %v5086_v26, 0.0  ;;  %v3703_v35 = vadd.f32 -5.0, %v5310_v59  ;;  %vm2341_vm8 = vcmp.eq.s32.totalorder %v2139_v20, %v5009_v15  ;;  %v6159_v20 = vld [vmem:[#allocation21_spill] sm:$0xff] }
 0x1bd   :  { %6156 = vst [vmem:[#allocation20_spill] sm:$0xff] %v5305_v45  ;;  %v5323_v17 = vpop.eup %4210  ;;  %v1752_v45 = vadd.f32 %v4934_v19, %v1751_v55  ;;  %4228 = vpow2.f32 %v1495_v58  ;;  %2650 = vadd.xlane.f32.xlu0 %v2482_v25  ;;  %v1501_v37 = vmul.f32 1.442695, %v3702_v8  ;;  %v1124_v62 = vmul.f32 5.0, %v5126_v7 }
 0x1be   :  { %v5321_v2 = vpop.f32.mrf.mxu0  ;;  %v5330_v43 = vpop.eup %4212  ;;  %v1503_v38 = vmul.f32 1.442695, %v3703_v35  ;;  %v3705_v9 = vadd.f32 -5.0, %v1123_v42  ;;  %v2140_v19 = vadd.s32 200, %v4503_v49  ;;  %v5343_v58 = vadd.f32 %v5224_v0, %v5243_v11 }
 0x1bf   :  { %v5336_v31 = vpop.eup %4214  ;;  %v1755_v26 = vadd.f32 %v5330_v43, %v5317_v33  ;;  %v2014_v40 = vadd.f32 %v5191_v54, %v5261_v36  ;;  %v1962_v7 = vadd.f32 %v5240_v21, %v1961_v32  ;;  %1753 = vadd.xlane.f32.xlu1 %v1752_v45  ;;  %v3706_v28 = vadd.f32 -5.0, %v1124_v62 }
 0x1c0   :  { %v5334_v12 = vpop.f32.mrf.mxu0  ;;  %v5348_v55 = vpop.eup %4216  ;;  %4230 = vpow2.f32 %v1503_v38  ;;  %v2485_v35 = vsel %vm2341_vm8, %v5111_v4, 0.0  ;;  %v1126_v42 = vmul.f32 5.0, %v5139_v53  ;;  %vm2344_vm9 = vcmp.eq.s32.totalorder %v2140_v19, %v5009_v15  ;;  %v6160_v19 = vld [vmem:[#allocation23_spill] sm:$0xff] }
 0x1c1   :  { %v1756_v8 = vadd.f32 %v6159_v20, %v1755_v26  ;;  %v5353_v25 = vpop.xlane.xlu0 %2578  ;;  %v5355_v11 = vpop.eup %4218  ;;  %v2015_v59 = vadd.f32 %v5228_v13, %v2014_v40  ;;  %v1963_v54 = vadd.f32 %v5273_v44, %v1962_v7  ;;  %2654 = vadd.xlane.f32.xlu0 %v2485_v35  ;;  %v1509_v21 = vmul.f32 1.442695, %v3706_v28  ;;  %v6161_v20 = vld [vmem:[#allocation27_spill] sm:$0xff] }
 0x1c2   :  { %v5360_v36 = vpop.f32.mrf.mxu0  ;;  %4232 = vpow2.f32 %v1501_v37  ;;  %v1507_v4 = vmul.f32 1.442695, %v3705_v9  ;;  %v1127_v45 = vmul.f32 5.0, %v5151_v18  ;;  %v1759_v53 = vadd.f32 %v5348_v55, %v5336_v31 }
 0x1c3   :  { %v5365_v32 = vpop.eup %4220  ;;  %1757 = vadd.xlane.f32.xlu1 %v1756_v8  ;;  %v3708_v62 = vadd.f32 -5.0, %v1126_v42  ;;  %v2141_v13 = vadd.s32 208, %v4503_v49  ;;  %v1129_v44 = vmul.f32 5.0, %v5159_v51  ;;  %v1130_v38 = vmul.f32 5.0, %v5177_v56 }
 0x1c4   :  { %v2016_v26 = vadd.f32 %v5255_v16, %v2015_v59  ;;  %v2488_v37 = vsel %vm2344_vm9, %v5145_v60, 0.0  ;;  %v3709_v9 = vadd.f32 -5.0, %v1127_v45  ;;  %v1760_v18 = vadd.f32 %v6160_v19, %v1759_v53  ;;  %v5377_v28 = vpop.f32.mrf.mxu0 }
 0x1c5   :  { %v1964_v40 = vadd.f32 %v5285_v63, %v1963_v54  ;;  %4234 = vpow2.f32 %v1509_v21  ;;  %2658 = vadd.xlane.f32.xlu0 %v2488_v37  ;;  %vm2347_vm10 = vcmp.eq.s32.totalorder %v2141_v13, %v5009_v15  ;;  %v1763_v7 = vadd.f32 %v5365_v32, %v5355_v11 }
 0x1c6   :  { %v2017_v51 = vadd.f32 %v5290_v5, %v2016_v26  ;;  %v5380_v56 = vmul.f32 1.442695, %v3709_v9  ;;  %v5382_v16 = vadd.f32 -5.0, %v1129_v44  ;;  %v5384_v60 = vadd.f32 -5.0, %v1130_v38  ;;  %v5388_v63 = vpop.eup %4222 }
 0x1c7   :  { %v5386_v59 = vpop.xlane.xlu0 %1653  ;;  %4236 = vpow2.f32 %v1507_v4  ;;  %v5390_v35 = vmul.f32 1.442695, %v3708_v62  ;;  %1761 = vadd.xlane.f32.xlu1 %v1760_v18  ;;  %v5393_v8 = vadd.f32 %v6161_v20, %v1763_v7  ;;  %v5396_v42 = vadd.s32 224, %v4503_v49 }
 0x1c8   :  { %v5398_v5 = vpop.eup %4224  ;;  %v2491_v54 = vsel %vm2347_vm10, %v5181_v47, 0.0  ;;  %v5402_v21 = vmul.f32 5.0, %v5185_v50  ;;  %vm48_vm11 = vcmask 7168   ;;  %v5407_v4 = vadd.f32 %v5330_v43, %v1964_v40  ;;  %v5607_v50 = vpop.f32.mrf.mxu0 }
 0x1c9   :  { %v5404_v45 = vpop.eup %4226  ;;  %v5410_v53 = vadd.f32 %v5317_v33, %v2017_v51  ;;  %2662 = vadd.xlane.f32.xlu0 %v2491_v54  ;;  %vm2353_vm12 = vcmp.eq.s32.totalorder %v5396_v42, %v5009_v15  ;;  %v4474_v62 = vmov 0.0   ;;  %v1133_v43 = vmul.f32 5.0, %v5195_v10 }
 0x1ca   :  { %97 = vst.msk [vmem:[#allocation3] sm:$0xff] %vm48_vm11, %v4474_v62  ;;  %49 = vst.msk [vmem:[#allocation2] sm:$0xff] %vm48_vm11, %v4474_v62  ;;  %v5609_v47 = vpop.eup %4228  ;;  %4238 = vpow2.f32 %v5380_v56  ;;  %v1519_v33 = vmul.f32 1.442695, %v5382_v16  ;;  %v1521_v13 = vmul.f32 1.442695, %v5384_v60  ;;  %v1767_v26 = vadd.f32 %v5398_v5, %v5388_v63 }
 0x1cb   :  { %50 = vst.msk [vmem:[#allocation2 + $0x8] sm:$0xff] %vm48_vm11, %v4474_v62  ;;  %51 = vst.msk [vmem:[#allocation2 + $0x10] sm:$0xff] %vm48_vm11, %v4474_v62  ;;  %v3714_v44 = vadd.f32 -5.0, %v5402_v21  ;;  %1765 = vadd.xlane.f32.xlu1 %v5393_v8  ;;  %v3715_v38 = vadd.f32 -5.0, %v1133_v43  ;;  %v2145_v10 = vadd.s32 240, %v4503_v49  ;;  %v1135_v37 = vmul.f32 5.0, %v5212_v30  ;;  %v5628_v40 = vpop.xlane.xlu0 %2582 }
 0x1cc   :  { %52 = vst.msk [vmem:[#allocation2 + $0x18] sm:$0xff] %vm48_vm11, %v4474_v62  ;;  %53 = vst.msk [vmem:[#allocation2 + $0x20] sm:$0xff] %vm48_vm11, %v4474_v62  ;;  %4240 = vpow2.f32 %v5390_v35  ;;  %v2497_v9 = vsel %vm2353_vm12, %v5210_v22, 0.0  ;;  %v1136_v19 = vmul.f32 5.0, %v5222_v57  ;;  %v1771_v18 = vadd.f32 %v5609_v47, %v5404_v45  ;;  %v6162_v56 = vld [vmem:[#allocation30_spill] sm:$0xff]  ;;  %v5638_v22 = vpop.f32.mrf.mxu0  ;;  %v2559_v57 = vpop.xlane.xlu1 %2558 }
 0x1cd   :  { %54 = vst.msk [vmem:[#allocation2 + $0x28] sm:$0xff] %vm48_vm11, %v4474_v62  ;;  %55 = vst.msk [vmem:[#allocation2 + $0x30] sm:$0xff] %vm48_vm11, %v4474_v62  ;;  %v5630_v7 = vpop.eup %4230  ;;  %v1966_v51 = vadd.f32 %v5348_v55, %v5407_v4  ;;  %v2019_v30 = vadd.f32 %v5336_v31, %v5410_v53  ;;  %2670 = vadd.xlane.f32.xlu0 %v2497_v9  ;;  %v1768_v16 = vadd.f32 %v6162_v56, %v1767_v26  ;;  %v6163_v53 = vld [vmem:[#allocation16_spill] sm:$0xff] }
 0x1ce   :  { %56 = vst.msk [vmem:[#allocation2 + $0x38] sm:$0xff] %vm48_vm11, %v4474_v62  ;;  %57 = vst.msk [vmem:[#allocation2 + $0x40] sm:$0xff] %vm48_vm11, %v4474_v62  ;;  %vm2359_vm13 = vcmp.eq.s32.totalorder %v2145_v10, %v5009_v15  ;;  %4242 = vpow2.f32 %v1521_v13  ;;  %v1527_v60 = vmul.f32 1.442695, %v3715_v38  ;;  %v3717_v35 = vadd.f32 -5.0, %v1135_v37 }
 0x1cf   :  { %58 = vst.msk [vmem:[#allocation2 + $0x48] sm:$0xff] %vm48_vm11, %v4474_v62  ;;  %59 = vst.msk [vmem:[#allocation2 + $0x50] sm:$0xff] %vm48_vm11, %v4474_v62  ;;  %v2147_v20 = vadd.s32 256, %v4503_v49  ;;  %v5641_v8 = vpop.eup %4232  ;;  %4244 = vpow2.f32 %v1519_v33  ;;  %v1525_v55 = vmul.f32 1.442695, %v3714_v44  ;;  %1769 = vadd.xlane.f32.xlu1 %v1768_v16  ;;  %v3718_v42 = vadd.f32 -5.0, %v1136_v19 }
 0x1d0   :  { %60 = vst.msk [vmem:[#allocation2 + $0x58] sm:$0xff] %vm48_vm11, %v4474_v62  ;;  %61 = vst.msk [vmem:[#allocation2 + $0x60] sm:$0xff] %vm48_vm11, %v4474_v62  ;;  %v1772_v31 = vadd.f32 %v5055_v6, %v1771_v18  ;;  %v2503_v21 = vsel %vm2359_vm13, %v5279_v1, 0.0  ;;  %v1138_v43 = vmul.f32 5.0, %v5231_v39  ;;  %v1775_v13 = vadd.f32 %v5641_v8, %v5630_v7  ;;  %v5652_v6 = vpop.f32.mrf.mxu0 }
 0x1d1   :  { %62 = vst.msk [vmem:[#allocation2 + $0x68] sm:$0xff] %vm48_vm11, %v4474_v62  ;;  %63 = vst.msk [vmem:[#allocation2 + $0x70] sm:$0xff] %vm48_vm11, %v4474_v62  ;;  %v2220_v54 = vld [vmem:[#allocation3] sm:$0xff]  ;;  %2678 = vadd.xlane.f32.xlu0 %v2503_v21  ;;  %v1531_v33 = vmul.f32 1.442695, %v3717_v35  ;;  %4246 = vpow2.f32 %v1527_v60  ;;  %v1967_v18 = vadd.f32 %v5365_v32, %v1966_v51  ;;  %v2149_v32 = vadd.s32 272, %v4503_v49 }
 0x1d2   :  { %64 = vst.msk [vmem:[#allocation2 + $0x78] sm:$0xff] %vm48_vm11, %v4474_v62  ;;  %65 = vst.msk [vmem:[#allocation2 + $0x80] sm:$0xff] %vm48_vm11, %v4474_v62  ;;  %v2748_v38 = vadd.f32 %v2559_v57, %v2220_v54  ;;  %v1533_v26 = vmul.f32 1.442695, %v3718_v42  ;;  %v5654_v37 = vpop.eup %4234  ;;  %v3720_v1 = vadd.f32 -5.0, %v1138_v43  ;;  %v1776_v56 = vadd.f32 %v5076_v29, %v1775_v13  ;;  %v6164_v57 = vld [vmem:[#allocation22_spill] sm:$0xff] }
 0x1d3   :  { %66 = vst.msk [vmem:[#allocation2 + $0x88] sm:$0xff] %vm48_vm11, %v4474_v62  ;;  %67 = vst.msk [vmem:[#allocation2 + $0x90] sm:$0xff] %vm48_vm11, %v4474_v62  ;;  %1773 = vadd.xlane.f32.xlu1 %v1772_v31  ;;  %v2083_v29 = vadd.f32 %v5155_v46, %v5343_v58  ;;  %v3746_v42 = vadd.f32 -5.0, %v5299_v27  ;;  %v1141_v58 = vmul.f32 5.0, %v5264_v61 }
 0x1d4   :  { %68 = vst.msk [vmem:[#allocation2 + $0x98] sm:$0xff] %vm48_vm11, %v4474_v62  ;;  %69 = vst.msk [vmem:[#allocation2 + $0xa0] sm:$0xff] %vm48_vm11, %v4474_v62  ;;  %4248 = vpow2.f32 %v1533_v26  ;;  %v5665_v16 = vpop.eup %4236  ;;  %v1537_v60 = vmul.f32 1.442695, %v3720_v1 }
 0x1d5   :  { %70 = vst.msk [vmem:[#allocation2 + $0xa8] sm:$0xff] %vm48_vm11, %v4474_v62  ;;  %71 = vst.msk [vmem:[#allocation2 + $0xb0] sm:$0xff] %vm48_vm11, %v4474_v62  ;;  %v5658_v19 = vpop.xlane.xlu0 %1657  ;;  %4250 = vpow2.f32 %v1525_v55  ;;  %v5678_v55 = vmul.f32 5.0, %v5235_v34  ;;  %v6165_v34 = vld [vmem:[#allocation25_spill] sm:$0xff] }
 0x1d6   :  { %72 = vst.msk [vmem:[#allocation2 + $0xb8] sm:$0xff] %vm48_vm11, %v4474_v62  ;;  %73 = vst.msk [vmem:[#allocation2 + $0xc0] sm:$0xff] %vm48_vm11, %v4474_v62  ;;  %4252 = vpow2.f32 %v1531_v33 }
 0x1d7   :  { %74 = vst.msk [vmem:[#allocation2 + $0xc8] sm:$0xff] %vm48_vm11, %v4474_v62  ;;  %75 = vst.msk [vmem:[#allocation2 + $0xd0] sm:$0xff] %vm48_vm11, %v4474_v62  ;;  %v5684_v21 = vpop.eup %4238  ;;  %1777 = vadd.xlane.f32.xlu1 %v1776_v56  ;;  %4254 = vpow2.f32 %v1537_v60  ;;  %v3723_v56 = vadd.f32 -5.0, %v1141_v58 }
 0x1d8   :  { %76 = vst.msk [vmem:[#allocation2 + $0xd8] sm:$0xff] %vm48_vm11, %v4474_v62  ;;  %77 = vst.msk [vmem:[#allocation2 + $0xe0] sm:$0xff] %vm48_vm11, %v4474_v62 }
 0x1d9   :  { %78 = vst.msk [vmem:[#allocation2 + $0xe8] sm:$0xff] %vm48_vm11, %v4474_v62  ;;  %79 = vst.msk [vmem:[#allocation2 + $0xf0] sm:$0xff] %vm48_vm11, %v4474_v62  ;;  %v5682_v54 = vpop.xlane.xlu0 %2586  ;;  %v4241_v33 = vpop.eup %4240 }
 0x1da   :  { %80 = vst.msk [vmem:[#allocation2 + $0xf8] sm:$0xff] %vm48_vm11, %v4474_v62  ;;  %81 = vst.msk [vmem:[#allocation2 + $0x100] sm:$0xff] %vm48_vm11, %v4474_v62 }
 0x1db   :  { %82 = vst.msk [vmem:[#allocation2 + $0x108] sm:$0xff] %vm48_vm11, %v4474_v62  ;;  %83 = vst.msk [vmem:[#allocation2 + $0x110] sm:$0xff] %vm48_vm11, %v4474_v62 }
 0x1dc   :  { %84 = vst.msk [vmem:[#allocation2 + $0x118] sm:$0xff] %vm48_vm11, %v4474_v62  ;;  %85 = vst.msk [vmem:[#allocation2 + $0x120] sm:$0xff] %vm48_vm11, %v4474_v62 }
 0x1dd   :  { %86 = vst.msk [vmem:[#allocation2 + $0x128] sm:$0xff] %vm48_vm11, %v4474_v62  ;;  %87 = vst.msk [vmem:[#allocation2 + $0x130] sm:$0xff] %vm48_vm11, %v4474_v62 }
 0x1de   :  { %88 = vst.msk [vmem:[#allocation2 + $0x138] sm:$0xff] %vm48_vm11, %v4474_v62  ;;  %89 = vst.msk [vmem:[#allocation2 + $0x140] sm:$0xff] %vm48_vm11, %v4474_v62 }
 0x1df   :  { %90 = vst.msk [vmem:[#allocation2 + $0x148] sm:$0xff] %vm48_vm11, %v4474_v62  ;;  %91 = vst.msk [vmem:[#allocation2 + $0x150] sm:$0xff] %vm48_vm11, %v4474_v62 }
 0x1e0   :  { %92 = vst.msk [vmem:[#allocation2 + $0x158] sm:$0xff] %vm48_vm11, %v4474_v62  ;;  %93 = vst.msk [vmem:[#allocation2 + $0x160] sm:$0xff] %vm48_vm11, %v4474_v62 }
 0x1e1   :  { %94 = vst.msk [vmem:[#allocation2 + $0x168] sm:$0xff] %vm48_vm11, %v4474_v62  ;;  %95 = vst.msk [vmem:[#allocation2 + $0x170] sm:$0xff] %vm48_vm11, %v4474_v62 }
 0x1e2   :  { %96 = vst.msk [vmem:[#allocation2 + $0x178] sm:$0xff] %vm48_vm11, %v4474_v62  ;;  %98 = vst.msk [vmem:[#allocation3 + $0x8] sm:$0xff] %vm48_vm11, %v4474_v62 }
 0x1e3   :  { %99 = vst.msk [vmem:[#allocation3 + $0x10] sm:$0xff] %vm48_vm11, %v4474_v62  ;;  %100 = vst.msk [vmem:[#allocation3 + $0x18] sm:$0xff] %vm48_vm11, %v4474_v62 }
 0x1e4   :  { %101 = vst.msk [vmem:[#allocation3 + $0x20] sm:$0xff] %vm48_vm11, %v4474_v62  ;;  %102 = vst.msk [vmem:[#allocation3 + $0x28] sm:$0xff] %vm48_vm11, %v4474_v62 }
 0x1e5   :  { %103 = vst.msk [vmem:[#allocation3 + $0x30] sm:$0xff] %vm48_vm11, %v4474_v62  ;;  %104 = vst.msk [vmem:[#allocation3 + $0x38] sm:$0xff] %vm48_vm11, %v4474_v62 }
 0x1e6   :  { %105 = vst.msk [vmem:[#allocation3 + $0x40] sm:$0xff] %vm48_vm11, %v4474_v62  ;;  %106 = vst.msk [vmem:[#allocation3 + $0x48] sm:$0xff] %vm48_vm11, %v4474_v62 }
 0x1e7   :  { %107 = vst.msk [vmem:[#allocation3 + $0x50] sm:$0xff] %vm48_vm11, %v4474_v62  ;;  %108 = vst.msk [vmem:[#allocation3 + $0x58] sm:$0xff] %vm48_vm11, %v4474_v62 }
 0x1e8   :  { %109 = vst.msk [vmem:[#allocation3 + $0x60] sm:$0xff] %vm48_vm11, %v4474_v62  ;;  %110 = vst.msk [vmem:[#allocation3 + $0x68] sm:$0xff] %vm48_vm11, %v4474_v62 }
 0x1e9   :  { %111 = vst.msk [vmem:[#allocation3 + $0x70] sm:$0xff] %vm48_vm11, %v4474_v62  ;;  %112 = vst.msk [vmem:[#allocation3 + $0x78] sm:$0xff] %vm48_vm11, %v4474_v62  ;;  %v2221_v4 = vld [vmem:[#allocation3 + $0x8] sm:$0xff] }
 0x1ea   :  { %113 = vst.msk [vmem:[#allocation3 + $0x80] sm:$0xff] %vm48_vm11, %v4474_v62  ;;  %114 = vst.msk [vmem:[#allocation3 + $0x88] sm:$0xff] %vm48_vm11, %v4474_v62  ;;  %v2749_v44 = vadd.f32 %v5220_v48, %v2221_v4  ;;  %v2222_v10 = vld [vmem:[#allocation3 + $0x10] sm:$0xff]  ;;  %v2223_v9 = vld [vmem:[#allocation3 + $0x18] sm:$0xff]  ;;  %v1139_v48 = vmul.f32 5.0, %v5247_v24  ;;  %v1779_v24 = vadd.f32 %v5665_v16, %v5654_v37  ;;  %v1968_v4 = vadd.f32 %v5388_v63, %v1967_v18 }
 0x1eb   :  { %115 = vst.msk [vmem:[#allocation3 + $0x90] sm:$0xff] %vm48_vm11, %v4474_v62  ;;  %116 = vst.msk [vmem:[#allocation3 + $0x98] sm:$0xff] %vm48_vm11, %v4474_v62  ;;  %v2750_v39 = vadd.f32 %v5245_v14, %v2222_v10  ;;  %v2751_v35 = vadd.f32 %v5281_v3, %v2223_v9  ;;  %v2224_v31 = vld [vmem:[#allocation3 + $0x20] sm:$0xff]  ;;  %v2020_v3 = vadd.f32 %v5355_v11, %v2019_v30  ;;  %v6166_v11 = vld [vmem:[#allocation19_spill] sm:$0xff]  ;;  %v5702_v9 = vpop.eup %4242 }
 0x1ec   :  { %117 = vst.msk [vmem:[#allocation3 + $0xa0] sm:$0xff] %vm48_vm11, %v4474_v62  ;;  %118 = vst.msk [vmem:[#allocation3 + $0xa8] sm:$0xff] %vm48_vm11, %v4474_v62  ;;  %v3721_v51 = vadd.f32 -5.0, %v1139_v48  ;;  %v1780_v13 = vadd.f32 %v5098_v52, %v1779_v24  ;;  %v1142_v63 = vmul.f32 5.0, %v6166_v11  ;;  %v2752_v30 = vadd.f32 %v5315_v23, %v2224_v31  ;;  %v2225_v26 = vld [vmem:[#allocation3 + $0x28] sm:$0xff]  ;;  %v6167_v10 = vld [vmem:[#allocation42_spill] sm:$0xff] }
 0x1ed   :  { %119 = vst.msk [vmem:[#allocation3 + $0xb0] sm:$0xff] %vm48_vm11, %v4474_v62  ;;  %120 = vst.msk [vmem:[#allocation3 + $0xb8] sm:$0xff] %vm48_vm11, %v4474_v62  ;;  %v2084_v1 = vadd.f32 %v6167_v10, %v2083_v29  ;;  %v1783_v52 = vadd.f32 %v4241_v33, %v5684_v21  ;;  %v1969_v18 = vadd.f32 %v5609_v47, %v1968_v4  ;;  %v1603_v23 = vld [vmem:[#allocation2] sm:$0xff]  ;;  %v5714_v47 = vadd.f32 -5.0, %v5678_v55  ;;  %v2226_v11 = vld [vmem:[#allocation3 + $0x30] sm:$0xff] }
 0x1ee   :  { %121 = vst.msk [vmem:[#allocation3 + $0xc0] sm:$0xff] %vm48_vm11, %v4474_v62  ;;  %122 = vst.msk [vmem:[#allocation3 + $0xc8] sm:$0xff] %vm48_vm11, %v4474_v62  ;;  %1781 = vadd.xlane.f32.xlu1 %v1780_v13  ;;  %v2753_v29 = vadd.f32 %v5353_v25, %v2225_v26  ;;  %v6171_v31 = vld [vmem:[#allocation20_spill] sm:$0xff]  ;;  %v1843_v25 = vadd.f32 %v5386_v59, %v1603_v23  ;;  %v1147_v26 = vmul.f32 5.0, %v5321_v2  ;;  %v1151_v2 = vmul.f32 5.0, %v5377_v28 }
 0x1ef   :  { %123 = vst.msk [vmem:[#allocation3 + $0xd0] sm:$0xff] %vm48_vm11, %v4474_v62  ;;  %124 = vst.msk [vmem:[#allocation3 + $0xd8] sm:$0xff] %vm48_vm11, %v4474_v62  ;;  %v6172_v13 = vld [vmem:[#allocation44_spill] sm:$0xff]  ;;  %v1153_v28 = vmul.f32 5.0, %v5607_v50 }
 0x1f0   :  { %125 = vst.msk [vmem:[#allocation3 + $0xe0] sm:$0xff] %vm48_vm11, %v4474_v62  ;;  %126 = vst.msk [vmem:[#allocation3 + $0xe8] sm:$0xff] %vm48_vm11, %v4474_v62  ;;  %v6173_v59 = vld [vmem:[#allocation36_spill] sm:$0xff] }
 0x1f1   :  { %127 = vst.msk [vmem:[#allocation3 + $0xf0] sm:$0xff] %vm48_vm11, %v4474_v62  ;;  %128 = vst.msk [vmem:[#allocation3 + $0xf8] sm:$0xff] %vm48_vm11, %v4474_v62  ;;  %v6175_v50 = vld [vmem:[#allocation40_spill] sm:$0xff] }
 0x1f2   :  { %129 = vst.msk [vmem:[#allocation3 + $0x100] sm:$0xff] %vm48_vm11, %v4474_v62  ;;  %130 = vst.msk [vmem:[#allocation3 + $0x108] sm:$0xff] %vm48_vm11, %v4474_v62 }
 0x1f3   :  { %131 = vst.msk [vmem:[#allocation3 + $0x110] sm:$0xff] %vm48_vm11, %v4474_v62  ;;  %132 = vst.msk [vmem:[#allocation3 + $0x118] sm:$0xff] %vm48_vm11, %v4474_v62 }
 0x1f4   :  { %133 = vst.msk [vmem:[#allocation3 + $0x120] sm:$0xff] %vm48_vm11, %v4474_v62  ;;  %134 = vst.msk [vmem:[#allocation3 + $0x128] sm:$0xff] %vm48_vm11, %v4474_v62 }
 0x1f5   :  { %135 = vst.msk [vmem:[#allocation3 + $0x130] sm:$0xff] %vm48_vm11, %v4474_v62  ;;  %136 = vst.msk [vmem:[#allocation3 + $0x138] sm:$0xff] %vm48_vm11, %v4474_v62 }
 0x1f6   :  { %137 = vst.msk [vmem:[#allocation3 + $0x140] sm:$0xff] %vm48_vm11, %v4474_v62  ;;  %138 = vst.msk [vmem:[#allocation3 + $0x148] sm:$0xff] %vm48_vm11, %v4474_v62 }
 0x1f7   :  { %139 = vst.msk [vmem:[#allocation3 + $0x150] sm:$0xff] %vm48_vm11, %v4474_v62  ;;  %140 = vst.msk [vmem:[#allocation3 + $0x158] sm:$0xff] %vm48_vm11, %v4474_v62 }
 0x1f8   :  { %141 = vst.msk [vmem:[#allocation3 + $0x160] sm:$0xff] %vm48_vm11, %v4474_v62  ;;  %142 = vst.msk [vmem:[#allocation3 + $0x168] sm:$0xff] %vm48_vm11, %v4474_v62 }
 0x1f9   :  { %143 = vst.msk [vmem:[#allocation3 + $0x170] sm:$0xff] %vm48_vm11, %v4474_v62  ;;  %144 = vst.msk [vmem:[#allocation3 + $0x178] sm:$0xff] %vm48_vm11, %v4474_v62  ;;  %v5646_v62 = vadd.s32 256, %v6163_v53  ;;  %v1539_v53 = vmul.f32 1.442695, %v3721_v51 }
 0x1fa   :  { %2796 = vst.msk [vmem:[#allocation3] sm:$0xff] %vm48_vm11, %v2748_v38  ;;  %2797 = vst.msk [vmem:[#allocation3 + $0x8] sm:$0xff] %vm48_vm11, %v2749_v44  ;;  %v2151_v38 = vadd.s32 288, %v4503_v49  ;;  %v2021_v44 = vadd.f32 %v5398_v5, %v2020_v3  ;;  %v1589_v5 = vmul.f32 1.442695, %v3746_v42  ;;  %v3724_v42 = vadd.f32 -5.0, %v1142_v63 }
 0x1fb   :  { %vm2366_vm14 = vcmp.eq.s32.totalorder %v2147_v20, %v5646_v62  ;;  %2798 = vst.msk [vmem:[#allocation3 + $0x10] sm:$0xff] %vm48_vm11, %v2750_v39  ;;  %v5673_v20 = vpop.f32.mrf.mxu0  ;;  %vm2372_vm15 = vcmp.eq.s32.totalorder %v2149_v32, %v5646_v62  ;;  %2799 = vst.msk [vmem:[#allocation3 + $0x18] sm:$0xff] %vm48_vm11, %v2751_v35  ;;  %4256 = vpow2.f32 %v1539_v53  ;;  %v1583_v39 = vmul.f32 1.442695, %v5297_v41  ;;  %v6168_v41 = vld [vmem:[#allocation29_spill] sm:$0xff]  ;;  %v6169_v32 = vld [vmem:[#allocation47_spill] sm:$0xff] }
 0x1fc   :  { %v2510_v14 = vsel %vm2366_vm14, %v6164_v57, 0.0  ;;  %v2516_v43 = vsel %vm2372_vm15, %v6165_v34, 0.0  ;;  %vm2378_vm0 = vcmp.eq.s32.totalorder %v2151_v38, %v5646_v62  ;;  %v2022_v48 = vadd.f32 %v5404_v45, %v2021_v44  ;;  %2800 = vst.msk [vmem:[#allocation3 + $0x20] sm:$0xff] %vm48_vm11, %v2752_v30  ;;  %v5707_v57 = vpop.xlane.xlu0 %2590  ;;  %v6170_v35 = vld [vmem:[#allocation35_spill] sm:$0xff]  ;;  %2801 = vst.msk [vmem:[#allocation3 + $0x28] sm:$0xff] %vm48_vm11, %v2753_v29  ;;  %v1662_v34 = vpop.xlane.xlu1 %1661 }
 0x1fd   :  { %2686 = vadd.xlane.f32.xlu0 %v2510_v14  ;;  %v5696_v61 = vpop.f32.mrf.mxu0  ;;  %v4245_v14 = vpop.eup %4244  ;;  %v2522_v60 = vsel %vm2378_vm0, %v6168_v41, 0.0  ;;  %v1144_v51 = vmul.f32 5.0, %v6169_v32  ;;  %v1784_v24 = vadd.f32 %v6170_v35, %v1783_v52  ;;  %v1970_v45 = vadd.f32 %v5641_v8, %v1969_v18  ;;  %1892 = vst.msk [vmem:[#allocation2] sm:$0xff] %vm48_vm11, %v1843_v25  ;;  %v1605_v32 = vld [vmem:[#allocation2 + $0x10] sm:$0xff]  ;;  %v1604_v35 = vld [vmem:[#allocation2 + $0x8] sm:$0xff] }
 0x1fe   :  { %v1145_v3 = vmul.f32 5.0, %v6171_v31  ;;  %4258 = vpow2.f32 %v1583_v39  ;;  %v2023_v53 = vadd.f32 %v5630_v7, %v2022_v48  ;;  %v1787_v58 = vadd.f32 %v4245_v14, %v5702_v9 }
 0x1ff   :  { %v5718_v4 = vpop.f32.mrf.mxu0  ;;  %v5727_v8 = vadd.f32 %v6172_v13, %v2084_v1  ;;  %4260 = vpow2.f32 %v1589_v5  ;;  %v1971_v38 = vadd.f32 %v5665_v16, %v1970_v45  ;;  %v1543_v44 = vmul.f32 1.442695, %v3723_v56  ;;  %1785 = vadd.xlane.f32.xlu1 %v1784_v24  ;;  %v6174_v45 = vld [vmem:[#allocation38_spill] sm:$0xff] }
 0x200   :  { %v2024_v7 = vadd.f32 %v5654_v37, %v2023_v53  ;;  %v3726_v30 = vadd.f32 -5.0, %v1144_v51  ;;  %v1788_v39 = vadd.f32 %v6173_v59, %v1787_v58  ;;  %v1545_v18 = vmul.f32 1.442695, %v3724_v42  ;;  %v5739_v56 = vpop.xlane.xlu0 %2594  ;;  %v1666_v42 = vpop.xlane.xlu1 %1665 }
 0x201   :  { %2694 = vadd.xlane.f32.xlu0 %v2516_v43  ;;  %v5724_v43 = vpop.eup %4246  ;;  %v1972_v1 = vadd.f32 %v4241_v33, %v1971_v38  ;;  %v3727_v5 = vadd.f32 -5.0, %v1145_v3  ;;  %v1148_v16 = vmul.f32 5.0, %v5334_v12  ;;  %v5737_v48 = vpop.f32.mrf.mxu0  ;;  %v1150_v37 = vmul.f32 5.0, %v5360_v36 }
 0x202   :  { %v5730_v63 = vpop.eup %4248  ;;  %v2025_v33 = vadd.f32 %v5684_v21, %v2024_v7  ;;  %4262 = vpow2.f32 %v1543_v44  ;;  %v1549_v24 = vmul.f32 1.442695, %v3726_v30  ;;  %v3729_v29 = vadd.f32 -5.0, %v1147_v26 }
 0x203   :  { %v4251_v52 = vpop.eup %4250  ;;  %v1973_v51 = vadd.f32 %v4245_v14, %v1972_v1  ;;  %1789 = vadd.xlane.f32.xlu1 %v1788_v39  ;;  %v1551_v21 = vmul.f32 1.442695, %v3727_v5  ;;  %v3730_v14 = vadd.f32 -5.0, %v1148_v16  ;;  %v1154_v3 = vmul.f32 5.0, %v5638_v22  ;;  %v789_v58 = vpop.f32.mrf.mxu0 }
 0x204   :  { %v5741_v23 = vpop.eup %4252  ;;  %v1791_v41 = vadd.f32 %v4251_v52, %v5724_v43  ;;  %v1845_v53 = vadd.f32 %v1662_v34, %v1605_v32  ;;  %4264 = vpow2.f32 %v1545_v18  ;;  %v3732_v38 = vadd.f32 -5.0, %v1150_v37  ;;  %v2227_v34 = vld [vmem:[#allocation3 + $0x38] sm:$0xff]  ;;  %v5764_v59 = vpop.xlane.xlu0 %1669 }
 0x205   :  { %2702 = vadd.xlane.f32.xlu0 %v2522_v60  ;;  %v2754_v60 = vadd.f32 %v5628_v40, %v2226_v11  ;;  %v1795_v12 = vadd.f32 %v5741_v23, %v5730_v63  ;;  %v1606_v40 = vld [vmem:[#allocation2 + $0x18] sm:$0xff]  ;;  %v5753_v31 = vpop.eup %4254  ;;  %v3733_v44 = vadd.f32 -5.0, %v1151_v2  ;;  %v1844_v11 = vadd.f32 %v5658_v19, %v1604_v35  ;;  %v793_v37 = vpop.f32.mrf.mxu0 }
 0x206   :  { %v1792_v36 = vadd.f32 %v6174_v45, %v1791_v41  ;;  %1894 = vst.msk [vmem:[#allocation2 + $0x10] sm:$0xff] %vm48_vm11, %v1845_v53  ;;  %v1156_v30 = vmul.f32 5.0, %v5652_v6  ;;  %v1846_v22 = vadd.f32 %v1666_v42, %v1606_v40  ;;  %v2026_v39 = vadd.f32 %v5702_v9, %v2025_v33  ;;  %v2228_v6 = vld [vmem:[#allocation3 + $0x40] sm:$0xff] }
 0x207   :  { %2802 = vst.msk [vmem:[#allocation3 + $0x30] sm:$0xff] %vm48_vm11, %v2754_v60  ;;  %v1796_v7 = vadd.f32 %v6175_v50, %v1795_v12  ;;  %4266 = vpow2.f32 %v1549_v24  ;;  %v1555_v1 = vmul.f32 1.442695, %v3729_v29  ;;  %v3735_v18 = vadd.f32 -5.0, %v1153_v28  ;;  %1893 = vst.msk [vmem:[#allocation2 + $0x8] sm:$0xff] %vm48_vm11, %v1844_v11 }
 0x208   :  { %v5756_v25 = vpop.eup %4256  ;;  %1793 = vadd.xlane.f32.xlu1 %v1792_v36  ;;  %v1974_v19 = vadd.f32 %v4251_v52, %v1973_v51  ;;  %4268 = vpow2.f32 %v1551_v21  ;;  %v1557_v5 = vmul.f32 1.442695, %v3730_v14  ;;  %v3736_v16 = vadd.f32 -5.0, %v1154_v3  ;;  %1895 = vst.msk [vmem:[#allocation2 + $0x18] sm:$0xff] %vm48_vm11, %v1846_v22  ;;  %v795_v36 = vpop.f32.mrf.mxu0  ;;  %v1608_v21 = vld [vmem:[#allocation2 + $0x28] sm:$0xff] }
 0x209   :  { %v1799_v26 = vadd.f32 %v5756_v25, %v5753_v31  ;;  %v1561_v2 = vmul.f32 1.442695, %v3732_v38  ;;  %v1563_v41 = vmul.f32 1.442695, %v3733_v44  ;;  %v1157_v60 = vmul.f32 5.0, %v5673_v20  ;;  %v2229_v44 = vld [vmem:[#allocation3 + $0x48] sm:$0xff] }
 0x20a   :  { %v2755_v32 = vadd.f32 %v5682_v54, %v2227_v34  ;;  %v3738_v33 = vadd.f32 -5.0, %v1156_v30  ;;  %v1159_v52 = vmul.f32 5.0, %v5696_v61  ;;  %v2142_v51 = vadd.s32 216, %v4503_v49  ;;  %v5783_v61 = vpop.xlane.xlu0 %2598  ;;  %v797_v11 = vpop.f32.mrf.mxu0  ;;  %v1607_v34 = vld [vmem:[#allocation2 + $0x20] sm:$0xff] }
 0x20b   :  { %v5771_v9 = vpop.eup %4258  ;;  %v1800_v12 = vadd.f32 %v5224_v0, %v1799_v26  ;;  %4270 = vpow2.f32 %v1555_v1  ;;  %v1567_v24 = vmul.f32 1.442695, %v3735_v18  ;;  %v1160_v20 = vmul.f32 5.0, %v5718_v4 }
 0x20c   :  { %1797 = vadd.xlane.f32.xlu1 %v1796_v7  ;;  %v5776_v35 = vpop.eup %4260  ;;  %2803 = vst.msk [vmem:[#allocation3 + $0x38] sm:$0xff] %vm48_vm11, %v2755_v32  ;;  %v2756_v54 = vadd.f32 %v5707_v57, %v2228_v6  ;;  %v2027_v29 = vadd.f32 %v5724_v43, %v2026_v39  ;;  %4272 = vpow2.f32 %v1557_v5  ;;  %v1569_v45 = vmul.f32 1.442695, %v3736_v16  ;;  %v1674_v43 = vpop.xlane.xlu1 %1673  ;;  %v6176_v7 = vld [vmem:[#allocation43_spill] sm:$0xff] }
 0x20d   :  { %v1162_v0 = vmul.f32 5.0, %v5737_v48  ;;  %v1975_v28 = vadd.f32 %v5741_v23, %v1974_v19  ;;  %4274 = vpow2.f32 %v1561_v2  ;;  %v3739_v42 = vadd.f32 -5.0, %v1157_v60  ;;  %v799_v32 = vpop.f32.mrf.mxu0 }
 0x20e   :  { %2804 = vst.msk [vmem:[#allocation3 + $0x40] sm:$0xff] %vm48_vm11, %v2756_v54  ;;  %v1163_v40 = vmul.f32 5.0, %v789_v58  ;;  %4276 = vpow2.f32 %v1563_v41  ;;  %v1573_v4 = vmul.f32 1.442695, %v3738_v33  ;;  %v3741_v57 = vadd.f32 -5.0, %v1159_v52  ;;  %v2603_v1 = vpop.xlane.xlu0 %2602 }
 0x20f   :  { %vm2350_vm1 = vcmp.eq.s32.totalorder %v2142_v51, %v5009_v15  ;;  %v5788_v14 = vpop.eup %4262  ;;  %v5792_v48 = vadd.f32 %v5323_v17, %v5727_v8  ;;  %4278 = vpow2.f32 %v1567_v24  ;;  %v3742_v23 = vadd.f32 -5.0, %v1160_v20  ;;  %v1610_v24 = vld [vmem:[#allocation2 + $0x38] sm:$0xff]  ;;  %v2230_v20 = vld [vmem:[#allocation3 + $0x50] sm:$0xff] }
 0x210   :  { %1801 = vadd.xlane.f32.xlu1 %v1800_v12  ;;  %v2144_v3 = vadd.s32 232, %v4503_v49  ;;  %v2028_v53 = vadd.f32 %v5730_v63, %v2027_v29  ;;  %v1976_v58 = vadd.f32 %v5753_v31, %v1975_v28  ;;  %4280 = vpow2.f32 %v1569_v45  ;;  %v6177_v12 = vld [vmem:[#allocation17_spill] sm:$0xff]  ;;  %v1682_v51 = vpop.xlane.xlu1 %1681 }
 0x211   :  { %v3744_v38 = vadd.f32 -5.0, %v1162_v0  ;;  %v1575_v50 = vmul.f32 1.442695, %v3739_v42  ;;  %v2494_v30 = vsel %vm2350_vm1, %v6176_v7, 0.0  ;;  %v3745_v26 = vadd.f32 -5.0, %v1163_v40  ;;  %v5798_v8 = vpop.eup %4264 }
 0x212   :  { %v1848_v22 = vadd.f32 %v1674_v43, %v1608_v21  ;;  %4282 = vpow2.f32 %v1573_v4  ;;  %v1579_v39 = vmul.f32 1.442695, %v3741_v57  ;;  %vm2356_vm2 = vcmp.eq.s32.totalorder %v2144_v3, %v5009_v15  ;;  %v1678_v4 = vpop.xlane.xlu0 %1677  ;;  %v6178_v21 = vld [vmem:[#allocation49_spill] sm:$0xff] }
 0x213   :  { %v1165_v63 = vmul.f32 5.0, %v793_v37  ;;  %v1581_v31 = vmul.f32 1.442695, %v3742_v23  ;;  %v2757_v18 = vadd.f32 %v5739_v56, %v2229_v44  ;;  %v1166_v19 = vmul.f32 5.0, %v795_v36 }
 0x214   :  { %2666 = vadd.xlane.f32.xlu1 %v2494_v30  ;;  %1897 = vst.msk [vmem:[#allocation2 + $0x28] sm:$0xff] %vm48_vm11, %v1848_v22  ;;  %v2146_v5 = vadd.s32 248, %v4503_v49  ;;  %v5804_v16 = vpop.eup %4266  ;;  %v1585_v6 = vmul.f32 1.442695, %v3744_v38  ;;  %v1168_v41 = vmul.f32 5.0, %v797_v11  ;;  %v1847_v60 = vadd.f32 %v5764_v59, %v1607_v34  ;;  %v2231_v38 = vld [vmem:[#allocation3 + $0x58] sm:$0xff]  ;;  %v1690_v44 = vpop.xlane.xlu1 %1689 }
 0x215   :  { %v3747_v2 = vadd.f32 -5.0, %v1165_v63  ;;  %v5807_v33 = vpop.eup %4268  ;;  %4284 = vpow2.f32 %v1575_v50  ;;  %v1587_v37 = vmul.f32 1.442695, %v3745_v26  ;;  %v2500_v52 = vsel %vm2356_vm2, %v6177_v12, 0.0  ;;  %2805 = vst.msk [vmem:[#allocation3 + $0x48] sm:$0xff] %vm48_vm11, %v2757_v18  ;;  %v1612_v11 = vld [vmem:[#allocation2 + $0x48] sm:$0xff] }
 0x216   :  { %v3748_v56 = vadd.f32 -5.0, %v1166_v19  ;;  %4286 = vpow2.f32 %v1579_v39  ;;  %vm2362_vm3 = vcmp.eq.s32.totalorder %v2146_v5, %v5009_v15  ;;  %v3750_v59 = vadd.f32 -5.0, %v1168_v41  ;;  %1896 = vst.msk [vmem:[#allocation2 + $0x20] sm:$0xff] %vm48_vm11, %v1847_v60  ;;  %v1609_v39 = vld [vmem:[#allocation2 + $0x30] sm:$0xff]  ;;  %v2607_v63 = vpop.xlane.xlu0 %2606  ;;  %v6180_v5 = vld [vmem:[#allocation45_spill] sm:$0xff] }
 0x217   :  { %v1591_v54 = vmul.f32 1.442695, %v3747_v2  ;;  %4288 = vpow2.f32 %v1581_v31  ;;  %v1169_v45 = vmul.f32 5.0, %v799_v32  ;;  %v2148_v0 = vadd.s32 264, %v4503_v49  ;;  %v6179_v18 = vld [vmem:[#allocation18_spill] sm:$0xff] }
 0x218   :  { %2674 = vadd.xlane.f32.xlu1 %v2500_v52  ;;  %v1593_v29 = vmul.f32 1.442695, %v3748_v56  ;;  %v5816_v36 = vpop.eup %4270  ;;  %4290 = vpow2.f32 %v1585_v6  ;;  %v1597_v28 = vmul.f32 1.442695, %v3750_v59  ;;  %v1850_v42 = vadd.f32 %v1682_v51, %v1610_v24  ;;  %v6181_v6 = vld [vmem:[#allocation24_spill] sm:$0xff]  ;;  %v6183_v24 = vld [vmem:[#allocation26_spill] sm:$0xff]  ;;  %v1698_v59 = vpop.xlane.xlu1 %1697 }
 0x219   :  { %v2758_v40 = vadd.f32 %v5783_v61, %v2230_v20  ;;  %v5819_v57 = vpop.eup %4272  ;;  %v2029_v43 = vadd.f32 %v5756_v25, %v2028_v53  ;;  %4292 = vpow2.f32 %v1587_v37  ;;  %v2506_v23 = vsel %vm2362_vm3, %v6178_v21, 0.0  ;;  %v6182_v52 = vld [vmem:[#allocation48_spill] sm:$0xff] }
 0x21a   :  { %v3751_v3 = vadd.f32 -5.0, %v1169_v45  ;;  %v5825_v50 = vpop.eup %4274  ;;  %v1977_v7 = vadd.f32 %v5788_v14, %v1976_v58  ;;  %4294 = vpow2.f32 %v1591_v54  ;;  %vm2369_vm4 = vcmp.eq.s32.totalorder %v2148_v0, %v5646_v62  ;;  %1899 = vst.msk [vmem:[#allocation2 + $0x38] sm:$0xff] %vm48_vm11, %v1850_v42  ;;  %v2611_v45 = vpop.xlane.xlu0 %2610  ;;  %v2233_v42 = vld [vmem:[#allocation3 + $0x68] sm:$0xff] }
 0x21b   :  { %2806 = vst.msk [vmem:[#allocation3 + $0x50] sm:$0xff] %vm48_vm11, %v2758_v40  ;;  %v2150_v25 = vadd.s32 280, %v4503_v49  ;;  %v5832_v15 = vpop.eup %4276  ;;  %v1601_v61 = vmul.f32 1.442695, %v5714_v47  ;;  %v2030_v53 = vadd.f32 %v5798_v8, %v2029_v43  ;;  %4296 = vpow2.f32 %v1593_v29  ;;  %v1614_v29 = vld [vmem:[#allocation2 + $0x58] sm:$0xff] }
 0x21c   :  { %2682 = vadd.xlane.f32.xlu1 %v2506_v23  ;;  %v1599_v30 = vmul.f32 1.442695, %v3751_v3  ;;  %v5836_v26 = vpop.eup %4278  ;;  %v1978_v58 = vadd.f32 %v5804_v16, %v1977_v7  ;;  %4298 = vpow2.f32 %v1597_v28  ;;  %v2759_v22 = vadd.f32 %v2603_v1, %v2231_v38  ;;  %v6184_v7 = vld [vmem:[#allocation32_spill] sm:$0xff] }
 0x21d   :  { %v1852_v34 = vadd.f32 %v1690_v44, %v1612_v11  ;;  %v5839_v31 = vpop.eup %4280  ;;  %v2087_v19 = vadd.f32 %v6179_v18, %v5792_v48  ;;  %4300 = vpow2.f32 %v6180_v5  ;;  %v2031_v47 = vadd.f32 %v5807_v33, %v2030_v53  ;;  %v2232_v48 = vld [vmem:[#allocation3 + $0x60] sm:$0xff] }
 0x21e   :  { %v2513_v2 = vsel %vm2369_vm4, %v6181_v6, 0.0  ;;  %v1979_v41 = vadd.f32 %v5816_v36, %v1978_v58  ;;  %4302 = vpow2.f32 %v1599_v30  ;;  %vm2375_vm5 = vcmp.eq.s32.totalorder %v2150_v25, %v5646_v62  ;;  %2807 = vst.msk [vmem:[#allocation3 + $0x58] sm:$0xff] %vm48_vm11, %v2759_v22  ;;  %v1611_v53 = vld [vmem:[#allocation2 + $0x40] sm:$0xff] }
 0x21f   :  { %v5852_v1 = vadd.s32 296, %v4503_v49  ;;  %1901 = vst.msk [vmem:[#allocation2 + $0x48] sm:$0xff] %vm48_vm11, %v1852_v34  ;;  %v5855_v60 = vpop.eup %4282  ;;  %4304 = vpow2.f32 %v1601_v61  ;;  %v2032_v32 = vadd.f32 %v5819_v57, %v2031_v47  ;;  %v1849_v37 = vadd.f32 %v1678_v4, %v1609_v39  ;;  %v1686_v34 = vpop.xlane.xlu0 %1685 }
 0x220   :  { %2690 = vadd.xlane.f32.xlu1 %v2513_v2  ;;  %v1980_v12 = vadd.f32 %v5825_v50, %v1979_v41  ;;  %v2088_v56 = vadd.f32 %v6182_v52, %v2087_v19  ;;  %v2519_v20 = vsel %vm2375_vm5, %v6183_v24, 0.0  ;;  %v2760_v54 = vadd.f32 %v2607_v63, %v2232_v48 }
 0x221   :  { %v2033_v51 = vadd.f32 %v5832_v15, %v2032_v32  ;;  %1898 = vst.msk [vmem:[#allocation2 + $0x30] sm:$0xff] %vm48_vm11, %v1849_v37  ;;  %vm2381_vm6 = vcmp.eq.s32.totalorder %v5852_v1, %v5646_v62  ;;  %v1803_v23 = vadd.f32 %v5798_v8, %v5788_v14  ;;  %v1854_v3 = vadd.f32 %v1698_v59, %v1614_v29 }
 0x222   :  { %v5863_v0 = vpop.eup %4284  ;;  %v1981_v28 = vadd.f32 %v5836_v26, %v1980_v12  ;;  %2808 = vst.msk [vmem:[#allocation3 + $0x60] sm:$0xff] %vm48_vm11, %v2760_v54  ;;  %v2089_v44 = vadd.f32 %v5771_v9, %v2088_v56  ;;  %v2525_v25 = vsel %vm2381_vm6, %v6184_v7, 0.0  ;;  %v2761_v61 = vadd.f32 %v2611_v45, %v2233_v42  ;;  %v1706_v12 = vpop.xlane.xlu1 %1705  ;;  %v1617_v42 = vld [vmem:[#allocation2 + $0x70] sm:$0xff]  ;;  %v2847_v7 = vld [vmem:[#allocation2] sm:$0xff] }
 0x223   :  { %v4287_v40 = vpop.eup %4286  ;;  %v2034_v4 = vadd.f32 %v5839_v31, %v2033_v51  ;;  %v1811_v22 = vadd.f32 %v5819_v57, %v5816_v36  ;;  %1903 = vst.msk [vmem:[#allocation2 + $0x58] sm:$0xff] %vm48_vm11, %v1854_v3  ;;  %v1804_v19 = vadd.f32 %v5155_v46, %v1803_v23  ;;  %v1851_v5 = vadd.f32 %v1686_v34, %v1611_v53  ;;  %v1616_v36 = vld [vmem:[#allocation2 + $0x68] sm:$0xff]  ;;  %v1694_v59 = vpop.xlane.xlu0 %1693  ;;  %v1615_v23 = vld [vmem:[#allocation2 + $0x60] sm:$0xff]  ;;  %v1618_v34 = vld [vmem:[#allocation2 + $0x78] sm:$0xff] }
 0x224   :  { %2698 = vadd.xlane.f32.xlu1 %v2519_v20  ;;  %v4289_v43 = vpop.eup %4288  ;;  %v1982_v21 = vadd.f32 %v5855_v60, %v1981_v28  ;;  %2809 = vst.msk [vmem:[#allocation3 + $0x68] sm:$0xff] %vm48_vm11, %v2761_v61  ;;  %v2090_v6 = vadd.f32 %v5776_v35, %v2089_v44  ;;  %v5892_v57 = vadd.f32 %v5807_v33, %v5804_v16  ;;  %v1613_v33 = vld [vmem:[#allocation2 + $0x50] sm:$0xff]  ;;  %vm3366_vm13 = vcmp.lt.s32.totalorder %v5852_v1, 300 }
 0x225   :  { %v5873_v38 = vpop.eup %4290  ;;  %v2035_v11 = vadd.f32 %v5863_v0, %v2034_v4  ;;  %v1812_v48 = vadd.f32 %v6172_v13, %v1811_v22  ;;  %v1819_v32 = vadd.f32 %v5839_v31, %v5836_v26  ;;  %1900 = vst.msk [vmem:[#allocation2 + $0x40] sm:$0xff] %vm48_vm11, %v1851_v5  ;;  %v1856_v24 = vadd.f32 %v1706_v12, %v1616_v36  ;;  %v1649_v1 = vld [vmem:[#allocation2 + $0x170] sm:$0xff] }
 0x226   :  { %v5878_v30 = vpop.eup %4292  ;;  %v1983_v58 = vadd.f32 %v4287_v40, %v1982_v21  ;;  %v1827_v26 = vadd.f32 %v4289_v43, %v4287_v40  ;;  %v1853_v28 = vadd.f32 %v1694_v59, %v1613_v33  ;;  %v2848_v21 = vld [vmem:[#allocation2 + $0x8] sm:$0xff]  ;;  %v1710_v40 = vpop.xlane.xlu1 %1709 }
 0x227   :  { %v4295_v14 = vpop.eup %4294  ;;  %v2036_v8 = vadd.f32 %v4289_v43, %v2035_v11  ;;  %v1820_v13 = vadd.f32 %v6179_v18, %v1819_v32  ;;  %1905 = vst.msk [vmem:[#allocation2 + $0x68] sm:$0xff] %vm48_vm11, %v1856_v24  ;;  %v1702_v61 = vpop.xlane.xlu0 %1701  ;;  %v3754_v22 = vadd.f32 -0.5659875, %v2848_v21 }
 0x228   :  { %2706 = vadd.xlane.f32.xlu1 %v2525_v25  ;;  %v4297_v39 = vpop.eup %4296  ;;  %v1984_v63 = vadd.f32 %v5873_v38, %v1983_v58  ;;  %v1828_v11 = vadd.f32 %v5771_v9, %v1827_v26  ;;  %1902 = vst.msk [vmem:[#allocation2 + $0x50] sm:$0xff] %vm48_vm11, %v1853_v28  ;;  %v1857_v25 = vadd.f32 %v1710_v40, %v1617_v42  ;;  %v2849_v9 = vld [vmem:[#allocation2 + $0x10] sm:$0xff]  ;;  %v1619_v26 = vld [vmem:[#allocation2 + $0x80] sm:$0xff] }
 0x229   :  { %v5886_v47 = vpop.eup %4298  ;;  %v2037_v2 = vadd.f32 %v5878_v30, %v2036_v8  ;;  %v1835_v18 = vadd.f32 %v4297_v39, %v4295_v14  ;;  %v1855_v8 = vadd.f32 %v1702_v61, %v1615_v23  ;;  %4306 = vlog2.f32 %v3754_v22  ;;  %v6185_v28 = vld [vmem:[#allocation28_spill] sm:$0xff] }
 0x22a   :  { %v4301_v41 = vpop.eup %4300  ;;  %v1985_v46 = vadd.f32 %v4295_v14, %v1984_v63  ;;  %1906 = vst.msk [vmem:[#allocation2 + $0x70] sm:$0xff] %vm48_vm11, %v1857_v25  ;;  %v2153_v14 = vadd.s32 304, %v4503_v49  ;;  %v1714_v36 = vpop.xlane.xlu1 %1713  ;;  %v3755_v24 = vadd.f32 -0.5659875, %v2849_v9  ;;  %v2236_v40 = vld [vmem:[#allocation3 + $0x80] sm:$0xff]  ;;  %v2155_v61 = vadd.s32 320, %v4503_v49 }
 0x22b   :  { %v5898_v37 = vpop.eup %4302  ;;  %v2038_v56 = vadd.f32 %v4297_v39, %v2037_v2  ;;  %v2091_v54 = vadd.f32 %v4301_v41, %v2090_v6  ;;  %v3753_v6 = vadd.f32 -0.5659875, %v2847_v7  ;;  %v1836_v2 = vadd.f32 %v4301_v41, %v1835_v18  ;;  %1904 = vst.msk [vmem:[#allocation2 + $0x60] sm:$0xff] %vm48_vm11, %v1855_v8  ;;  %v2234_v39 = vld [vmem:[#allocation3 + $0x70] sm:$0xff]  ;;  %v1620_v18 = vld [vmem:[#allocation2 + $0x88] sm:$0xff] }
 0x22c   :  { %1805 = vadd.xlane.f32.xlu1 %v1804_v19  ;;  %v5900_v51 = vpop.eup %4304  ;;  %v1986_v16 = vadd.f32 %v5886_v47, %v1985_v46  ;;  %vm2384_vm7 = vcmp.eq.s32.totalorder %v2153_v14, %v5646_v62  ;;  %vm2390_vm8 = vcmp.eq.s32.totalorder %v2155_v61, %v5646_v62  ;;  %v2855_v9 = vld [vmem:[#allocation2 + $0x40] sm:$0xff]  ;;  %v2157_v14 = vadd.s32 336, %v4503_v49 }
 0x22d   :  { %v2039_v20 = vadd.f32 %v5898_v37, %v2038_v56  ;;  %v2092_v45 = vadd.f32 %v5900_v51, %v2091_v54  ;;  %v1858_v56 = vadd.f32 %v1714_v36, %v1618_v34  ;;  %4308 = vlog2.f32 %v3753_v6  ;;  %v2237_v34 = vld [vmem:[#allocation3 + $0x88] sm:$0xff]  ;;  %v1621_v36 = vld [vmem:[#allocation2 + $0x90] sm:$0xff]  ;;  %v1623_v61 = vld [vmem:[#allocation2 + $0xa0] sm:$0xff] }
 0x22e   :  { %v1987_v31 = vrot.slane %v1986_v16, 4  ;;  %4310 = vlog2.f32 %v3755_v24  ;;  %v2528_v42 = vsel %vm2384_vm7, %v6185_v28, 0.0  ;;  %vm2396_vm9 = vcmp.eq.s32.totalorder %v2157_v14, %v5646_v62 }
 0x22f   :  { %v2040_v29 = vrot.slane %v2039_v20, 4  ;;  %v2093_v44 = vrot.slane %v2092_v45, 4  ;;  %1907 = vst.msk [vmem:[#allocation2 + $0x78] sm:$0xff] %vm48_vm11, %v1858_v56  ;;  %v3761_v24 = vadd.f32 -0.5659875, %v2855_v9 }
 0x230   :  { %1813 = vadd.xlane.f32.xlu1 %v1812_v48  ;;  %v1988_v4 = vadd.f32 %v1987_v31, %v1986_v16  ;;  %v2615_v48 = vpop.xlane.xlu0 %2614  ;;  %v2850_v16 = vld [vmem:[#allocation2 + $0x18] sm:$0xff] }
 0x231   :  { %v2041_v3 = vadd.f32 %v2040_v29, %v2039_v20  ;;  %v2094_v58 = vadd.f32 %v2093_v44, %v2092_v45  ;;  %v2762_v33 = vadd.f32 %v2615_v48, %v2234_v39  ;;  %v2235_v20 = vld [vmem:[#allocation3 + $0x78] sm:$0xff]  ;;  %v3756_v29 = vadd.f32 -0.5659875, %v2850_v16  ;;  %v2852_v44 = vld [vmem:[#allocation2 + $0x28] sm:$0xff] }
 0x232   :  { %v1989_v43 = vrot.slane %v1988_v4, 2 }
 0x233   :  { %v2042_v53 = vrot.slane %v2041_v3, 2  ;;  %v2095_v5 = vrot.slane %v2094_v58, 2  ;;  %2810 = vst.msk [vmem:[#allocation3 + $0x70] sm:$0xff] %vm48_vm11, %v2762_v33  ;;  %4312 = vlog2.f32 %v3756_v29  ;;  %v1622_v33 = vld [vmem:[#allocation2 + $0x98] sm:$0xff]  ;;  %v5934_v29 = vadd.f32 %v5863_v0, %v5855_v60 }
 0x234   :  { %1821 = vadd.xlane.f32.xlu1 %v1820_v13  ;;  %v1990_v63 = vadd.f32 %v1989_v43, %v1988_v4  ;;  %v2851_v13 = vld [vmem:[#allocation2 + $0x20] sm:$0xff]  ;;  %v2619_v31 = vpop.xlane.xlu0 %2618  ;;  %v1718_v4 = vpop.xlane.xlu1 %1717  ;;  %v3758_v43 = vadd.f32 -0.5659875, %v2852_v44 }
 0x235   :  { %v2043_v19 = vadd.f32 %v2042_v53, %v2041_v3  ;;  %v2096_v12 = vadd.f32 %v2095_v5, %v2094_v58  ;;  %v2763_v45 = vadd.f32 %v2619_v31, %v2235_v20  ;;  %v3757_v23 = vadd.f32 -0.5659875, %v2851_v13  ;;  %v6187_v20 = vld [vmem:[#allocation33_spill] sm:$0xff]  ;;  %v2238_v31 = vld [vmem:[#allocation3 + $0x90] sm:$0xff] }
 0x236   :  { %v1991_v32 = vrot.slane %v1990_v63, 1  ;;  %v1859_v3 = vadd.f32 %v1718_v4, %v1619_v26  ;;  %v4307_v58 = vpop.eup %4306  ;;  %v2856_v26 = vld [vmem:[#allocation2 + $0x48] sm:$0xff]  ;;  %v2161_v4 = vadd.s32 368, %v4503_v49 }
 0x237   :  { %v2044_v46 = vrot.slane %v2043_v19, 1  ;;  %v2097_v59 = vrot.slane %v2096_v12, 1  ;;  %2811 = vst.msk [vmem:[#allocation3 + $0x78] sm:$0xff] %vm48_vm11, %v2763_v45  ;;  %4314 = vlog2.f32 %v3757_v23  ;;  %v2946_v39 = vmul.f32 0.6931472, %v4307_v58 }
 0x238   :  { %1829 = vadd.xlane.f32.xlu1 %v1828_v11  ;;  %v1992_v54 = vadd.f32 %v1991_v32, %v1990_v63  ;;  %1908 = vst.msk [vmem:[#allocation2 + $0x80] sm:$0xff] %vm48_vm11, %v1859_v3  ;;  %v2853_v11 = vld [vmem:[#allocation2 + $0x30] sm:$0xff]  ;;  %v1722_v7 = vpop.xlane.xlu1 %1721  ;;  %v2623_v25 = vpop.xlane.xlu0 %2622  ;;  %v2854_v63 = vld [vmem:[#allocation2 + $0x38] sm:$0xff]  ;;  %4316 = vlog2.f32 %v3758_v43  ;;  %v3762_v44 = vadd.f32 -0.5659875, %v2856_v26  ;;  %vm2408_vm12 = vcmp.eq.s32.totalorder %v2161_v4, %v5646_v62 }
 0x239   :  { %v2045_v41 = vadd.f32 %v2044_v46, %v2043_v19  ;;  %v2098_v21 = vadd.f32 %v2097_v59, %v2096_v12  ;;  %v3759_v53 = vadd.f32 -0.5659875, %v2853_v11  ;;  %v1860_v22 = vadd.f32 %v1722_v7, %v1620_v18  ;;  %v6186_v19 = vld [vmem:[#allocation34_spill] sm:$0xff]  ;;  %v2239_v18 = vld [vmem:[#allocation3 + $0x98] sm:$0xff] }
 0x23a   :  { %2099 = vst [vmem:[#allocation10] sm:$0xff] %v1992_v54  ;;  %v2764_v8 = vadd.f32 %v2623_v25, %v2236_v40  ;;  %v2534_v5 = vsel %vm2390_vm8, %v6186_v19, 0.0  ;;  %v4309_v6 = vpop.eup %4308  ;;  %v3760_v32 = vadd.f32 -0.5659875, %v2854_v63  ;;  %v2540_v54 = vsel %vm2396_vm9, %v6187_v20, 0.0  ;;  %v6188_v40 = vld [vmem:[#allocation46_spill] sm:$0xff] }
 0x23b   :  { %2100 = vst [vmem:[#allocation10 + $0x8] sm:$0xff] %v2045_v41  ;;  %2101 = vst [vmem:[#allocation10 + $0x10] sm:$0xff] %v2098_v21  ;;  %4318 = vlog2.f32 %v3759_v53  ;;  %v4311_v12 = vpop.eup %4310  ;;  %v2944_v56 = vmul.f32 0.6931472, %v4309_v6  ;;  %v5929_v41 = vadd.f32 %v5832_v15, %v5825_v50  ;;  %v3040_v13 = vadd.f32 5.0, %v2946_v39  ;;  %v2857_v15 = vld [vmem:[#allocation2 + $0x50] sm:$0xff] }
 0x23c   :  { %1837 = vadd.xlane.f32.xlu1 %v1836_v2  ;;  %1909 = vst.msk [vmem:[#allocation2 + $0x88] sm:$0xff] %vm48_vm11, %v1860_v22  ;;  %2812 = vst.msk [vmem:[#allocation3 + $0x80] sm:$0xff] %vm48_vm11, %v2764_v8  ;;  %v2627_v2 = vpop.xlane.xlu0 %2626  ;;  %v1726_v46 = vpop.xlane.xlu1 %1725  ;;  %v2159_v59 = vadd.s32 352, %v4503_v49  ;;  %v2948_v28 = vmul.f32 0.6931472, %v4311_v12  ;;  %4320 = vlog2.f32 %v3760_v32  ;;  %v5945_v53 = vadd.f32 %v5878_v30, %v5873_v38  ;;  %v3136_v19 = vld [vmem:[#allocation3 + $0x8] sm:$0xff] }
 0x23d   :  { %v2765_v48 = vadd.f32 %v2627_v2, %v2237_v34  ;;  %v1861_v16 = vadd.f32 %v1726_v46, %v1621_v36  ;;  %v3039_v50 = vadd.f32 5.0, %v2944_v56  ;;  %4322 = vlog2.f32 %v3761_v24  ;;  %v6189_v34 = vld [vmem:[#allocation41_spill] sm:$0xff]  ;;  %v2858_v39 = vld [vmem:[#allocation2 + $0x58] sm:$0xff]  ;;  %v3135_v38 = vld [vmem:[#allocation3] sm:$0xff] }
 0x23e   :  { %vm2402_vm10 = vcmp.eq.s32.totalorder %v2159_v59, %v5646_v62  ;;  %v3088_v60 = vmul.f32 0.5, %v3040_v13  ;;  %v3041_v7 = vadd.f32 5.0, %v2948_v28  ;;  %v3763_v25 = vadd.f32 -0.5659875, %v2857_v15  ;;  %v1624_v46 = vld [vmem:[#allocation2 + $0xa8] sm:$0xff]  ;;  %v2240_v24 = vld [vmem:[#allocation3 + $0xa0] sm:$0xff] }
 0x23f   :  { %2813 = vst.msk [vmem:[#allocation3 + $0x88] sm:$0xff] %vm48_vm11, %v2765_v48  ;;  %1910 = vst.msk [vmem:[#allocation2 + $0x90] sm:$0xff] %vm48_vm11, %v1861_v16  ;;  %v2546_v43 = vsel %vm2402_vm10, %v6188_v40, 0.0  ;;  %v3087_v58 = vmul.f32 0.5, %v3039_v50  ;;  %v2552_v63 = vsel %vm2408_vm12, %v6189_v34, 0.0  ;;  %4324 = vlog2.f32 %v3762_v44  ;;  %v3137_v13 = vld [vmem:[#allocation3 + $0x10] sm:$0xff] }
 0x240   :  { %2710 = vadd.xlane.f32.xlu1 %v2528_v42  ;;  %v4313_v45 = vpop.eup %4312  ;;  %v1730_v42 = vpop.xlane.xlu1 %1729  ;;  %v3184_v2 = vsub.f32 %v3088_v60, %v3136_v19  ;;  %v1839_v48 = vadd.f32 %v5898_v37, %v5886_v47  ;;  %v3089_v30 = vmul.f32 0.5, %v3041_v7  ;;  %4326 = vlog2.f32 %v3763_v25  ;;  %v1625_v4 = vld [vmem:[#allocation2 + $0xb0] sm:$0xff]  ;;  %v3138_v44 = vld [vmem:[#allocation3 + $0x18] sm:$0xff] }
 0x241   :  { %v1862_v21 = vadd.f32 %v1730_v42, %v1622_v33  ;;  %v2631_v23 = vpop.xlane.xlu0 %2630  ;;  %v2950_v0 = vmul.f32 0.6931472, %v4313_v45  ;;  %v3183_v12 = vsub.f32 %v3087_v58, %v3135_v38  ;;  %v3764_v20 = vadd.f32 -0.5659875, %v2858_v39  ;;  %v2861_v38 = vld [vmem:[#allocation2 + $0x70] sm:$0xff] }
 0x242   :  { %v2766_v11 = vadd.f32 %v2631_v23, %v2238_v31  ;;  %v5953_v16 = vadd.f32 %v5900_v51, %v1839_v48  ;;  %v3426_v26 = vsel %vm48_vm11, %v3184_v2, 0.0  ;;  %v3185_v28 = vsub.f32 %v3089_v30, %v3137_v13  ;;  %v2241_v23 = vld [vmem:[#allocation3 + $0xa8] sm:$0xff] }
 0x243   :  { %1911 = vst.msk [vmem:[#allocation2 + $0x98] sm:$0xff] %vm48_vm11, %v1862_v21  ;;  %v3042_v14 = vadd.f32 5.0, %v2950_v0  ;;  %v3425_v15 = vsel %vm48_vm11, %v3183_v12, 0.0  ;;  %4328 = vlog2.f32 %v3764_v20 }
 0x244   :  { %2718 = vadd.xlane.f32.xlu1 %v2534_v5  ;;  %v4315_v3 = vpop.eup %4314  ;;  %2814 = vst.msk [vmem:[#allocation3 + $0x90] sm:$0xff] %vm48_vm11, %v2766_v11  ;;  %v1734_v5 = vpop.xlane.xlu1 %1733  ;;  %v3427_v11 = vadd.f32 %v3426_v26, %v3425_v15  ;;  %v3428_v58 = vsel %vm48_vm11, %v3185_v28, 0.0  ;;  %v3767_v28 = vadd.f32 -0.5659875, %v2861_v38  ;;  %v2862_v15 = vld [vmem:[#allocation2 + $0x78] sm:$0xff]  ;;  %v2245_v38 = vld [vmem:[#allocation3 + $0xc8] sm:$0xff] }
 0x245   :  { %v2952_v22 = vmul.f32 0.6931472, %v4315_v3  ;;  %v2635_v8 = vpop.xlane.xlu0 %2634  ;;  %v4317_v9 = vpop.eup %4316  ;;  %v1863_v36 = vadd.f32 %v1734_v5, %v1623_v61  ;;  %v3090_v31 = vmul.f32 0.5, %v3042_v14  ;;  %v3139_v61 = vld [vmem:[#allocation3 + $0x20] sm:$0xff]  ;;  %v2242_v14 = vld [vmem:[#allocation3 + $0xb0] sm:$0xff] }
 0x246   :  { %v2767_v6 = vadd.f32 %v2635_v8, %v2239_v18  ;;  %v2954_v33 = vmul.f32 0.6931472, %v4317_v9  ;;  %v1626_v8 = vld [vmem:[#allocation2 + $0xb8] sm:$0xff]  ;;  %v3429_v5 = vadd.f32 %v3428_v58, %v3427_v11 }
 0x247   :  { %v3043_v56 = vadd.f32 5.0, %v2952_v22  ;;  %1912 = vst.msk [vmem:[#allocation2 + $0xa0] sm:$0xff] %vm48_vm11, %v1863_v36  ;;  %v3186_v18 = vsub.f32 %v3090_v31, %v3138_v44  ;;  %v2863_v44 = vld [vmem:[#allocation2 + $0x80] sm:$0xff]  ;;  %v3142_v58 = vld [vmem:[#allocation3 + $0x38] sm:$0xff] }
 0x248   :  { %2726 = vadd.xlane.f32.xlu1 %v2540_v54  ;;  %v4319_v32 = vpop.eup %4318  ;;  %2815 = vst.msk [vmem:[#allocation3 + $0x98] sm:$0xff] %vm48_vm11, %v2767_v6  ;;  %v2859_v54 = vld [vmem:[#allocation2 + $0x60] sm:$0xff]  ;;  %v1738_v47 = vpop.xlane.xlu1 %1737  ;;  %v3044_v60 = vadd.f32 5.0, %v2954_v33 }
 0x249   :  { %v2639_v37 = vpop.xlane.xlu0 %2638  ;;  %v2956_v59 = vmul.f32 0.6931472, %v4319_v32  ;;  %v1864_v45 = vadd.f32 %v1738_v47, %v1624_v46  ;;  %v4321_v50 = vpop.eup %4320  ;;  %v3091_v21 = vmul.f32 0.5, %v3043_v56  ;;  %v3765_v51 = vadd.f32 -0.5659875, %v2859_v54  ;;  %v1627_v46 = vld [vmem:[#allocation2 + $0xc0] sm:$0xff] }
 0x24a   :  { %v2768_v42 = vadd.f32 %v2639_v37, %v2240_v24  ;;  %v4323_v3 = vpop.eup %4322  ;;  %v3092_v6 = vmul.f32 0.5, %v3044_v60  ;;  %v3430_v36 = vsel %vm48_vm11, %v3186_v18, 0.0  ;;  %v3140_v56 = vld [vmem:[#allocation3 + $0x28] sm:$0xff]  ;;  %v3141_v47 = vld [vmem:[#allocation3 + $0x30] sm:$0xff] }
 0x24b   :  { %1913 = vst.msk [vmem:[#allocation2 + $0xa8] sm:$0xff] %vm48_vm11, %v1864_v45  ;;  %v3045_v40 = vadd.f32 5.0, %v2956_v59  ;;  %v3187_v34 = vsub.f32 %v3091_v21, %v3139_v61  ;;  %v2960_v19 = vmul.f32 0.6931472, %v4323_v3  ;;  %4330 = vlog2.f32 %v3765_v51  ;;  %v2243_v59 = vld [vmem:[#allocation3 + $0xb8] sm:$0xff]  ;;  %v1628_v51 = vld [vmem:[#allocation2 + $0xc8] sm:$0xff] }
 0x24c   :  { %2734 = vadd.xlane.f32.xlu1 %v2546_v43  ;;  %2816 = vst.msk [vmem:[#allocation3 + $0xa0] sm:$0xff] %vm48_vm11, %v2768_v42  ;;  %v1742_v0 = vpop.xlane.xlu1 %1741  ;;  %v2860_v43 = vld [vmem:[#allocation2 + $0x68] sm:$0xff]  ;;  %v4325_v39 = vpop.eup %4324  ;;  %v3431_v37 = vadd.f32 %v3430_v36, %v3429_v5  ;;  %v3188_v13 = vsub.f32 %v3092_v6, %v3140_v56  ;;  %v1629_v5 = vld [vmem:[#allocation2 + $0xd0] sm:$0xff] }
 0x24d   :  { %v1865_v7 = vadd.f32 %v1742_v0, %v1625_v4  ;;  %v2643_v25 = vpop.xlane.xlu0 %2642  ;;  %v3766_v9 = vadd.f32 -0.5659875, %v2860_v43  ;;  %v3093_v48 = vmul.f32 0.5, %v3045_v40  ;;  %v4327_v12 = vpop.eup %4326  ;;  %v3432_v24 = vsel %vm48_vm11, %v3187_v34, 0.0  ;;  %v2244_v40 = vld [vmem:[#allocation3 + $0xc0] sm:$0xff] }
 0x24e   :  { %v2769_v22 = vadd.f32 %v2643_v25, %v2241_v23  ;;  %v3047_v20 = vadd.f32 5.0, %v2960_v19  ;;  %v2962_v26 = vmul.f32 0.6931472, %v4325_v39  ;;  %v3433_v4 = vadd.f32 %v3432_v24, %v3431_v37 }
 0x24f   :  { %1914 = vst.msk [vmem:[#allocation2 + $0xb0] sm:$0xff] %vm48_vm11, %v1865_v7  ;;  %4332 = vlog2.f32 %v3766_v9  ;;  %v3189_v45 = vsub.f32 %v3093_v48, %v3141_v47  ;;  %v3434_v60 = vsel %vm48_vm11, %v3188_v13, 0.0  ;;  %v3768_v25 = vadd.f32 -0.5659875, %v2862_v15  ;;  %v3145_v15 = vld [vmem:[#allocation3 + $0x50] sm:$0xff] }
 0x250   :  { %2742 = vadd.xlane.f32.xlu1 %v2552_v63  ;;  %v2958_v63 = vmul.f32 0.6931472, %v4321_v50  ;;  %2817 = vst.msk [vmem:[#allocation3 + $0xa8] sm:$0xff] %vm48_vm11, %v2769_v22  ;;  %v1746_v2 = vpop.xlane.xlu1 %1745  ;;  %v2964_v50 = vmul.f32 0.6931472, %v4327_v12  ;;  %v3095_v3 = vmul.f32 0.5, %v3047_v20  ;;  %v4329_v43 = vpop.eup %4328  ;;  %4334 = vlog2.f32 %v3767_v28 }
 0x251   :  { %v1866_v32 = vadd.f32 %v1746_v2, %v1626_v8  ;;  %v2647_v30 = vpop.xlane.xlu0 %2646  ;;  %v3048_v0 = vadd.f32 5.0, %v2962_v26  ;;  %v3436_v7 = vsel %vm48_vm11, %v3189_v45, 0.0  ;;  %v3143_v22 = vld [vmem:[#allocation3 + $0x40] sm:$0xff]  ;;  %v3435_v8 = vadd.f32 %v3434_v60, %v3433_v4  ;;  %v2864_v2 = vld [vmem:[#allocation2 + $0x88] sm:$0xff]  ;;  %v1630_v20 = vld [vmem:[#allocation2 + $0xd8] sm:$0xff] }
 0x252   :  { %v3046_v33 = vadd.f32 5.0, %v2958_v63  ;;  %v2770_v54 = vadd.f32 %v2647_v30, %v2242_v14  ;;  %v3049_v34 = vadd.f32 5.0, %v2964_v50  ;;  %v3769_v63 = vadd.f32 -0.5659875, %v2863_v44  ;;  %v3144_v26 = vld [vmem:[#allocation3 + $0x48] sm:$0xff]  ;;  %v2866_v28 = vld [vmem:[#allocation2 + $0x98] sm:$0xff] }
 0x253   :  { %1915 = vst.msk [vmem:[#allocation2 + $0xb8] sm:$0xff] %vm48_vm11, %v1866_v32  ;;  %v3191_v9 = vsub.f32 %v3095_v3, %v3143_v22  ;;  %v3437_v36 = vadd.f32 %v3436_v7, %v3435_v8  ;;  %v2966_v48 = vmul.f32 0.6931472, %v4329_v43  ;;  %v3096_v30 = vmul.f32 0.5, %v3048_v0  ;;  %v2246_v4 = vld [vmem:[#allocation3 + $0xd0] sm:$0xff]  ;;  %v1631_v60 = vld [vmem:[#allocation2 + $0xe0] sm:$0xff] }
 0x254   :  { %v1750_v31 = vpop.xlane.xlu1 %1749  ;;  %2818 = vst.msk [vmem:[#allocation3 + $0xb0] sm:$0xff] %vm48_vm11, %v2770_v54  ;;  %v3094_v23 = vmul.f32 0.5, %v3046_v33  ;;  %4336 = vlog2.f32 %v3768_v25  ;;  %v3097_v56 = vmul.f32 0.5, %v3049_v34  ;;  %v3770_v24 = vadd.f32 -0.5659875, %v2864_v2  ;;  %v2248_v43 = vld [vmem:[#allocation3 + $0xe0] sm:$0xff] }
 0x255   :  { %v1867_v42 = vadd.f32 %v1750_v31, %v1627_v46  ;;  %v2651_v21 = vpop.xlane.xlu0 %2650  ;;  %v2865_v46 = vld [vmem:[#allocation2 + $0x90] sm:$0xff]  ;;  %4338 = vlog2.f32 %v3769_v63  ;;  %v3440_v47 = vsel %vm48_vm11, %v3191_v9, 0.0  ;;  %v3050_v31 = vadd.f32 5.0, %v2966_v48  ;;  %v1632_v2 = vld [vmem:[#allocation2 + $0xe8] sm:$0xff] }
 0x256   :  { %v2771_v11 = vadd.f32 %v2651_v21, %v2243_v59  ;;  %v3190_v6 = vsub.f32 %v3094_v23, %v3142_v58  ;;  %v3771_v45 = vadd.f32 -0.5659875, %v2865_v46  ;;  %v3192_v21 = vsub.f32 %v3096_v30, %v3144_v26  ;;  %v2868_v58 = vld [vmem:[#allocation2 + $0xa8] sm:$0xff]  ;;  %v2869_v34 = vld [vmem:[#allocation2 + $0xb0] sm:$0xff] }
 0x257   :  { %1916 = vst.msk [vmem:[#allocation2 + $0xc0] sm:$0xff] %vm48_vm11, %v1867_v42  ;;  %v3193_v44 = vsub.f32 %v3097_v56, %v3145_v15  ;;  %4340 = vlog2.f32 %v3770_v24  ;;  %v3098_v7 = vmul.f32 0.5, %v3050_v31  ;;  %v3775_v46 = vadd.f32 -0.5659875, %v2869_v34  ;;  %v2250_v56 = vld [vmem:[#allocation3 + $0xf0] sm:$0xff]  ;;  %v2252_v15 = vld [vmem:[#allocation3 + $0x100] sm:$0xff] }
 0x258   :  { %v1754_v18 = vpop.xlane.xlu1 %1753  ;;  %2819 = vst.msk [vmem:[#allocation3 + $0xb8] sm:$0xff] %vm48_vm11, %v2771_v11  ;;  %v4331_v39 = vpop.eup %4330  ;;  %v3438_v54 = vsel %vm48_vm11, %v3190_v6, 0.0  ;;  %4342 = vlog2.f32 %v3771_v45  ;;  %v3442_v8 = vsel %vm48_vm11, %v3192_v21, 0.0  ;;  %v2254_v34 = vld [vmem:[#allocation3 + $0x110] sm:$0xff] }
 0x259   :  { %v1868_v61 = vadd.f32 %v1754_v18, %v1628_v51  ;;  %v2655_v19 = vpop.xlane.xlu0 %2654  ;;  %v2968_v37 = vmul.f32 0.6931472, %v4331_v39  ;;  %v3439_v59 = vadd.f32 %v3438_v54, %v3437_v36  ;;  %v2867_v51 = vld [vmem:[#allocation2 + $0xa0] sm:$0xff]  ;;  %v3772_v18 = vadd.f32 -0.5659875, %v2866_v28 }
 0x25a   :  { %v2772_v14 = vadd.f32 %v2655_v19, %v2244_v40  ;;  %v3444_v6 = vsel %vm48_vm11, %v3193_v44, 0.0  ;;  %v3774_v36 = vadd.f32 -0.5659875, %v2868_v58  ;;  %v3147_v54 = vld [vmem:[#allocation3 + $0x60] sm:$0xff] }
 0x25b   :  { %1917 = vst.msk [vmem:[#allocation2 + $0xc8] sm:$0xff] %vm48_vm11, %v1868_v61  ;;  %v3441_v3 = vadd.f32 %v3440_v47, %v3439_v59  ;;  %v3051_v0 = vadd.f32 5.0, %v2968_v37  ;;  %v3773_v61 = vadd.f32 -0.5659875, %v2867_v51  ;;  %4344 = vlog2.f32 %v3772_v18 }
 0x25c   :  { %v1758_v32 = vpop.xlane.xlu1 %1757  ;;  %2820 = vst.msk [vmem:[#allocation3 + $0xc0] sm:$0xff] %vm48_vm11, %v2772_v14  ;;  %v4333_v50 = vpop.eup %4332  ;;  %v3146_v14 = vld [vmem:[#allocation3 + $0x58] sm:$0xff] }
 0x25d   :  { %v1869_v12 = vadd.f32 %v1758_v32, %v1629_v5  ;;  %v2659_v33 = vpop.xlane.xlu0 %2658  ;;  %v2970_v25 = vmul.f32 0.6931472, %v4333_v50  ;;  %v4335_v19 = vpop.eup %4334  ;;  %v3443_v5 = vadd.f32 %v3442_v8, %v3441_v3  ;;  %v3099_v39 = vmul.f32 0.5, %v3051_v0  ;;  %v2870_v32 = vld [vmem:[#allocation2 + $0xb8] sm:$0xff] }
 0x25e   :  { %v2773_v13 = vadd.f32 %v2659_v33, %v2245_v38  ;;  %v3194_v38 = vsub.f32 %v3098_v7, %v3146_v14  ;;  %4346 = vlog2.f32 %v3773_v61  ;;  %v2972_v24 = vmul.f32 0.6931472, %v4335_v19  ;;  %v2871_v26 = vld [vmem:[#allocation2 + $0xc0] sm:$0xff]  ;;  %v3148_v7 = vld [vmem:[#allocation3 + $0x68] sm:$0xff] }
 0x25f   :  { %1918 = vst.msk [vmem:[#allocation2 + $0xd0] sm:$0xff] %vm48_vm11, %v1869_v12  ;;  %v3052_v30 = vadd.f32 5.0, %v2970_v25  ;;  %v3445_v47 = vadd.f32 %v3444_v6, %v3443_v5  ;;  %v3776_v31 = vadd.f32 -0.5659875, %v2870_v32  ;;  %v3195_v45 = vsub.f32 %v3099_v39, %v3147_v54 }
 0x260   :  { %v1762_v42 = vpop.xlane.xlu1 %1761  ;;  %2821 = vst.msk [vmem:[#allocation3 + $0xc8] sm:$0xff] %vm48_vm11, %v2773_v13  ;;  %v1633_v13 = vld [vmem:[#allocation2 + $0xf0] sm:$0xff]  ;;  %4348 = vlog2.f32 %v3774_v36  ;;  %v3053_v51 = vadd.f32 5.0, %v2972_v24 }
 0x261   :  { %v1870_v23 = vadd.f32 %v1762_v42, %v1630_v20  ;;  %v2663_v11 = vpop.xlane.xlu0 %2662  ;;  %v4337_v20 = vpop.eup %4336  ;;  %v3446_v42 = vsel %vm48_vm11, %v3194_v38, 0.0  ;;  %4350 = vlog2.f32 %v3775_v46  ;;  %v3448_v25 = vsel %vm48_vm11, %v3195_v45, 0.0 }
 0x262   :  { %v2774_v40 = vadd.f32 %v2663_v11, %v2246_v4  ;;  %v4339_v59 = vpop.eup %4338  ;;  %v3100_v4 = vmul.f32 0.5, %v3052_v30  ;;  %v2872_v21 = vld [vmem:[#allocation2 + $0xc8] sm:$0xff]  ;;  %v3777_v11 = vadd.f32 -0.5659875, %v2871_v26  ;;  %4352 = vlog2.f32 %v3776_v31  ;;  %v3149_v30 = vld [vmem:[#allocation3 + $0x70] sm:$0xff] }
 0x263   :  { %1919 = vst.msk [vmem:[#allocation2 + $0xd8] sm:$0xff] %vm48_vm11, %v1870_v23  ;;  %v2974_v23 = vmul.f32 0.6931472, %v4337_v20  ;;  %v2976_v0 = vmul.f32 0.6931472, %v4339_v59  ;;  %v3101_v5 = vmul.f32 0.5, %v3053_v51 }
 0x264   :  { %v1766_v22 = vpop.xlane.xlu1 %1765  ;;  %2822 = vst.msk [vmem:[#allocation3 + $0xd0] sm:$0xff] %vm48_vm11, %v2774_v40  ;;  %v1634_v40 = vld [vmem:[#allocation2 + $0xf8] sm:$0xff]  ;;  %v3778_v58 = vadd.f32 -0.5659875, %v2872_v21  ;;  %4354 = vlog2.f32 %v3777_v11 }
 0x265   :  { %v1871_v63 = vadd.f32 %v1766_v22, %v1631_v60  ;;  %v2671_v9 = vpop.xlane.xlu0 %2670  ;;  %v3447_v60 = vadd.f32 %v3446_v42, %v3445_v47  ;;  %v3196_v22 = vsub.f32 %v3100_v4, %v3148_v7  ;;  %v3054_v6 = vadd.f32 5.0, %v2974_v23  ;;  %v3150_v42 = vld [vmem:[#allocation3 + $0x78] sm:$0xff] }
 0x266   :  { %v2776_v48 = vadd.f32 %v2671_v9, %v2248_v43  ;;  %v2873_v44 = vld [vmem:[#allocation2 + $0xd0] sm:$0xff]  ;;  %v4341_v43 = vpop.eup %4340  ;;  %v3055_v14 = vadd.f32 5.0, %v2976_v0  ;;  %4356 = vlog2.f32 %v3778_v58  ;;  %v3197_v20 = vsub.f32 %v3101_v5, %v3149_v30 }
 0x267   :  { %1920 = vst.msk [vmem:[#allocation2 + $0xe0] sm:$0xff] %vm48_vm11, %v1871_v63  ;;  %v3779_v63 = vadd.f32 -0.5659875, %v2873_v44  ;;  %v4343_v19 = vpop.eup %4342  ;;  %v2978_v39 = vmul.f32 0.6931472, %v4341_v43  ;;  %v3450_v54 = vsel %vm48_vm11, %v3196_v22, 0.0 }
 0x268   :  { %v1770_v12 = vpop.xlane.xlu1 %1769  ;;  %2824 = vst.msk [vmem:[#allocation3 + $0xe0] sm:$0xff] %vm48_vm11, %v2776_v48  ;;  %v1635_v48 = vld [vmem:[#allocation2 + $0x100] sm:$0xff]  ;;  %v4345_v38 = vpop.eup %4344  ;;  %v2980_v46 = vmul.f32 0.6931472, %v4343_v19  ;;  %v3102_v47 = vmul.f32 0.5, %v3054_v6  ;;  %v3103_v31 = vmul.f32 0.5, %v3055_v14 }
 0x269   :  { %v1872_v33 = vadd.f32 %v1770_v12, %v1632_v2  ;;  %v2679_v37 = vpop.xlane.xlu0 %2678  ;;  %v3449_v2 = vadd.f32 %v3448_v25, %v3447_v60  ;;  %4358 = vlog2.f32 %v3779_v63  ;;  %v3056_v59 = vadd.f32 5.0, %v2978_v39  ;;  %v1637_v58 = vld [vmem:[#allocation2 + $0x110] sm:$0xff]  ;;  %v3152_v39 = vld [vmem:[#allocation3 + $0x88] sm:$0xff] }
 0x26a   :  { %v2778_v28 = vadd.f32 %v2679_v37, %v2250_v56  ;;  %v2256_v56 = vld [vmem:[#allocation3 + $0x120] sm:$0xff]  ;;  %v3057_v51 = vadd.f32 5.0, %v2980_v46  ;;  %v3452_v0 = vsel %vm48_vm11, %v3197_v20, 0.0  ;;  %v3153_v20 = vld [vmem:[#allocation3 + $0x90] sm:$0xff] }
 0x26b   :  { %1921 = vst.msk [vmem:[#allocation2 + $0xe8] sm:$0xff] %vm48_vm11, %v1872_v33  ;;  %v4347_v33 = vpop.eup %4346  ;;  %v3451_v26 = vadd.f32 %v3450_v54, %v3449_v2 }
 0x26c   :  { %v1774_v50 = vpop.xlane.xlu1 %1773  ;;  %2826 = vst.msk [vmem:[#allocation3 + $0xf0] sm:$0xff] %vm48_vm11, %v2778_v28  ;;  %v1636_v28 = vld [vmem:[#allocation2 + $0x108] sm:$0xff]  ;;  %v2984_v11 = vmul.f32 0.6931472, %v4347_v33  ;;  %v3105_v5 = vmul.f32 0.5, %v3057_v51 }
 0x26d   :  { %v1873_v3 = vadd.f32 %v1774_v50, %v1633_v13  ;;  %v2874_v13 = vld [vmem:[#allocation2 + $0xd8] sm:$0xff]  ;;  %v4349_v21 = vpop.eup %4348  ;;  %v3453_v7 = vadd.f32 %v3452_v0, %v3451_v26 }
 0x26e   :  { %v2875_v24 = vld [vmem:[#allocation2 + $0xe0] sm:$0xff]  ;;  %v3780_v44 = vadd.f32 -0.5659875, %v2874_v13  ;;  %v4351_v60 = vpop.eup %4350  ;;  %v2986_v63 = vmul.f32 0.6931472, %v4349_v21  ;;  %v3059_v2 = vadd.f32 5.0, %v2984_v11  ;;  %v3201_v26 = vsub.f32 %v3105_v5, %v3153_v20 }
 0x26f   :  { %1922 = vst.msk [vmem:[#allocation2 + $0xf0] sm:$0xff] %vm48_vm11, %v1873_v3  ;;  %v3781_v50 = vadd.f32 -0.5659875, %v2875_v24  ;;  %v1639_v21 = vld [vmem:[#allocation2 + $0x120] sm:$0xff]  ;;  %v3156_v5 = vld [vmem:[#allocation3 + $0xa8] sm:$0xff] }
 0x270   :  { %v1778_v8 = vpop.xlane.xlu1 %1777 }
 0x271   :  { %v1874_v9 = vadd.f32 %v1778_v8, %v1634_v40  ;;  %v3151_v40 = vld [vmem:[#allocation3 + $0x80] sm:$0xff]  ;;  %v4353_v8 = vpop.eup %4352  ;;  %4360 = vlog2.f32 %v3781_v50 }
 0x272   :  { %v3199_v25 = vsub.f32 %v3103_v31, %v3151_v40  ;;  %v2876_v22 = vld [vmem:[#allocation2 + $0xe8] sm:$0xff]  ;;  %4362 = vlog2.f32 %v3780_v44  ;;  %v2990_v33 = vmul.f32 0.6931472, %v4353_v8 }
 0x273   :  { %1923 = vst.msk [vmem:[#allocation2 + $0xf8] sm:$0xff] %vm48_vm11, %v1874_v9  ;;  %v2988_v9 = vmul.f32 0.6931472, %v4351_v60  ;;  %v3155_v60 = vld [vmem:[#allocation3 + $0xa0] sm:$0xff] }
 0x274   :  { %v3456_v30 = vsel %vm48_vm11, %v3199_v25, 0.0 }
 0x276   :  { %v2877_v3 = vld [vmem:[#allocation2 + $0xf0] sm:$0xff] }
 0x277   :  { %v1782_v12 = vpop.xlane.xlu1 %1781 }
 0x278   :  { %v1875_v37 = vadd.f32 %v1782_v12, %v1635_v48  ;;  %v3782_v48 = vadd.f32 -0.5659875, %v2876_v22  ;;  %v1638_v12 = vld [vmem:[#allocation2 + $0x118] sm:$0xff] }
 0x27a   :  { %1924 = vst.msk [vmem:[#allocation2 + $0x100] sm:$0xff] %vm48_vm11, %v1875_v37 }
 0x281   :  { %v2879_v24 = vld [vmem:[#allocation2 + $0x100] sm:$0xff] }
 0x282   :  { %v3785_v54 = vadd.f32 -0.5659875, %v2879_v24 }
 0x286   :  { %v2687_v18 = vpop.xlane.xlu0 %2686 }
 0x287   :  { %v2780_v61 = vadd.f32 %v2687_v18, %v2252_v15  ;;  %v2982_v15 = vmul.f32 0.6931472, %v4345_v38  ;;  %v3198_v18 = vsub.f32 %v3102_v47, %v3150_v42  ;;  %v3060_v47 = vadd.f32 5.0, %v2986_v63 }
 0x288   :  { %v1786_v23 = vpop.xlane.xlu1 %1785 }
 0x289   :  { %2828 = vst.msk [vmem:[#allocation3 + $0x100] sm:$0xff] %vm48_vm11, %v2780_v61  ;;  %v1876_v43 = vadd.f32 %v1786_v23, %v1636_v28  ;;  %v3104_v61 = vmul.f32 0.5, %v3056_v59  ;;  %v3058_v19 = vadd.f32 5.0, %v2982_v15  ;;  %v3454_v14 = vsel %vm48_vm11, %v3198_v18, 0.0  ;;  %v3154_v15 = vld [vmem:[#allocation3 + $0x98] sm:$0xff] }
 0x28a   :  { %v2695_v36 = vpop.xlane.xlu0 %2694  ;;  %v3455_v38 = vadd.f32 %v3454_v14, %v3453_v7  ;;  %v3061_v59 = vadd.f32 5.0, %v2988_v9  ;;  %v3062_v23 = vadd.f32 5.0, %v2990_v33  ;;  %v3108_v11 = vmul.f32 0.5, %v3060_v47  ;;  %v3158_v33 = vld [vmem:[#allocation3 + $0xb8] sm:$0xff] }
 0x28b   :  { %v2782_v32 = vadd.f32 %v2695_v36, %v2254_v34  ;;  %1925 = vst.msk [vmem:[#allocation2 + $0x108] sm:$0xff] %vm48_vm11, %v1876_v43  ;;  %v3783_v34 = vadd.f32 -0.5659875, %v2877_v3  ;;  %v3200_v46 = vsub.f32 %v3104_v61, %v3152_v39  ;;  %v3106_v37 = vmul.f32 0.5, %v3058_v19 }
 0x28c   :  { %v1790_v6 = vpop.xlane.xlu1 %1789  ;;  %v3457_v3 = vadd.f32 %v3456_v30, %v3455_v38  ;;  %v3460_v61 = vsel %vm48_vm11, %v3201_v26, 0.0  ;;  %v3109_v8 = vmul.f32 0.5, %v3061_v59  ;;  %v3110_v19 = vmul.f32 0.5, %v3062_v23  ;;  %v3157_v38 = vld [vmem:[#allocation3 + $0xb0] sm:$0xff] }
 0x28d   :  { %2830 = vst.msk [vmem:[#allocation3 + $0x110] sm:$0xff] %vm48_vm11, %v2782_v32  ;;  %v1877_v36 = vadd.f32 %v1790_v6, %v1637_v58  ;;  %v4355_v32 = vpop.eup %4354  ;;  %4364 = vlog2.f32 %v3783_v34  ;;  %v3202_v0 = vsub.f32 %v3106_v37, %v3154_v15  ;;  %v3458_v18 = vsel %vm48_vm11, %v3200_v46, 0.0  ;;  %v1640_v34 = vld [vmem:[#allocation2 + $0x128] sm:$0xff]  ;;  %v3159_v15 = vld [vmem:[#allocation3 + $0xc0] sm:$0xff] }
 0x28e   :  { %v2703_v45 = vpop.xlane.xlu0 %2702  ;;  %v4357_v13 = vpop.eup %4356  ;;  %v2992_v50 = vmul.f32 0.6931472, %v4355_v32  ;;  %4366 = vlog2.f32 %v3782_v48  ;;  %v3459_v6 = vadd.f32 %v3458_v18, %v3457_v3  ;;  %v3204_v14 = vsub.f32 %v3108_v11, %v3156_v5  ;;  %v2249_v11 = vld [vmem:[#allocation3 + $0xe8] sm:$0xff] }
 0x28f   :  { %v2784_v4 = vadd.f32 %v2703_v45, %v2256_v56  ;;  %v2878_v56 = vld [vmem:[#allocation2 + $0xf8] sm:$0xff]  ;;  %1926 = vst.msk [vmem:[#allocation2 + $0x110] sm:$0xff] %vm48_vm11, %v1877_v36  ;;  %v3107_v45 = vmul.f32 0.5, %v3059_v2  ;;  %v4359_v28 = vpop.eup %4358  ;;  %4368 = vlog2.f32 %v3785_v54  ;;  %v2994_v44 = vmul.f32 0.6931472, %v4357_v13 }
 0x290   :  { %v2996_v7 = vmul.f32 0.6931472, %v4359_v28  ;;  %v3063_v22 = vadd.f32 5.0, %v2992_v50  ;;  %v3462_v39 = vsel %vm48_vm11, %v3202_v0, 0.0  ;;  %v4361_v36 = vpop.eup %4360  ;;  %v3461_v30 = vadd.f32 %v3460_v61, %v3459_v6  ;;  %v2247_v54 = vld [vmem:[#allocation3 + $0xd8] sm:$0xff]  ;;  %v3160_v0 = vld [vmem:[#allocation3 + $0xc8] sm:$0xff] }
 0x291   :  { %2832 = vst.msk [vmem:[#allocation3 + $0x120] sm:$0xff] %vm48_vm11, %v2784_v4  ;;  %v1794_v31 = vpop.xlane.xlu1 %1793  ;;  %v3784_v4 = vadd.f32 -0.5659875, %v2878_v56  ;;  %v3203_v25 = vsub.f32 %v3107_v45, %v3155_v60  ;;  %v3064_v2 = vadd.f32 5.0, %v2994_v44  ;;  %v3205_v20 = vsub.f32 %v3109_v8, %v3157_v38 }
 0x292   :  { %v1878_v42 = vadd.f32 %v1794_v31, %v1638_v12  ;;  %v2880_v51 = vld [vmem:[#allocation2 + $0x108] sm:$0xff]  ;;  %v3065_v32 = vadd.f32 5.0, %v2996_v7  ;;  %v4363_v12 = vpop.eup %4362  ;;  %v3111_v24 = vmul.f32 0.5, %v3063_v22  ;;  %v3206_v37 = vsub.f32 %v3110_v19, %v3158_v33 }
 0x293   :  { %v3786_v43 = vadd.f32 -0.5659875, %v2880_v51  ;;  %4370 = vlog2.f32 %v3784_v4  ;;  %v3464_v46 = vsel %vm48_vm11, %v3203_v25, 0.0  ;;  %v3463_v13 = vadd.f32 %v3462_v39, %v3461_v30 }
 0x294   :  { %1927 = vst.msk [vmem:[#allocation2 + $0x118] sm:$0xff] %vm48_vm11, %v1878_v42  ;;  %v3000_v31 = vmul.f32 0.6931472, %v4361_v36  ;;  %v3112_v59 = vmul.f32 0.5, %v3064_v2  ;;  %v3466_v45 = vsel %vm48_vm11, %v3204_v14, 0.0  ;;  %v3113_v50 = vmul.f32 0.5, %v3065_v32 }
 0x295   :  { %v1798_v40 = vpop.xlane.xlu1 %1797  ;;  %4372 = vlog2.f32 %v3786_v43  ;;  %v2998_v4 = vmul.f32 0.6931472, %v4363_v12  ;;  %v3207_v23 = vsub.f32 %v3111_v24, %v3159_v15  ;;  %v3468_v3 = vsel %vm48_vm11, %v3205_v20, 0.0  ;;  %v2251_v14 = vld [vmem:[#allocation3 + $0xf8] sm:$0xff] }
 0x296   :  { %v1879_v58 = vadd.f32 %v1798_v40, %v1639_v21  ;;  %v2881_v63 = vld [vmem:[#allocation2 + $0x110] sm:$0xff]  ;;  %v3465_v21 = vadd.f32 %v3464_v46, %v3463_v13  ;;  %v3470_v40 = vsel %vm48_vm11, %v3206_v37, 0.0  ;;  %v3067_v61 = vadd.f32 5.0, %v3000_v31 }
 0x297   :  { %v3787_v9 = vadd.f32 -0.5659875, %v2881_v63  ;;  %v3208_v22 = vsub.f32 %v3112_v59, %v3160_v0 }
 0x298   :  { %1928 = vst.msk [vmem:[#allocation2 + $0x120] sm:$0xff] %vm48_vm11, %v1879_v58  ;;  %v3467_v18 = vadd.f32 %v3466_v45, %v3465_v21  ;;  %v3161_v58 = vld [vmem:[#allocation3 + $0xd0] sm:$0xff]  ;;  %v3115_v30 = vmul.f32 0.5, %v3067_v61  ;;  %v3163_v45 = vld [vmem:[#allocation3 + $0xe0] sm:$0xff] }
 0x299   :  { %v1802_v48 = vpop.xlane.xlu1 %1801  ;;  %4374 = vlog2.f32 %v3787_v9  ;;  %v3209_v63 = vsub.f32 %v3113_v50, %v3161_v58  ;;  %v3472_v9 = vsel %vm48_vm11, %v3207_v23, 0.0  ;;  %v3474_v46 = vsel %vm48_vm11, %v3208_v22, 0.0 }
 0x29a   :  { %v1880_v56 = vadd.f32 %v1802_v48, %v1640_v34  ;;  %v4365_v28 = vpop.eup %4364  ;;  %v3066_v34 = vadd.f32 5.0, %v2998_v4  ;;  %v3469_v19 = vadd.f32 %v3468_v3, %v3467_v18  ;;  %v3211_v15 = vsub.f32 %v3115_v30, %v3163_v45  ;;  %v2255_v18 = vld [vmem:[#allocation3 + $0x118] sm:$0xff]  ;;  %v3169_v45 = vld [vmem:[#allocation3 + $0x110] sm:$0xff] }
 0x29b   :  { %v2882_v47 = vld [vmem:[#allocation2 + $0x118] sm:$0xff]  ;;  %v4367_v44 = vpop.eup %4366  ;;  %v3004_v25 = vmul.f32 0.6931472, %v4365_v28  ;;  %v3476_v33 = vsel %vm48_vm11, %v3209_v63, 0.0 }
 0x29c   :  { %1929 = vst.msk [vmem:[#allocation2 + $0x128] sm:$0xff] %vm48_vm11, %v1880_v56  ;;  %v3788_v26 = vadd.f32 -0.5659875, %v2882_v47  ;;  %v4369_v43 = vpop.eup %4368  ;;  %v3002_v6 = vmul.f32 0.6931472, %v4367_v44  ;;  %v3471_v48 = vadd.f32 %v3470_v40, %v3469_v19  ;;  %v3114_v56 = vmul.f32 0.5, %v3066_v34 }
 0x29d   :  { %v2667_v42 = vpop.xlane.xlu1 %2666  ;;  %v3008_v36 = vmul.f32 0.6931472, %v4369_v43  ;;  %v3069_v38 = vadd.f32 5.0, %v3004_v25 }
 0x29e   :  { %v2775_v51 = vadd.f32 %v2667_v42, %v2247_v54  ;;  %4376 = vlog2.f32 %v3788_v26  ;;  %v3473_v24 = vadd.f32 %v3472_v9, %v3471_v48  ;;  %v3068_v37 = vadd.f32 5.0, %v3002_v6  ;;  %v2253_v26 = vld [vmem:[#allocation3 + $0x108] sm:$0xff] }
 0x29f   :  { %v2883_v60 = vld [vmem:[#allocation2 + $0x120] sm:$0xff]  ;;  %v3071_v31 = vadd.f32 5.0, %v3008_v36  ;;  %v3117_v4 = vmul.f32 0.5, %v3069_v38  ;;  %v2257_v36 = vld [vmem:[#allocation3 + $0x128] sm:$0xff] }
 0x2a0   :  { %2823 = vst.msk [vmem:[#allocation3 + $0xd8] sm:$0xff] %vm48_vm11, %v2775_v51  ;;  %v3789_v7 = vadd.f32 -0.5659875, %v2883_v60  ;;  %v4371_v2 = vpop.eup %4370  ;;  %v3475_v28 = vadd.f32 %v3474_v46, %v3473_v24 }
 0x2a1   :  { %v2675_v8 = vpop.xlane.xlu1 %2674  ;;  %v3006_v47 = vmul.f32 0.6931472, %v4371_v2  ;;  %v3119_v40 = vmul.f32 0.5, %v3071_v31  ;;  %v3167_v2 = vld [vmem:[#allocation3 + $0x100] sm:$0xff]  ;;  %v1641_v31 = vld [vmem:[#allocation2 + $0x130] sm:$0xff] }
 0x2a2   :  { %v2777_v5 = vadd.f32 %v2675_v8, %v2249_v11  ;;  %4378 = vlog2.f32 %v3789_v7  ;;  %v4373_v20 = vpop.eup %4372  ;;  %v3477_v23 = vadd.f32 %v3476_v33, %v3475_v28  ;;  %v3116_v11 = vmul.f32 0.5, %v3068_v37  ;;  %v3165_v7 = vld [vmem:[#allocation3 + $0xf0] sm:$0xff] }
 0x2a3   :  { %v2884_v39 = vld [vmem:[#allocation2 + $0x128] sm:$0xff]  ;;  %v3010_v51 = vmul.f32 0.6931472, %v4373_v20  ;;  %v3070_v44 = vadd.f32 5.0, %v3006_v47  ;;  %v3213_v22 = vsub.f32 %v3117_v4, %v3165_v7  ;;  %v3480_v8 = vsel %vm48_vm11, %v3211_v15, 0.0 }
 0x2a4   :  { %2825 = vst.msk [vmem:[#allocation3 + $0xe8] sm:$0xff] %vm48_vm11, %v2777_v5  ;;  %v3790_v32 = vadd.f32 -0.5659875, %v2884_v39 }
 0x2a5   :  { %v2683_v12 = vpop.xlane.xlu1 %2682  ;;  %v3072_v63 = vadd.f32 5.0, %v3010_v51  ;;  %v3118_v9 = vmul.f32 0.5, %v3070_v44 }
 0x2a6   :  { %v2779_v54 = vadd.f32 %v2683_v12, %v2251_v14  ;;  %4380 = vlog2.f32 %v3790_v32  ;;  %v4375_v13 = vpop.eup %4374  ;;  %v3215_v32 = vsub.f32 %v3119_v40, %v3167_v2  ;;  %v3171_v40 = vld [vmem:[#allocation3 + $0x120] sm:$0xff] }
 0x2a7   :  { %v3162_v59 = vld [vmem:[#allocation3 + $0xd8] sm:$0xff]  ;;  %v3012_v42 = vmul.f32 0.6931472, %v4375_v13  ;;  %v3120_v33 = vmul.f32 0.5, %v3072_v63 }
 0x2a8   :  { %2827 = vst.msk [vmem:[#allocation3 + $0xf8] sm:$0xff] %vm48_vm11, %v2779_v54  ;;  %v3210_v50 = vsub.f32 %v3114_v56, %v3162_v59  ;;  %v3484_v56 = vsel %vm48_vm11, %v3213_v22, 0.0 }
 0x2a9   :  { %v2691_v21 = vpop.xlane.xlu1 %2690  ;;  %v3073_v61 = vadd.f32 5.0, %v3012_v42  ;;  %v3488_v42 = vsel %vm48_vm11, %v3215_v32, 0.0  ;;  %v1647_v32 = vld [vmem:[#allocation2 + $0x160] sm:$0xff] }
 0x2aa   :  { %v2781_v3 = vadd.f32 %v2691_v21, %v2253_v26  ;;  %v3478_v60 = vsel %vm48_vm11, %v3210_v50, 0.0 }
 0x2ab   :  { %v4377_v0 = vpop.eup %4376  ;;  %v3164_v43 = vld [vmem:[#allocation3 + $0xe8] sm:$0xff]  ;;  %v3479_v25 = vadd.f32 %v3478_v60, %v3477_v23  ;;  %v3121_v46 = vmul.f32 0.5, %v3073_v61 }
 0x2ac   :  { %2829 = vst.msk [vmem:[#allocation3 + $0x108] sm:$0xff] %vm48_vm11, %v2781_v3  ;;  %v3212_v58 = vsub.f32 %v3116_v11, %v3164_v43  ;;  %v3014_v6 = vmul.f32 0.6931472, %v4377_v0  ;;  %v1643_v0 = vld [vmem:[#allocation2 + $0x140] sm:$0xff] }
 0x2ad   :  { %v2699_v34 = vpop.xlane.xlu1 %2698  ;;  %v3481_v19 = vadd.f32 %v3480_v8, %v3479_v25  ;;  %v3217_v21 = vsub.f32 %v3121_v46, %v3169_v45  ;;  %v6190_v45 = vld [vmem:[#allocation31_spill] sm:$0xff] }
 0x2ae   :  { %v2783_v5 = vadd.f32 %v2699_v34, %v2255_v18  ;;  %v3482_v14 = vsel %vm48_vm11, %v3212_v58, 0.0  ;;  %v3074_v47 = vadd.f32 5.0, %v3014_v6 }
 0x2af   :  { %v4379_v39 = vpop.eup %4378  ;;  %v3166_v48 = vld [vmem:[#allocation3 + $0xf8] sm:$0xff]  ;;  %v3483_v38 = vadd.f32 %v3482_v14, %v3481_v19  ;;  %v3492_v61 = vsel %vm48_vm11, %v3217_v21, 0.0  ;;  %v1645_v19 = vld [vmem:[#allocation2 + $0x150] sm:$0xff] }
 0x2b0   :  { %2831 = vst.msk [vmem:[#allocation3 + $0x118] sm:$0xff] %vm48_vm11, %v2783_v5  ;;  %v3016_v30 = vmul.f32 0.6931472, %v4379_v39  ;;  %v3214_v12 = vsub.f32 %v3118_v9, %v3166_v48  ;;  %v3122_v11 = vmul.f32 0.5, %v3074_v47  ;;  %v2266_v21 = vld [vmem:[#allocation3 + $0x170] sm:$0xff] }
 0x2b1   :  { %v2707_v24 = vpop.xlane.xlu1 %2706  ;;  %v3485_v20 = vadd.f32 %v3484_v56, %v3483_v38  ;;  %v1808_v56 = vadd.f32 %v6167_v10, %v5892_v57  ;;  %v1832_v10 = vadd.f32 %v5776_v35, %v5945_v53  ;;  %v2260_v57 = vld [vmem:[#allocation3 + $0x140] sm:$0xff]  ;;  %v2158_v35 = vadd.s32 344, %v4503_v49 }
 0x2b2   :  { %v2785_v54 = vadd.f32 %v2707_v24, %v2257_v36  ;;  %v3075_v37 = vadd.f32 5.0, %v3016_v30  ;;  %v3486_v13 = vsel %vm48_vm11, %v3214_v12, 0.0  ;;  %v2264_v53 = vld [vmem:[#allocation3 + $0x160] sm:$0xff] }
 0x2b3   :  { %v4381_v26 = vpop.eup %4380  ;;  %v3168_v59 = vld [vmem:[#allocation3 + $0x108] sm:$0xff]  ;;  %v3487_v28 = vadd.f32 %v3486_v13, %v3485_v20  ;;  %v1816_v20 = vadd.f32 %v5323_v17, %v5929_v41  ;;  %v1824_v13 = vadd.f32 %v6182_v52, %v5934_v29  ;;  %v2156_v52 = vadd.s32 328, %v4503_v49 }
 0x2b4   :  { %2833 = vst.msk [vmem:[#allocation3 + $0x128] sm:$0xff] %vm48_vm11, %v2785_v54  ;;  %v3018_v4 = vmul.f32 0.6931472, %v4381_v26  ;;  %v3123_v50 = vmul.f32 0.5, %v3075_v37  ;;  %v3216_v15 = vsub.f32 %v3120_v33, %v3168_v59  ;;  %v2258_v54 = vld [vmem:[#allocation3 + $0x130] sm:$0xff]  ;;  %v2154_v26 = vadd.s32 312, %v4503_v49 }
 0x2b5   :  { %v1806_v51 = vpop.xlane.xlu1 %1805  ;;  %v3489_v23 = vadd.f32 %v3488_v42, %v3487_v28  ;;  %vm2393_vm15 = vcmp.eq.s32.totalorder %v2156_v52, %v5646_v62  ;;  %vm2399_vm0 = vcmp.eq.s32.totalorder %v2158_v35, %v5646_v62 }
 0x2b6   :  { %v1881_v3 = vadd.f32 %v1806_v51, %v1641_v31  ;;  %v3076_v44 = vadd.f32 5.0, %v3018_v4  ;;  %v3490_v60 = vsel %vm48_vm11, %v3216_v15, 0.0  ;;  %v3219_v25 = vsub.f32 %v3123_v50, %v3171_v40  ;;  %v2262_v31 = vld [vmem:[#allocation3 + $0x150] sm:$0xff]  ;;  %v6191_v4 = vld [vmem:[#allocation39_spill] sm:$0xff] }
 0x2b7   :  { %v3170_v18 = vld [vmem:[#allocation3 + $0x118] sm:$0xff]  ;;  %v3491_v43 = vadd.f32 %v3490_v60, %v3489_v23  ;;  %vm2387_vm14 = vcmp.eq.s32.totalorder %v2154_v26, %v5646_v62  ;;  %v2537_v50 = vsel %vm2393_vm15, %v6191_v4, 0.0  ;;  %v2160_v15 = vadd.s32 360, %v4503_v49  ;;  %v6192_v23 = vld [vmem:[#allocation37_spill] sm:$0xff] }
 0x2b8   :  { %1930 = vst.msk [vmem:[#allocation2 + $0x130] sm:$0xff] %vm48_vm11, %v1881_v3  ;;  %v3218_v7 = vsub.f32 %v3122_v11, %v3170_v18  ;;  %v3124_v34 = vmul.f32 0.5, %v3076_v44  ;;  %v3496_v2 = vsel %vm48_vm11, %v3219_v25, 0.0  ;;  %v2531_v28 = vsel %vm2387_vm14, %v6190_v45, 0.0 }
 0x2b9   :  { %v1814_v58 = vpop.xlane.xlu1 %1813  ;;  %v3493_v22 = vadd.f32 %v3492_v61, %v3491_v43  ;;  %v2543_v3 = vsel %vm2399_vm0, %v6192_v23, 0.0  ;;  %vm2405_vm1 = vcmp.eq.s32.totalorder %v2160_v15, %v5646_v62  ;;  %v2162_v11 = vadd.s32 376, %v4503_v49 }
 0x2ba   :  { %v1883_v8 = vadd.f32 %v1814_v58, %v1643_v0  ;;  %v3494_v63 = vsel %vm48_vm11, %v3218_v7, 0.0  ;;  %v2549_v60 = vsel %vm2405_vm1, %v5299_v27, 0.0 }
 0x2bb   :  { %v3172_v5 = vld [vmem:[#allocation3 + $0x128] sm:$0xff]  ;;  %v3495_v6 = vadd.f32 %v3494_v63, %v3493_v22  ;;  %vm2411_vm2 = vcmp.eq.s32.totalorder %v2162_v11, %v5646_v62 }
 0x2bc   :  { %1932 = vst.msk [vmem:[#allocation2 + $0x140] sm:$0xff] %vm48_vm11, %v1883_v8  ;;  %v3220_v9 = vsub.f32 %v3124_v34, %v3172_v5  ;;  %v2555_v0 = vsel %vm2411_vm2, %v5678_v55, 0.0 }
 0x2bd   :  { %v1822_v14 = vpop.xlane.xlu1 %1821  ;;  %v3497_v39 = vadd.f32 %v3496_v2, %v3495_v6 }
 0x2be   :  { %v1885_v36 = vadd.f32 %v1822_v14, %v1645_v19  ;;  %v3414_v48 = vsel %vm3366_vm13, %v3220_v9, 0.0 }
 0x2bf   :  { %v3498_v38 = vsel %vm48_vm11, %v3414_v48, 0.0 }
 0x2c0   :  { %1934 = vst.msk [vmem:[#allocation2 + $0x150] sm:$0xff] %vm48_vm11, %v1885_v36  ;;  %v3499_v30 = vadd.f32 %v3498_v38, %v3497_v39 }
 0x2c1   :  { %v1830_v46 = vpop.xlane.xlu1 %1829 }
 0x2c2   :  { %v1887_v12 = vadd.f32 %v1830_v46, %v1647_v32  ;;  %3520 = vadd.xlane.f32.xlu0 %v3499_v30 }
 0x2c4   :  { %1936 = vst.msk [vmem:[#allocation2 + $0x160] sm:$0xff] %vm48_vm11, %v1887_v12 }
 0x2c5   :  { %v1838_v24 = vpop.xlane.xlu1 %1837 }
 0x2c6   :  { %v1889_v33 = vadd.f32 %v1838_v24, %v1649_v1  ;;  %1809 = vadd.xlane.f32.xlu0 %v1808_v56 }
 0x2c8   :  { %1938 = vst.msk [vmem:[#allocation2 + $0x170] sm:$0xff] %vm48_vm11, %v1889_v33 }
 0x2c9   :  { %v2711_v47 = vpop.xlane.xlu1 %2710 }
 0x2ca   :  { %v2786_v37 = vadd.f32 %v2711_v47, %v2258_v54  ;;  %1817 = vadd.xlane.f32.xlu0 %v1816_v20 }
 0x2cc   :  { %2834 = vst.msk [vmem:[#allocation3 + $0x130] sm:$0xff] %vm48_vm11, %v2786_v37 }
 0x2cd   :  { %v2719_v17 = vpop.xlane.xlu1 %2718 }
 0x2ce   :  { %1825 = vadd.xlane.f32.xlu0 %v1824_v13  ;;  %v2788_v41 = vadd.f32 %v2719_v17, %v2260_v57 }
 0x2d0   :  { %2836 = vst.msk [vmem:[#allocation3 + $0x140] sm:$0xff] %vm48_vm11, %v2788_v41 }
 0x2d1   :  { %v2727_v29 = vpop.xlane.xlu1 %2726 }
 0x2d2   :  { %1833 = vadd.xlane.f32.xlu0 %v1832_v10  ;;  %v2790_v59 = vadd.f32 %v2727_v29, %v2262_v31 }
 0x2d4   :  { %2838 = vst.msk [vmem:[#allocation3 + $0x150] sm:$0xff] %vm48_vm11, %v2790_v59 }
 0x2d5   :  { %v2735_v42 = vpop.xlane.xlu1 %2734 }
 0x2d6   :  { %1841 = vadd.xlane.f32.xlu0 %v5953_v16  ;;  %v2792_v16 = vadd.f32 %v2735_v42, %v2264_v53 }
 0x2d8   :  { %2840 = vst.msk [vmem:[#allocation3 + $0x160] sm:$0xff] %vm48_vm11, %v2792_v16 }
 0x2d9   :  { %v2743_v51 = vpop.xlane.xlu1 %2742 }
 0x2da   :  { %2714 = vadd.xlane.f32.xlu0 %v2531_v28  ;;  %v2794_v44 = vadd.f32 %v2743_v51, %v2266_v21 }
 0x2dc   :  { %2842 = vst.msk [vmem:[#allocation3 + $0x170] sm:$0xff] %vm48_vm11, %v2794_v44 }
 0x2de   :  { %2722 = vadd.xlane.f32.xlu0 %v2537_v50 }
 0x2e2   :  { %2730 = vadd.xlane.f32.xlu0 %v2543_v3 }
 0x2e6   :  { %2738 = vadd.xlane.f32.xlu0 %v2549_v60 }
 0x2ea   :  { %2746 = vadd.xlane.f32.xlu0 %v2555_v0 }
 0x2eb   :  { %4433 = shalt.err (!%p4430_p0)
}
 0x2ec   :  { %3550 = dma.vmem_to_hbm [thread:$0]  %s3548_s1, 384, %s6082_s3, [#allocation11]   ;;  %v1642_v62 = vld [vmem:[#allocation2 + $0x138] sm:$0xff]  ;;  %v1644_v7 = vld [vmem:[#allocation2 + $0x148] sm:$0xff] }
 0x2ed   :  { %v1646_v8 = vld [vmem:[#allocation2 + $0x158] sm:$0xff]  ;;  %v1648_v5 = vld [vmem:[#allocation2 + $0x168] sm:$0xff]  ;;  %s4476_s3 = smov [#allocation9]  }
 0x2ee   :  { %v1650_v2 = vld [vmem:[#allocation2 + $0x178] sm:$0xff]  ;;  %v2261_v38 = vld [vmem:[#allocation3 + $0x148] sm:$0xff]  ;;  %s3537_s27 = sshll.u32 %s4476_s3, 4  ;;  %s3538_s27 = int_to_ptr.vmem [resolvable:$true] %s3537_s27 }
 0x2ef   :  { %v2259_v36 = vld [vmem:[#allocation3 + $0x138] sm:$0xff]  ;;  %v2265_v24 = vld [vmem:[#allocation3 + $0x168] sm:$0xff]  ;;  %s4442_s29 = scalar_lea.vmem %s3538_s27, 128  ;;  %p4447_p2 = scmp.lt.s32.totalorder %s3538_s27, %s3538_s27 }
 0x2f0   :  { %v2263_v12 = vld [vmem:[#allocation3 + $0x158] sm:$0xff]  ;;  %p4443_p1 = scmp.ne.s32.totalorder %s3538_s27, %s4442_s29  ;;  %p4448_p3 = scmp.lt.s32.totalorder %s4442_s29, %s4442_s29 }
 0x2f1   :  { %v2267_v54 = vld [vmem:[#allocation3 + $0x178] sm:$0xff] }
 0x2f2   :  { %p4449_p4 = por %p4448_p3, %p4447_p2 }
 0x2f4   :  { %p4450_p5 = pnand %p4449_p4, %p4443_p1 }
 0x34b   :  { %v3521_v49 = vpop.xlane.xlu0 %3520 }
 0x34c   :  { %v3522_v27 = vrot.slane %v3521_v49, 4 }
 0x34e   :  { %v3523_v18 = vadd.f32 %v3522_v27, %v3521_v49 }
 0x34f   :  { %v1810_v55 = vpop.xlane.xlu0 %1809 }
 0x350   :  { %v3524_v40 = vrot.slane %v3523_v18, 2  ;;  %v1882_v43 = vadd.f32 %v1810_v55, %v1642_v62 }
 0x352   :  { %1931 = vst.msk [vmem:[#allocation2 + $0x138] sm:$0xff] %vm48_vm11, %v1882_v43  ;;  %v3525_v25 = vadd.f32 %v3524_v40, %v3523_v18 }
 0x353   :  { %v1818_v61 = vpop.xlane.xlu0 %1817 }
 0x354   :  { %v1884_v58 = vadd.f32 %v1818_v61, %v1644_v7  ;;  %v3526_v22 = vrot.slane %v3525_v25, 1 }
 0x356   :  { %1933 = vst.msk [vmem:[#allocation2 + $0x148] sm:$0xff] %vm48_vm11, %v1884_v58  ;;  %v3527_v34 = vadd.f32 %v3526_v22, %v3525_v25 }
 0x357   :  { %v1826_v63 = vpop.xlane.xlu0 %1825 }
 0x358   :  { %v1886_v19 = vadd.f32 %v1826_v63, %v1646_v8  ;;  %3961 = vpush %v3527_v34 }
 0x35a   :  { %1935 = vst.msk [vmem:[#allocation2 + $0x158] sm:$0xff] %vm48_vm11, %v1886_v19 }
 0x35b   :  { %v1834_v6 = vpop.xlane.xlu0 %1833 }
 0x35c   :  { %v1888_v9 = vadd.f32 %v1834_v6, %v1648_v5 }
 0x35e   :  { %1937 = vst.msk [vmem:[#allocation2 + $0x168] sm:$0xff] %vm48_vm11, %v1888_v9 }
 0x35f   :  { %v1842_v14 = vpop.xlane.xlu0 %1841 }
 0x360   :  { %v1890_v39 = vadd.f32 %v1842_v14, %v1650_v2 }
 0x362   :  { %1939 = vst.msk [vmem:[#allocation2 + $0x178] sm:$0xff] %vm48_vm11, %v1890_v39 }
 0x363   :  { %v2715_v48 = vpop.xlane.xlu0 %2714 }
 0x364   :  { %v2787_v32 = vadd.f32 %v2715_v48, %v2259_v36 }
 0x366   :  { %2835 = vst.msk [vmem:[#allocation3 + $0x138] sm:$0xff] %vm48_vm11, %v2787_v32 }
 0x367   :  { %v2723_v30 = vpop.xlane.xlu0 %2722 }
 0x368   :  { %v2789_v46 = vadd.f32 %v2723_v30, %v2261_v38 }
 0x36a   :  { %2837 = vst.msk [vmem:[#allocation3 + $0x148] sm:$0xff] %vm48_vm11, %v2789_v46 }
 0x36b   :  { %v2731_v1 = vpop.xlane.xlu0 %2730 }
 0x36c   :  { %v2791_v56 = vadd.f32 %v2731_v1, %v2263_v12 }
 0x36e   :  { %2839 = vst.msk [vmem:[#allocation3 + $0x158] sm:$0xff] %vm48_vm11, %v2791_v56 }
 0x36f   :  { %v2739_v33 = vpop.xlane.xlu0 %2738 }
 0x370   :  { %v2793_v20 = vadd.f32 %v2739_v33, %v2265_v24 }
 0x372   :  { %2841 = vst.msk [vmem:[#allocation3 + $0x168] sm:$0xff] %vm48_vm11, %v2793_v20 }
 0x373   :  { %v2747_v47 = vpop.xlane.xlu0 %2746 }
 0x374   :  { %v2795_v37 = vadd.f32 %v2747_v47, %v2267_v54 }
 0x376   :  { %2843 = vst.msk [vmem:[#allocation3 + $0x178] sm:$0xff] %vm48_vm11, %v2795_v37 }
 0x389   :  { %s3962_s28 = spop %3961 }
 0x38a   :  { %v3529_v13 = vstv %s3962_s28 }
 0x38b   :  { %3530 = vst [vmem:[#allocation9] sm:$0xff] %v3529_v13 }
 0x38c   :  { %4453 = shalt.err (!%p4450_p5)
}
 0x38d   :  { %3540 = dma.vmem_to_hbm [thread:$0]  %s3538_s27, 128, %s6081_s2, [#allocation6]  }
 0x38e   :  { %4466 = dma.done.wait [#allocation6], 128  }
 0x38f   :  { %4467 = vsyncadd [#allocation6], 4294967168 }
 0x390   :  { %4468 = dma.done.wait [#allocation11], 384  }
 0x391   :  { %4469 = vsyncadd [#allocation11], 4294966912 }
 0x392   :  { %3557 = vsyncpa [#allocation5], 1 }
 0x393   :  { %3558 = vsyncpa [#allocation8], 1 }
 0x394   :  { %3559 = vsyncpa [#allocation6], 1 }
 0x395   :  { %3560 = vsyncpa [#allocation11], 1 }

</bundles_post_ra>
